<compile_context>
chip_gen: v5e
topology: v5e:2x2
jax: 0.10.0
libtpu: 0.0.40
codegen_flags: <defaults>
</compile_context>

<pallas_src>
import functools

import jax
import jax.numpy as jnp
from jax.experimental import pallas as pl
from jax.experimental.pallas import tpu as pltpu

EPS = 1e-5  # torch.nn.LayerNorm default


def _layer_norm(x, w, b):
    mu = jnp.mean(x, axis=-1, keepdims=True)
    xc = x - mu
    var = jnp.mean(xc * xc, axis=-1, keepdims=True)
    return xc * jax.lax.rsqrt(var + EPS) * w + b


# --------------------------------------------------------------------------
# Single fused kernel: one grid step == one sample through the whole network.
# --------------------------------------------------------------------------
def _clip_vit_kernel(
    xp_ref, conv_w_ref, glob_ref, proj_ref,
    wqkv_ref, bqkv_ref, wout_ref, fcw_ref, fcb_ref, prw_ref, lslab_ref,
    feat_ref, ge_ref,
    *, n_real, n_spatial, heads, layers, out_indices):
    f32, bf16 = jnp.float32, jnp.bfloat16
    LP = xp_ref.shape[0]            # padded tokens per sample (multiple of 8)
    W = conv_w_ref.shape[1]
    hd = W // heads
    scale = hd ** -0.5

    # ---- patch embedding: Conv2d(k=s=patch, bias=False) as one matmul.
    # Row 0 (cls slot) and the pad rows are zero pixel rows -> stay zero.
    patches = jnp.dot(xp_ref[...].astype(bf16), conv_w_ref[...],
                      preferred_element_type=f32)                # (LP, W)

    # ---- token assembly: single add of the precomputed additive bias tile.
    # Row 0 of the bias tile is pos[0] + 2*class_embedding (the reference adds
    # class_embedding twice to the cls token); spatial rows are the positional
    # embedding; pad rows are zero.
    x = patches + glob_ref[0:LP, :]
    x = _layer_norm(x, glob_ref[LP:LP + 1, :], glob_ref[LP + 1:LP + 2, :])

    # ---- additive key mask removing the padded token slots (built once).
    key_idx = jax.lax.broadcasted_iota(jnp.int32, (1, 1, LP), 2)
    kmask = jnp.where(key_idx < n_real, 0.0, -1e30).astype(f32)

    tap_rows = []
    for l in range(layers):
        lw = lslab_ref[l]                                        # (8, W) f32
        # ---------------- multi-head self-attention (head-batched) ----------
        y = _layer_norm(x, lw[0:1, :], lw[1:2, :]).astype(bf16)
        y_b = jnp.broadcast_to(y[None], (heads, LP, W))          # batched lhs
        qkv = jnp.einsum('hlw,hwd->hld', y_b, wqkv_ref[l],
                         preferred_element_type=f32) + bqkv_ref[l]  # (h,LP,3hd)
        q = (qkv[..., 0:hd] * scale).astype(bf16)
        k = qkv[..., hd:2 * hd].astype(bf16)
        v = qkv[..., 2 * hd:3 * hd].astype(bf16)
        s = jnp.einsum('hqd,hkd->hqk', q, k,
                       preferred_element_type=f32) + kmask       # (h,LP,LP)
        s = s - jnp.max(s, axis=-1, keepdims=True)
        p = jnp.exp(s)
        p = p / jnp.sum(p, axis=-1, keepdims=True)               # exact divide
        o = jnp.einsum('hqk,hkd->hqd', p.astype(bf16), v,
                       preferred_element_type=f32)               # (h,LP,hd)
        # per-head output projection; head merge = sum over leading axis
        attn = jnp.einsum('hqd,hdw->hqw', o.astype(bf16), wout_ref[l],
                          preferred_element_type=f32)            # (h,LP,W)
        x = x + jnp.sum(attn, axis=0) + lw[4:5, :]

        # ---------------- MLP branch (QuickGELU) ----------------------------
        y2 = _layer_norm(x, lw[2:3, :], lw[3:4, :]).astype(bf16)
        h1 = jnp.dot(y2, fcw_ref[l], preferred_element_type=f32) + fcb_ref[l]
        h1 = h1 * jax.nn.sigmoid(1.702 * h1)
        x = x + jnp.dot(h1.astype(bf16), prw_ref[l],
                        preferred_element_type=f32) + lw[5:6, :]

        # ---------------- feature tap: one lane-dense 128-wide row ----------
        if l in out_indices:
            row = jnp.concatenate(
                [x[1 + j:2 + j, :] for j in range(n_spatial)], axis=1)
            tap_rows.append(row)                                 # (1, HW*W)

    # single dense store of all taps for this sample
    feat_ref[...] = jnp.concatenate(tap_rows, axis=0)[None].astype(feat_ref.dtype)

    # ---- epilogue: ln_post + proj + L2 norm on the class token ----
    g = _layer_norm(x[0:1, :], glob_ref[LP + 2:LP + 3, :],
                    glob_ref[LP + 3:LP + 4, :])
    g = jnp.dot(g.astype(bf16), proj_ref[...], preferred_element_type=f32)
    g = g * jax.lax.rsqrt(jnp.sum(g * g, axis=-1, keepdims=True))
    ge_ref[...] = g[None].astype(ge_ref.dtype)


# --------------------------------------------------------------------------
# Python wrapper: layout plumbing (patch extraction, padding, weight packing)
# + one pallas_call with a per-sample grid.
# --------------------------------------------------------------------------
def clip_vit_forward(x_nchw, params, *, patch_size, heads, out_indices):
    f32, bf16 = jnp.float32, jnp.bfloat16
    B, Cin, Himg, Wimg = x_nchw.shape
    Hs, Ws = Himg // patch_size, Wimg // patch_size
    HW = Hs * Ws
    L = HW + 1                              # real tokens per sample
    LP = ((L + 7) // 8) * 8                 # padded to a sublane multiple
    W = params["conv_w"].shape[0]
    D = params["proj"].shape[1]
    layers = params["attn_in_w"].shape[0]
    hd = W // heads
    Cpp = Cin * patch_size * patch_size
    n_taps = len(out_indices)
    # TODO(synk): len(out_indices)==1 (normalized visual_embedding) and
    # embed_v=True paths are not implemented (this config uses neither).
    assert n_taps > 1
    assert all(0 <= i < layers for i in out_indices)

    # ---- patch extraction: (B, Cin, H, W) -> (B*LP, Cin*p*p), cls/pad rows 0
    xp = x_nchw.reshape(B, Cin, Hs, patch_size, Ws, patch_size)
    xp = xp.transpose(0, 2, 4, 1, 3, 5).reshape(B, HW, Cpp)
    xp = jnp.pad(xp, ((0, 0), (1, LP - L), (0, 0)))
    xp = xp.reshape(B * LP, Cpp)
    conv_w_t = params["conv_w"].reshape(W, Cpp).T.astype(bf16)

    # ---- packed "globals" slab: token additive bias + ln_pre / ln_post ----
    cls = params["class_embedding"].reshape(1, W)
    pos = params["positional_embedding"]
    # NOTE: the reference forward adds class_embedding twice to the cls token.
    # TODO(synk): bilinear resize of spatial positional embeddings when
    # H, W != spatial_size (identity for this configuration).
    tok_bias = jnp.concatenate(
        [pos[0:1] + 2.0 * cls, pos[1:L], jnp.zeros((LP - L, W), f32)], axis=0)
    glob_rows = LP + 4
    glob_pad = ((glob_rows + 7) // 8) * 8 - glob_rows
    glob = jnp.concatenate(
        [tok_bias,
         params["ln_pre_w"].reshape(1, W), params["ln_pre_b"].reshape(1, W),
         params["ln_post_w"].reshape(1, W), params["ln_post_b"].reshape(1, W),
         jnp.zeros((glob_pad, W), f32)], axis=0)

    # ---- per-layer weights: head-batched & pre-transposed (y @ W.T semantics)
    w_in = params["attn_in_w"]                                   # (layers,3W,W)
    b_in = params["attn_in_b"]                                   # (layers,3W)

    def head_w(ws):   # (layers, W, W) -> (layers, heads, W, hd)
        return jnp.transpose(ws.reshape(layers, heads, hd, W), (0, 1, 3, 2))

    def head_b(bs):   # (layers, W) -> (layers, heads, 1, hd)
        return bs.reshape(layers, heads, 1, hd)

    wqkv3 = jnp.concatenate(
        [head_w(w_in[:, 0 * W:1 * W, :]), head_w(w_in[:, 1 * W:2 * W, :]),
         head_w(w_in[:, 2 * W:3 * W, :])], axis=-1).astype(bf16)
    bqkv3 = jnp.concatenate(
        [head_b(b_in[:, 0 * W:1 * W]), head_b(b_in[:, 1 * W:2 * W]),
         head_b(b_in[:, 2 * W:3 * W])], axis=-1)
    wout3 = jnp.transpose(params["attn_out_w"].reshape(layers, W, heads, hd),
                          (0, 2, 3, 1)).astype(bf16)             # (l,h,hd,W)
    fcw = jnp.transpose(params["fc_w"], (0, 2, 1)).astype(bf16)  # (l,W,4W)
    fcb = params["fc_b"].reshape(layers, 1, 4 * W)
    prw = jnp.transpose(params["pr_w"], (0, 2, 1)).astype(bf16)  # (l,4W,W)
    zeros = jnp.zeros_like(params["pr_b"])
    lslab = jnp.stack(
        [params["ln1_w"], params["ln1_b"], params["ln2_w"], params["ln2_b"],
         params["attn_out_b"], params["pr_b"], zeros, zeros], axis=1)
    proj = params["proj"].astype(bf16)

    inputs = (xp, conv_w_t, glob, proj, wqkv3, bqkv3, wout3, fcw, fcb, prw,
              lslab)

    def _const(nd):
        return lambda b: (0,) * nd

    in_specs = [pl.BlockSpec((LP, Cpp), lambda b: (b, 0))]       # per-sample
    in_specs += [pl.BlockSpec(a.shape, _const(a.ndim)) for a in inputs[1:]]

    out_shape = (jax.ShapeDtypeStruct((B, n_taps, HW * W), f32),
                 jax.ShapeDtypeStruct((B, 1, D), f32))
    out_specs = (pl.BlockSpec((1, n_taps, HW * W), lambda b: (b, 0, 0)),
                 pl.BlockSpec((1, 1, D), lambda b: (b, 0, 0)))

    kernel = functools.partial(
        _clip_vit_kernel, n_real=L, n_spatial=HW, heads=heads, layers=layers,
        out_indices=tuple(out_indices))

    feat, ge = pl.pallas_call(
        kernel,
        out_shape=out_shape,
        grid=(B,),
        in_specs=in_specs,
        out_specs=out_specs,
        compiler_params=pltpu.CompilerParams(
            dimension_semantics=("parallel",),
            vmem_limit_bytes=32 * 1024 * 1024),
    )(*inputs)

    # (B, n_taps, HW*W) -> list of (B, C, H, W), matching the reference layout
    feats = feat.reshape(B, n_taps, HW, W).transpose(1, 0, 3, 2)
    feats = feats.reshape(n_taps, B, W, Hs, Ws)
    features = [feats[t] for t in range(n_taps)]
    return [tuple(features), ge[:, 0, :]]


# --------------------------------------------------------------------------
# Pure-JAX reference (mirrors the PyTorch forward) for a loose numeric check.
# --------------------------------------------------------------------------
def _reference_forward(x_nchw, params, *, patch_size, heads, out_indices):
    B, Cin, H, Wimg = x_nchw.shape
    p = patch_size
    Hs, Ws = H // p, Wimg // p
    HW = Hs * Ws
    W = params["conv_w"].shape[0]
    layers = params["attn_in_w"].shape[0]
    hd = W // heads

    def ln(v, w, b):
        mu = v.mean(-1, keepdims=True)
        var = ((v - mu) ** 2).mean(-1, keepdims=True)
        return (v - mu) / jnp.sqrt(var + EPS) * w + b

    xp = x_nchw.reshape(B, Cin, Hs, p, Ws, p).transpose(0, 2, 4, 1, 3, 5)
    xp = xp.reshape(B, HW, Cin * p * p)
    patches = xp @ params["conv_w"].reshape(W, -1).T
    cls = params["class_embedding"].reshape(1, 1, W)
    x = jnp.concatenate([jnp.broadcast_to(cls, (B, 1, W)), patches], axis=1)
    pos = params["positional_embedding"]
    pos_full = jnp.concatenate(
        [pos[0:1] + params["class_embedding"].reshape(1, W), pos[1:]], axis=0)
    x = x + pos_full[None]
    x = ln(x, params["ln_pre_w"], params["ln_pre_b"])
    feats = []
    for l in range(layers):
        y = ln(x, params["ln1_w"][l], params["ln1_b"][l])
        qkv = y @ params["attn_in_w"][l].T + params["attn_in_b"][l]
        q, k, v = jnp.split(qkv, 3, axis=-1)
        q = q.reshape(B, -1, heads, hd).transpose(0, 2, 1, 3) * hd ** -0.5
        k = k.reshape(B, -1, heads, hd).transpose(0, 2, 1, 3)
        v = v.reshape(B, -1, heads, hd).transpose(0, 2, 1, 3)
        s = jnp.einsum('bhqd,bhkd->bhqk', q, k)
        pr = jax.nn.softmax(s, axis=-1)
        o = jnp.einsum('bhqk,bhkd->bhqd', pr, v)
        o = o.transpose(0, 2, 1, 3).reshape(B, -1, W)
        x = x + o @ params["attn_out_w"][l].T + params["attn_out_b"][l]
        y2 = ln(x, params["ln2_w"][l], params["ln2_b"][l])
        h1 = y2 @ params["fc_w"][l].T + params["fc_b"][l]
        h1 = h1 * jax.nn.sigmoid(1.702 * h1)
        x = x + h1 @ params["pr_w"][l].T + params["pr_b"][l]
        if l in out_indices:
            feats.append(x[:, 1:, :].transpose(0, 2, 1).reshape(B, W, Hs, Ws))
    g = ln(x[:, 0, :], params["ln_post_w"], params["ln_post_b"]) @ params["proj"]
    g = g / jnp.linalg.norm(g, axis=-1, keepdims=True)
    return feats, g


# --------------------------------------------------------------------------
# Deterministic synthetic parameters (torch-style layouts).
# --------------------------------------------------------------------------
def init_params(key, *, width, layers, patch_size, input_resolution,
                output_dim):
    scale = width ** -0.5
    n_tok = (input_resolution // patch_size) ** 2 + 1
    ks = iter(jax.random.split(key, 16))

    def nrm(shape, s):
        return s * jax.random.normal(next(ks), shape, jnp.float32)

    return {
        "conv_w": nrm((width, 3, patch_size, patch_size), 0.02),
        "class_embedding": nrm((width,), scale),
        "positional_embedding": nrm((n_tok, width), scale),
        "ln_pre_w": jnp.ones((width,), jnp.float32),
        "ln_pre_b": jnp.zeros((width,), jnp.float32),
        "ln_post_w": jnp.ones((width,), jnp.float32),
        "ln_post_b": jnp.zeros((width,), jnp.float32),
        "proj": nrm((width, output_dim), scale),
        "ln1_w": jnp.ones((layers, width), jnp.float32),
        "ln1_b": jnp.zeros((layers, width), jnp.float32),
        "ln2_w": jnp.ones((layers, width), jnp.float32),
        "ln2_b": jnp.zeros((layers, width), jnp.float32),
        "attn_in_w": nrm((layers, 3 * width, width), 0.02),
        "attn_in_b": nrm((layers, 3 * width), 0.01),
        "attn_out_w": nrm((layers, width, width), 0.02),
        "attn_out_b": nrm((layers, width), 0.01),
        "fc_w": nrm((layers, 4 * width, width), 0.02),
        "fc_b": nrm((layers, 4 * width), 0.01),
        "pr_w": nrm((layers, width, 4 * width), 0.02),
        "pr_b": nrm((layers, width), 0.01),
    }


if __name__ == "__main__":
    B = 2
    input_resolution = 16
    patch_size = 8
    width = 32
    layers = 4
    heads = 4
    output_dim = 16
    out_indices = (1, 3)

    key = jax.random.PRNGKey(0)
    k_x, k_p = jax.random.split(key)
    x = jax.random.normal(k_x, (B, 3, input_resolution, input_resolution),
                          jnp.float32)
    params = init_params(k_p, width=width, layers=layers,
                         patch_size=patch_size,
                         input_resolution=input_resolution,
                         output_dim=output_dim)

    fwd = jax.jit(functools.partial(clip_vit_forward, patch_size=patch_size,
                                    heads=heads, out_indices=out_indices))
    features, global_embedding = fwd(x, params)
    for f in features:
        jax.block_until_ready(f)
    jax.block_until_ready(global_embedding)

    Hs = input_resolution // patch_size
    assert len(features) == len(out_indices)
    assert features[0].shape == (B, width, Hs, Hs)
    assert global_embedding.shape == (B, output_dim)
    assert bool(jnp.all(jnp.isfinite(global_embedding)))
    assert all(bool(jnp.all(jnp.isfinite(f))) for f in features)

    # loose check vs a pure-JAX f32 reference (kernel matmuls run in bf16)
    ref_feats, ref_ge = _reference_forward(
        x, params, patch_size=patch_size, heads=heads, out_indices=out_indices)
    for f, rf in zip(features, ref_feats):
        assert bool(jnp.allclose(f, rf, atol=5e-2, rtol=5e-2))
    assert bool(jnp.allclose(global_embedding, ref_ge, atol=5e-2, rtol=5e-2))

    print("KERNEL_OK")
</pallas_src>

<mosaic_0001>
module attributes {stable_mosaic.version = 11 : i64} {
  func.func @_clip_vit_kernel(%arg0: i32, %arg1: memref<8x192xf32, #tpu.memory_space<vmem>>, %arg2: memref<192x32xbf16, #tpu.memory_space<vmem>>, %arg3: memref<16x32xf32, #tpu.memory_space<vmem>>, %arg4: memref<32x16xbf16, #tpu.memory_space<vmem>>, %arg5: memref<4x4x32x24xbf16, #tpu.memory_space<vmem>>, %arg6: memref<4x4x1x24xf32, #tpu.memory_space<vmem>>, %arg7: memref<4x4x8x32xbf16, #tpu.memory_space<vmem>>, %arg8: memref<4x32x128xbf16, #tpu.memory_space<vmem>>, %arg9: memref<4x1x128xf32, #tpu.memory_space<vmem>>, %arg10: memref<4x128x32xbf16, #tpu.memory_space<vmem>>, %arg11: memref<4x8x32xf32, #tpu.memory_space<vmem>>, %arg12: memref<1x2x128xf32, #tpu.memory_space<vmem>>, %arg13: memref<1x1x16xf32, #tpu.memory_space<vmem>>) attributes {dimension_semantics = [#tpu.dimension_semantics<parallel>], iteration_bounds = array<i64: 2>, scalar_prefetch = 0 : i64, scratch_operands = 0 : i64, tpu.core_type = #tpu.core_type<tc>, window_params = [{transform_indices = @transform_0, window_bounds = array<i64: 8, 192>}, {pipeline_mode = #tpu.pipeline_mode<synchronous>, transform_indices = @transform_1, window_bounds = array<i64: 192, 32>}, {pipeline_mode = #tpu.pipeline_mode<synchronous>, transform_indices = @transform_2, window_bounds = array<i64: 16, 32>}, {pipeline_mode = #tpu.pipeline_mode<synchronous>, transform_indices = @transform_3, window_bounds = array<i64: 32, 16>}, {pipeline_mode = #tpu.pipeline_mode<synchronous>, transform_indices = @transform_4, window_bounds = array<i64: 4, 4, 32, 24>}, {pipeline_mode = #tpu.pipeline_mode<synchronous>, transform_indices = @transform_5, window_bounds = array<i64: 4, 4, 1, 24>}, {pipeline_mode = #tpu.pipeline_mode<synchronous>, transform_indices = @transform_6, window_bounds = array<i64: 4, 4, 8, 32>}, {pipeline_mode = #tpu.pipeline_mode<synchronous>, transform_indices = @transform_7, window_bounds = array<i64: 4, 32, 128>}, {pipeline_mode = #tpu.pipeline_mode<synchronous>, transform_indices = @transform_8, window_bounds = array<i64: 4, 1, 128>}, {pipeline_mode = #tpu.pipeline_mode<synchronous>, transform_indices = @transform_9, window_bounds = array<i64: 4, 128, 32>}, {pipeline_mode = #tpu.pipeline_mode<synchronous>, transform_indices = @transform_10, window_bounds = array<i64: 4, 8, 32>}, {transform_indices = @transform_11, window_bounds = array<i64: 1, 2, 128>}, {transform_indices = @transform_12, window_bounds = array<i64: 1, 1, 16>}]} {
    %c0 = arith.constant 0 : index
    %c0_0 = arith.constant 0 : index
    %0 = vector.load %arg1[%c0, %c0_0] : memref<8x192xf32, #tpu.memory_space<vmem>>, vector<8x192xf32>
    %1 = arith.truncf %0 : vector<8x192xf32> to vector<8x192xbf16>
    %c0_1 = arith.constant 0 : index
    %c0_2 = arith.constant 0 : index
    %2 = vector.load %arg2[%c0_1, %c0_2] : memref<192x32xbf16, #tpu.memory_space<vmem>>, vector<192x32xbf16>
    %cst = arith.constant dense<0.000000e+00> : vector<8x32xf32>
    %3 = tpu.matmul %1, %2, %cst {dimension_numbers = #tpu.dot_dimension_numbers<[1], [0], [0], [1], [0, 0, 1, 1], [], []>} : vector<8x192xbf16>, vector<192x32xbf16>, vector<8x32xf32> -> vector<8x32xf32>
    %c0_3 = arith.constant 0 : index
    %c0_4 = arith.constant 0 : index
    %4 = vector.load %arg3[%c0_3, %c0_4] : memref<16x32xf32, #tpu.memory_space<vmem>>, vector<8x32xf32>
    %5 = arith.addf %3, %4 : vector<8x32xf32>
    %c8 = arith.constant 8 : index
    %c0_5 = arith.constant 0 : index
    %6 = vector.load %arg3[%c8, %c0_5] : memref<16x32xf32, #tpu.memory_space<vmem>>, vector<1x32xf32>
    %c9 = arith.constant 9 : index
    %c0_6 = arith.constant 0 : index
    %7 = vector.load %arg3[%c9, %c0_6] : memref<16x32xf32, #tpu.memory_space<vmem>>, vector<1x32xf32>
    %cst_7 = arith.constant dense<0.000000e+00> : vector<8xf32>
    %8 = vector.multi_reduction <add>, %5, %cst_7 [1] : vector<8x32xf32> to vector<8xf32>
    %9 = vector.shape_cast %8 : vector<8xf32> to vector<8x1xf32>
    %cst_8 = arith.constant 3.200000e+01 : f32
    %10 = vector.broadcast %cst_8 : f32 to vector<8x1xf32>
    %11 = arith.divf %9, %10 : vector<8x1xf32>
    %12 = vector.broadcast %11 : vector<8x1xf32> to vector<8x32xf32>
    %13 = arith.subf %5, %12 : vector<8x32xf32>
    %14 = arith.mulf %13, %13 : vector<8x32xf32>
    %cst_9 = arith.constant dense<0.000000e+00> : vector<8xf32>
    %15 = vector.multi_reduction <add>, %14, %cst_9 [1] : vector<8x32xf32> to vector<8xf32>
    %16 = vector.shape_cast %15 : vector<8xf32> to vector<8x1xf32>
    %cst_10 = arith.constant 3.200000e+01 : f32
    %17 = vector.broadcast %cst_10 : f32 to vector<8x1xf32>
    %18 = arith.divf %16, %17 : vector<8x1xf32>
    %cst_11 = arith.constant 9.99999974E-6 : f32
    %19 = vector.broadcast %cst_11 : f32 to vector<8x1xf32>
    %20 = arith.addf %18, %19 : vector<8x1xf32>
    %21 = math.rsqrt %20 : vector<8x1xf32>
    %22 = vector.broadcast %21 : vector<8x1xf32> to vector<8x32xf32>
    %23 = arith.mulf %13, %22 : vector<8x32xf32>
    %24 = vector.broadcast %6 : vector<1x32xf32> to vector<8x32xf32>
    %25 = arith.mulf %23, %24 : vector<8x32xf32>
    %26 = vector.broadcast %7 : vector<1x32xf32> to vector<8x32xf32>
    %27 = arith.addf %25, %26 : vector<8x32xf32>
    %28 = tpu.iota {dimensions = array<i32: 2>} : vector<1x1x8xi32>
    %c5_i32 = arith.constant 5 : i32
    %29 = vector.broadcast %c5_i32 : i32 to vector<1x1x8xi32>
    %30 = arith.cmpi slt, %28, %29 : vector<1x1x8xi32>
    %cst_12 = arith.constant 0.000000e+00 : f32
    %cst_13 = arith.constant -1.000000e+30 : f32
    %31 = vector.broadcast %cst_12 : f32 to vector<1x1x8xf32>
    %32 = vector.broadcast %cst_13 : f32 to vector<1x1x8xf32>
    %33 = arith.select %30, %31, %32 : vector<1x1x8xi1>, vector<1x1x8xf32>
    %c0_14 = arith.constant 0 : index
    %c0_15 = arith.constant 0 : index
    %c0_16 = arith.constant 0 : index
    %34 = vector.load %arg11[%c0_14, %c0_15, %c0_16] : memref<4x8x32xf32, #tpu.memory_space<vmem>>, vector<1x8x32xf32>
    %35 = vector.shape_cast %34 : vector<1x8x32xf32> to vector<8x32xf32>
    %36 = vector.extract_strided_slice %35 {offsets = [0, 0], sizes = [1, 32], strides = [1, 1]} : vector<8x32xf32> to vector<1x32xf32>
    %37 = vector.extract_strided_slice %35 {offsets = [1, 0], sizes = [1, 32], strides = [1, 1]} : vector<8x32xf32> to vector<1x32xf32>
    %cst_17 = arith.constant dense<0.000000e+00> : vector<8xf32>
    %38 = vector.multi_reduction <add>, %27, %cst_17 [1] : vector<8x32xf32> to vector<8xf32>
    %39 = vector.shape_cast %38 : vector<8xf32> to vector<8x1xf32>
    %cst_18 = arith.constant 3.200000e+01 : f32
    %40 = vector.broadcast %cst_18 : f32 to vector<8x1xf32>
    %41 = arith.divf %39, %40 : vector<8x1xf32>
    %42 = vector.broadcast %41 : vector<8x1xf32> to vector<8x32xf32>
    %43 = arith.subf %27, %42 : vector<8x32xf32>
    %44 = arith.mulf %43, %43 : vector<8x32xf32>
    %cst_19 = arith.constant dense<0.000000e+00> : vector<8xf32>
    %45 = vector.multi_reduction <add>, %44, %cst_19 [1] : vector<8x32xf32> to vector<8xf32>
    %46 = vector.shape_cast %45 : vector<8xf32> to vector<8x1xf32>
    %cst_20 = arith.constant 3.200000e+01 : f32
    %47 = vector.broadcast %cst_20 : f32 to vector<8x1xf32>
    %48 = arith.divf %46, %47 : vector<8x1xf32>
    %cst_21 = arith.constant 9.99999974E-6 : f32
    %49 = vector.broadcast %cst_21 : f32 to vector<8x1xf32>
    %50 = arith.addf %48, %49 : vector<8x1xf32>
    %51 = math.rsqrt %50 : vector<8x1xf32>
    %52 = vector.broadcast %51 : vector<8x1xf32> to vector<8x32xf32>
    %53 = arith.mulf %43, %52 : vector<8x32xf32>
    %54 = vector.broadcast %36 : vector<1x32xf32> to vector<8x32xf32>
    %55 = arith.mulf %53, %54 : vector<8x32xf32>
    %56 = vector.broadcast %37 : vector<1x32xf32> to vector<8x32xf32>
    %57 = arith.addf %55, %56 : vector<8x32xf32>
    %58 = arith.truncf %57 : vector<8x32xf32> to vector<8x32xbf16>
    %59 = vector.shape_cast %58 : vector<8x32xbf16> to vector<1x8x32xbf16>
    %60 = vector.shape_cast %59 : vector<1x8x32xbf16> to vector<1x8x32xbf16>
    %61 = vector.broadcast %60 : vector<1x8x32xbf16> to vector<4x8x32xbf16>
    %c0_22 = arith.constant 0 : index
    %c0_23 = arith.constant 0 : index
    %c0_24 = arith.constant 0 : index
    %c0_25 = arith.constant 0 : index
    %62 = vector.load %arg5[%c0_22, %c0_23, %c0_24, %c0_25] : memref<4x4x32x24xbf16, #tpu.memory_space<vmem>>, vector<1x4x32x24xbf16>
    %63 = vector.shape_cast %62 : vector<1x4x32x24xbf16> to vector<4x32x24xbf16>
    "tpu.trace_start"() <{level = 10 : i32, message = "hlw,hwd->hld"}> : () -> ()
    %cst_26 = arith.constant dense<0.000000e+00> : vector<4x8x24xf32>
    %64 = tpu.matmul %61, %63, %cst_26 {dimension_numbers = #tpu.dot_dimension_numbers<[2], [1], [1], [2], [0, 0, 0, 1, 1, 2], [0], [0]>} : vector<4x8x32xbf16>, vector<4x32x24xbf16>, vector<4x8x24xf32> -> vector<4x8x24xf32>
    "tpu.trace_stop"() : () -> ()
    %c0_27 = arith.constant 0 : index
    %c0_28 = arith.constant 0 : index
    %c0_29 = arith.constant 0 : index
    %c0_30 = arith.constant 0 : index
    %65 = vector.load %arg6[%c0_27, %c0_28, %c0_29, %c0_30] : memref<4x4x1x24xf32, #tpu.memory_space<vmem>>, vector<1x4x1x24xf32>
    %66 = vector.shape_cast %65 : vector<1x4x1x24xf32> to vector<4x1x24xf32>
    %67 = vector.broadcast %66 : vector<4x1x24xf32> to vector<4x8x24xf32>
    %68 = arith.addf %64, %67 : vector<4x8x24xf32>
    %69 = vector.extract_strided_slice %68 {offsets = [0, 0, 0], sizes = [4, 8, 8], strides = [1, 1, 1]} : vector<4x8x24xf32> to vector<4x8x8xf32>
    %cst_31 = arith.constant 0.353553385 : f32
    %70 = vector.broadcast %cst_31 : f32 to vector<4x8x8xf32>
    %71 = arith.mulf %69, %70 : vector<4x8x8xf32>
    %72 = arith.truncf %71 : vector<4x8x8xf32> to vector<4x8x8xbf16>
    %73 = vector.extract_strided_slice %68 {offsets = [0, 0, 8], sizes = [4, 8, 8], strides = [1, 1, 1]} : vector<4x8x24xf32> to vector<4x8x8xf32>
    %74 = arith.truncf %73 : vector<4x8x8xf32> to vector<4x8x8xbf16>
    %75 = vector.extract_strided_slice %68 {offsets = [0, 0, 16], sizes = [4, 8, 8], strides = [1, 1, 1]} : vector<4x8x24xf32> to vector<4x8x8xf32>
    %76 = arith.truncf %75 : vector<4x8x8xf32> to vector<4x8x8xbf16>
    "tpu.trace_start"() <{level = 10 : i32, message = "hqd,hkd->hqk"}> : () -> ()
    %cst_32 = arith.constant dense<0.000000e+00> : vector<4x8x8xf32>
    %77 = tpu.matmul %72, %74, %cst_32 {dimension_numbers = #tpu.dot_dimension_numbers<[2], [2], [1], [1], [0, 0, 0, 1, 1, 1], [0], [0]>} : vector<4x8x8xbf16>, vector<4x8x8xbf16>, vector<4x8x8xf32> -> vector<4x8x8xf32>
    "tpu.trace_stop"() : () -> ()
    %78 = vector.broadcast %33 : vector<1x1x8xf32> to vector<4x8x8xf32>
    %79 = arith.addf %77, %78 : vector<4x8x8xf32>
    %cst_33 = arith.constant dense<0xFF800000> : vector<4x8xf32>
    %80 = vector.multi_reduction <maximumf>, %79, %cst_33 [2] : vector<4x8x8xf32> to vector<4x8xf32>
    %81 = vector.shape_cast %80 : vector<4x8xf32> to vector<4x8x1xf32>
    %82 = vector.broadcast %81 : vector<4x8x1xf32> to vector<4x8x8xf32>
    %83 = arith.subf %79, %82 : vector<4x8x8xf32>
    %84 = math.exp %83 : vector<4x8x8xf32>
    %cst_34 = arith.constant dense<0.000000e+00> : vector<4x8xf32>
    %85 = vector.multi_reduction <add>, %84, %cst_34 [2] : vector<4x8x8xf32> to vector<4x8xf32>
    %86 = vector.shape_cast %85 : vector<4x8xf32> to vector<4x8x1xf32>
    %87 = vector.broadcast %86 : vector<4x8x1xf32> to vector<4x8x8xf32>
    %88 = arith.divf %84, %87 : vector<4x8x8xf32>
    %89 = arith.truncf %88 : vector<4x8x8xf32> to vector<4x8x8xbf16>
    "tpu.trace_start"() <{level = 10 : i32, message = "hqk,hkd->hqd"}> : () -> ()
    %cst_35 = arith.constant dense<0.000000e+00> : vector<4x8x8xf32>
    %90 = tpu.matmul %89, %76, %cst_35 {dimension_numbers = #tpu.dot_dimension_numbers<[2], [1], [1], [2], [0, 0, 0, 1, 1, 2], [0], [0]>} : vector<4x8x8xbf16>, vector<4x8x8xbf16>, vector<4x8x8xf32> -> vector<4x8x8xf32>
    "tpu.trace_stop"() : () -> ()
    %91 = arith.truncf %90 : vector<4x8x8xf32> to vector<4x8x8xbf16>
    %c0_36 = arith.constant 0 : index
    %c0_37 = arith.constant 0 : index
    %c0_38 = arith.constant 0 : index
    %c0_39 = arith.constant 0 : index
    %92 = vector.load %arg7[%c0_36, %c0_37, %c0_38, %c0_39] : memref<4x4x8x32xbf16, #tpu.memory_space<vmem>>, vector<1x4x8x32xbf16>
    %93 = vector.shape_cast %92 : vector<1x4x8x32xbf16> to vector<4x8x32xbf16>
    "tpu.trace_start"() <{level = 10 : i32, message = "hqd,hdw->hqw"}> : () -> ()
    %cst_40 = arith.constant dense<0.000000e+00> : vector<4x8x32xf32>
    %94 = tpu.matmul %91, %93, %cst_40 {dimension_numbers = #tpu.dot_dimension_numbers<[2], [1], [1], [2], [0, 0, 0, 1, 1, 2], [0], [0]>} : vector<4x8x8xbf16>, vector<4x8x32xbf16>, vector<4x8x32xf32> -> vector<4x8x32xf32>
    "tpu.trace_stop"() : () -> ()
    %cst_41 = arith.constant dense<0.000000e+00> : vector<8x32xf32>
    %95 = vector.multi_reduction <add>, %94, %cst_41 [0] : vector<4x8x32xf32> to vector<8x32xf32>
    %96 = arith.addf %27, %95 : vector<8x32xf32>
    %97 = vector.extract_strided_slice %35 {offsets = [4, 0], sizes = [1, 32], strides = [1, 1]} : vector<8x32xf32> to vector<1x32xf32>
    %98 = vector.broadcast %97 : vector<1x32xf32> to vector<8x32xf32>
    %99 = arith.addf %96, %98 : vector<8x32xf32>
    %100 = vector.extract_strided_slice %35 {offsets = [2, 0], sizes = [1, 32], strides = [1, 1]} : vector<8x32xf32> to vector<1x32xf32>
    %101 = vector.extract_strided_slice %35 {offsets = [3, 0], sizes = [1, 32], strides = [1, 1]} : vector<8x32xf32> to vector<1x32xf32>
    %cst_42 = arith.constant dense<0.000000e+00> : vector<8xf32>
    %102 = vector.multi_reduction <add>, %99, %cst_42 [1] : vector<8x32xf32> to vector<8xf32>
    %103 = vector.shape_cast %102 : vector<8xf32> to vector<8x1xf32>
    %cst_43 = arith.constant 3.200000e+01 : f32
    %104 = vector.broadcast %cst_43 : f32 to vector<8x1xf32>
    %105 = arith.divf %103, %104 : vector<8x1xf32>
    %106 = vector.broadcast %105 : vector<8x1xf32> to vector<8x32xf32>
    %107 = arith.subf %99, %106 : vector<8x32xf32>
    %108 = arith.mulf %107, %107 : vector<8x32xf32>
    %cst_44 = arith.constant dense<0.000000e+00> : vector<8xf32>
    %109 = vector.multi_reduction <add>, %108, %cst_44 [1] : vector<8x32xf32> to vector<8xf32>
    %110 = vector.shape_cast %109 : vector<8xf32> to vector<8x1xf32>
    %cst_45 = arith.constant 3.200000e+01 : f32
    %111 = vector.broadcast %cst_45 : f32 to vector<8x1xf32>
    %112 = arith.divf %110, %111 : vector<8x1xf32>
    %cst_46 = arith.constant 9.99999974E-6 : f32
    %113 = vector.broadcast %cst_46 : f32 to vector<8x1xf32>
    %114 = arith.addf %112, %113 : vector<8x1xf32>
    %115 = math.rsqrt %114 : vector<8x1xf32>
    %116 = vector.broadcast %115 : vector<8x1xf32> to vector<8x32xf32>
    %117 = arith.mulf %107, %116 : vector<8x32xf32>
    %118 = vector.broadcast %100 : vector<1x32xf32> to vector<8x32xf32>
    %119 = arith.mulf %117, %118 : vector<8x32xf32>
    %120 = vector.broadcast %101 : vector<1x32xf32> to vector<8x32xf32>
    %121 = arith.addf %119, %120 : vector<8x32xf32>
    %122 = arith.truncf %121 : vector<8x32xf32> to vector<8x32xbf16>
    %c0_47 = arith.constant 0 : index
    %c0_48 = arith.constant 0 : index
    %c0_49 = arith.constant 0 : index
    %123 = vector.load %arg8[%c0_47, %c0_48, %c0_49] : memref<4x32x128xbf16, #tpu.memory_space<vmem>>, vector<1x32x128xbf16>
    %124 = vector.shape_cast %123 : vector<1x32x128xbf16> to vector<32x128xbf16>
    %cst_50 = arith.constant dense<0.000000e+00> : vector<8x128xf32>
    %125 = tpu.matmul %122, %124, %cst_50 {dimension_numbers = #tpu.dot_dimension_numbers<[1], [0], [0], [1], [0, 0, 1, 1], [], []>} : vector<8x32xbf16>, vector<32x128xbf16>, vector<8x128xf32> -> vector<8x128xf32>
    %c0_51 = arith.constant 0 : index
    %c0_52 = arith.constant 0 : index
    %c0_53 = arith.constant 0 : index
    %126 = vector.load %arg9[%c0_51, %c0_52, %c0_53] : memref<4x1x128xf32, #tpu.memory_space<vmem>>, vector<1x1x128xf32>
    %127 = vector.shape_cast %126 : vector<1x1x128xf32> to vector<1x128xf32>
    %128 = vector.broadcast %127 : vector<1x128xf32> to vector<8x128xf32>
    %129 = arith.addf %125, %128 : vector<8x128xf32>
    %cst_54 = arith.constant 1.702000e+00 : f32
    %130 = vector.broadcast %cst_54 : f32 to vector<8x128xf32>
    %131 = arith.mulf %130, %129 : vector<8x128xf32>
    %132 = arith.negf %131 : vector<8x128xf32>
    %133 = math.exp %132 : vector<8x128xf32>
    %cst_55 = arith.constant 1.000000e+00 : f32
    %134 = vector.broadcast %cst_55 : f32 to vector<8x128xf32>
    %135 = arith.addf %134, %133 : vector<8x128xf32>
    %136 = arith.divf %134, %135 : vector<8x128xf32>
    %137 = arith.mulf %129, %136 : vector<8x128xf32>
    %138 = arith.truncf %137 : vector<8x128xf32> to vector<8x128xbf16>
    %c0_56 = arith.constant 0 : index
    %c0_57 = arith.constant 0 : index
    %c0_58 = arith.constant 0 : index
    %139 = vector.load %arg10[%c0_56, %c0_57, %c0_58] : memref<4x128x32xbf16, #tpu.memory_space<vmem>>, vector<1x128x32xbf16>
    %140 = vector.shape_cast %139 : vector<1x128x32xbf16> to vector<128x32xbf16>
    %cst_59 = arith.constant dense<0.000000e+00> : vector<8x32xf32>
    %141 = tpu.matmul %138, %140, %cst_59 {dimension_numbers = #tpu.dot_dimension_numbers<[1], [0], [0], [1], [0, 0, 1, 1], [], []>} : vector<8x128xbf16>, vector<128x32xbf16>, vector<8x32xf32> -> vector<8x32xf32>
    %142 = arith.addf %99, %141 : vector<8x32xf32>
    %143 = vector.extract_strided_slice %35 {offsets = [5, 0], sizes = [1, 32], strides = [1, 1]} : vector<8x32xf32> to vector<1x32xf32>
    %144 = vector.broadcast %143 : vector<1x32xf32> to vector<8x32xf32>
    %145 = arith.addf %142, %144 : vector<8x32xf32>
    %c1 = arith.constant 1 : index
    %c0_60 = arith.constant 0 : index
    %c0_61 = arith.constant 0 : index
    %146 = vector.load %arg11[%c1, %c0_60, %c0_61] : memref<4x8x32xf32, #tpu.memory_space<vmem>>, vector<1x8x32xf32>
    %147 = vector.shape_cast %146 : vector<1x8x32xf32> to vector<8x32xf32>
    %148 = vector.extract_strided_slice %147 {offsets = [0, 0], sizes = [1, 32], strides = [1, 1]} : vector<8x32xf32> to vector<1x32xf32>
    %149 = vector.extract_strided_slice %147 {offsets = [1, 0], sizes = [1, 32], strides = [1, 1]} : vector<8x32xf32> to vector<1x32xf32>
    %cst_62 = arith.constant dense<0.000000e+00> : vector<8xf32>
    %150 = vector.multi_reduction <add>, %145, %cst_62 [1] : vector<8x32xf32> to vector<8xf32>
    %151 = vector.shape_cast %150 : vector<8xf32> to vector<8x1xf32>
    %cst_63 = arith.constant 3.200000e+01 : f32
    %152 = vector.broadcast %cst_63 : f32 to vector<8x1xf32>
    %153 = arith.divf %151, %152 : vector<8x1xf32>
    %154 = vector.broadcast %153 : vector<8x1xf32> to vector<8x32xf32>
    %155 = arith.subf %145, %154 : vector<8x32xf32>
    %156 = arith.mulf %155, %155 : vector<8x32xf32>
    %cst_64 = arith.constant dense<0.000000e+00> : vector<8xf32>
    %157 = vector.multi_reduction <add>, %156, %cst_64 [1] : vector<8x32xf32> to vector<8xf32>
    %158 = vector.shape_cast %157 : vector<8xf32> to vector<8x1xf32>
    %cst_65 = arith.constant 3.200000e+01 : f32
    %159 = vector.broadcast %cst_65 : f32 to vector<8x1xf32>
    %160 = arith.divf %158, %159 : vector<8x1xf32>
    %cst_66 = arith.constant 9.99999974E-6 : f32
    %161 = vector.broadcast %cst_66 : f32 to vector<8x1xf32>
    %162 = arith.addf %160, %161 : vector<8x1xf32>
    %163 = math.rsqrt %162 : vector<8x1xf32>
    %164 = vector.broadcast %163 : vector<8x1xf32> to vector<8x32xf32>
    %165 = arith.mulf %155, %164 : vector<8x32xf32>
    %166 = vector.broadcast %148 : vector<1x32xf32> to vector<8x32xf32>
    %167 = arith.mulf %165, %166 : vector<8x32xf32>
    %168 = vector.broadcast %149 : vector<1x32xf32> to vector<8x32xf32>
    %169 = arith.addf %167, %168 : vector<8x32xf32>
    %170 = arith.truncf %169 : vector<8x32xf32> to vector<8x32xbf16>
    %171 = vector.shape_cast %170 : vector<8x32xbf16> to vector<1x8x32xbf16>
    %172 = vector.shape_cast %171 : vector<1x8x32xbf16> to vector<1x8x32xbf16>
    %173 = vector.broadcast %172 : vector<1x8x32xbf16> to vector<4x8x32xbf16>
    %c1_67 = arith.constant 1 : index
    %c0_68 = arith.constant 0 : index
    %c0_69 = arith.constant 0 : index
    %c0_70 = arith.constant 0 : index
    %174 = vector.load %arg5[%c1_67, %c0_68, %c0_69, %c0_70] : memref<4x4x32x24xbf16, #tpu.memory_space<vmem>>, vector<1x4x32x24xbf16>
    %175 = vector.shape_cast %174 : vector<1x4x32x24xbf16> to vector<4x32x24xbf16>
    "tpu.trace_start"() <{level = 10 : i32, message = "hlw,hwd->hld"}> : () -> ()
    %cst_71 = arith.constant dense<0.000000e+00> : vector<4x8x24xf32>
    %176 = tpu.matmul %173, %175, %cst_71 {dimension_numbers = #tpu.dot_dimension_numbers<[2], [1], [1], [2], [0, 0, 0, 1, 1, 2], [0], [0]>} : vector<4x8x32xbf16>, vector<4x32x24xbf16>, vector<4x8x24xf32> -> vector<4x8x24xf32>
    "tpu.trace_stop"() : () -> ()
    %c1_72 = arith.constant 1 : index
    %c0_73 = arith.constant 0 : index
    %c0_74 = arith.constant 0 : index
    %c0_75 = arith.constant 0 : index
    %177 = vector.load %arg6[%c1_72, %c0_73, %c0_74, %c0_75] : memref<4x4x1x24xf32, #tpu.memory_space<vmem>>, vector<1x4x1x24xf32>
    %178 = vector.shape_cast %177 : vector<1x4x1x24xf32> to vector<4x1x24xf32>
    %179 = vector.broadcast %178 : vector<4x1x24xf32> to vector<4x8x24xf32>
    %180 = arith.addf %176, %179 : vector<4x8x24xf32>
    %181 = vector.extract_strided_slice %180 {offsets = [0, 0, 0], sizes = [4, 8, 8], strides = [1, 1, 1]} : vector<4x8x24xf32> to vector<4x8x8xf32>
    %cst_76 = arith.constant 0.353553385 : f32
    %182 = vector.broadcast %cst_76 : f32 to vector<4x8x8xf32>
    %183 = arith.mulf %181, %182 : vector<4x8x8xf32>
    %184 = arith.truncf %183 : vector<4x8x8xf32> to vector<4x8x8xbf16>
    %185 = vector.extract_strided_slice %180 {offsets = [0, 0, 8], sizes = [4, 8, 8], strides = [1, 1, 1]} : vector<4x8x24xf32> to vector<4x8x8xf32>
    %186 = arith.truncf %185 : vector<4x8x8xf32> to vector<4x8x8xbf16>
    %187 = vector.extract_strided_slice %180 {offsets = [0, 0, 16], sizes = [4, 8, 8], strides = [1, 1, 1]} : vector<4x8x24xf32> to vector<4x8x8xf32>
    %188 = arith.truncf %187 : vector<4x8x8xf32> to vector<4x8x8xbf16>
    "tpu.trace_start"() <{level = 10 : i32, message = "hqd,hkd->hqk"}> : () -> ()
    %cst_77 = arith.constant dense<0.000000e+00> : vector<4x8x8xf32>
    %189 = tpu.matmul %184, %186, %cst_77 {dimension_numbers = #tpu.dot_dimension_numbers<[2], [2], [1], [1], [0, 0, 0, 1, 1, 1], [0], [0]>} : vector<4x8x8xbf16>, vector<4x8x8xbf16>, vector<4x8x8xf32> -> vector<4x8x8xf32>
    "tpu.trace_stop"() : () -> ()
    %190 = vector.broadcast %33 : vector<1x1x8xf32> to vector<4x8x8xf32>
    %191 = arith.addf %189, %190 : vector<4x8x8xf32>
    %cst_78 = arith.constant dense<0xFF800000> : vector<4x8xf32>
    %192 = vector.multi_reduction <maximumf>, %191, %cst_78 [2] : vector<4x8x8xf32> to vector<4x8xf32>
    %193 = vector.shape_cast %192 : vector<4x8xf32> to vector<4x8x1xf32>
    %194 = vector.broadcast %193 : vector<4x8x1xf32> to vector<4x8x8xf32>
    %195 = arith.subf %191, %194 : vector<4x8x8xf32>
    %196 = math.exp %195 : vector<4x8x8xf32>
    %cst_79 = arith.constant dense<0.000000e+00> : vector<4x8xf32>
    %197 = vector.multi_reduction <add>, %196, %cst_79 [2] : vector<4x8x8xf32> to vector<4x8xf32>
    %198 = vector.shape_cast %197 : vector<4x8xf32> to vector<4x8x1xf32>
    %199 = vector.broadcast %198 : vector<4x8x1xf32> to vector<4x8x8xf32>
    %200 = arith.divf %196, %199 : vector<4x8x8xf32>
    %201 = arith.truncf %200 : vector<4x8x8xf32> to vector<4x8x8xbf16>
    "tpu.trace_start"() <{level = 10 : i32, message = "hqk,hkd->hqd"}> : () -> ()
    %cst_80 = arith.constant dense<0.000000e+00> : vector<4x8x8xf32>
    %202 = tpu.matmul %201, %188, %cst_80 {dimension_numbers = #tpu.dot_dimension_numbers<[2], [1], [1], [2], [0, 0, 0, 1, 1, 2], [0], [0]>} : vector<4x8x8xbf16>, vector<4x8x8xbf16>, vector<4x8x8xf32> -> vector<4x8x8xf32>
    "tpu.trace_stop"() : () -> ()
    %203 = arith.truncf %202 : vector<4x8x8xf32> to vector<4x8x8xbf16>
    %c1_81 = arith.constant 1 : index
    %c0_82 = arith.constant 0 : index
    %c0_83 = arith.constant 0 : index
    %c0_84 = arith.constant 0 : index
    %204 = vector.load %arg7[%c1_81, %c0_82, %c0_83, %c0_84] : memref<4x4x8x32xbf16, #tpu.memory_space<vmem>>, vector<1x4x8x32xbf16>
    %205 = vector.shape_cast %204 : vector<1x4x8x32xbf16> to vector<4x8x32xbf16>
    "tpu.trace_start"() <{level = 10 : i32, message = "hqd,hdw->hqw"}> : () -> ()
    %cst_85 = arith.constant dense<0.000000e+00> : vector<4x8x32xf32>
    %206 = tpu.matmul %203, %205, %cst_85 {dimension_numbers = #tpu.dot_dimension_numbers<[2], [1], [1], [2], [0, 0, 0, 1, 1, 2], [0], [0]>} : vector<4x8x8xbf16>, vector<4x8x32xbf16>, vector<4x8x32xf32> -> vector<4x8x32xf32>
    "tpu.trace_stop"() : () -> ()
    %cst_86 = arith.constant dense<0.000000e+00> : vector<8x32xf32>
    %207 = vector.multi_reduction <add>, %206, %cst_86 [0] : vector<4x8x32xf32> to vector<8x32xf32>
    %208 = arith.addf %145, %207 : vector<8x32xf32>
    %209 = vector.extract_strided_slice %147 {offsets = [4, 0], sizes = [1, 32], strides = [1, 1]} : vector<8x32xf32> to vector<1x32xf32>
    %210 = vector.broadcast %209 : vector<1x32xf32> to vector<8x32xf32>
    %211 = arith.addf %208, %210 : vector<8x32xf32>
    %212 = vector.extract_strided_slice %147 {offsets = [2, 0], sizes = [1, 32], strides = [1, 1]} : vector<8x32xf32> to vector<1x32xf32>
    %213 = vector.extract_strided_slice %147 {offsets = [3, 0], sizes = [1, 32], strides = [1, 1]} : vector<8x32xf32> to vector<1x32xf32>
    %cst_87 = arith.constant dense<0.000000e+00> : vector<8xf32>
    %214 = vector.multi_reduction <add>, %211, %cst_87 [1] : vector<8x32xf32> to vector<8xf32>
    %215 = vector.shape_cast %214 : vector<8xf32> to vector<8x1xf32>
    %cst_88 = arith.constant 3.200000e+01 : f32
    %216 = vector.broadcast %cst_88 : f32 to vector<8x1xf32>
    %217 = arith.divf %215, %216 : vector<8x1xf32>
    %218 = vector.broadcast %217 : vector<8x1xf32> to vector<8x32xf32>
    %219 = arith.subf %211, %218 : vector<8x32xf32>
    %220 = arith.mulf %219, %219 : vector<8x32xf32>
    %cst_89 = arith.constant dense<0.000000e+00> : vector<8xf32>
    %221 = vector.multi_reduction <add>, %220, %cst_89 [1] : vector<8x32xf32> to vector<8xf32>
    %222 = vector.shape_cast %221 : vector<8xf32> to vector<8x1xf32>
    %cst_90 = arith.constant 3.200000e+01 : f32
    %223 = vector.broadcast %cst_90 : f32 to vector<8x1xf32>
    %224 = arith.divf %222, %223 : vector<8x1xf32>
    %cst_91 = arith.constant 9.99999974E-6 : f32
    %225 = vector.broadcast %cst_91 : f32 to vector<8x1xf32>
    %226 = arith.addf %224, %225 : vector<8x1xf32>
    %227 = math.rsqrt %226 : vector<8x1xf32>
    %228 = vector.broadcast %227 : vector<8x1xf32> to vector<8x32xf32>
    %229 = arith.mulf %219, %228 : vector<8x32xf32>
    %230 = vector.broadcast %212 : vector<1x32xf32> to vector<8x32xf32>
    %231 = arith.mulf %229, %230 : vector<8x32xf32>
    %232 = vector.broadcast %213 : vector<1x32xf32> to vector<8x32xf32>
    %233 = arith.addf %231, %232 : vector<8x32xf32>
    %234 = arith.truncf %233 : vector<8x32xf32> to vector<8x32xbf16>
    %c1_92 = arith.constant 1 : index
    %c0_93 = arith.constant 0 : index
    %c0_94 = arith.constant 0 : index
    %235 = vector.load %arg8[%c1_92, %c0_93, %c0_94] : memref<4x32x128xbf16, #tpu.memory_space<vmem>>, vector<1x32x128xbf16>
    %236 = vector.shape_cast %235 : vector<1x32x128xbf16> to vector<32x128xbf16>
    %cst_95 = arith.constant dense<0.000000e+00> : vector<8x128xf32>
    %237 = tpu.matmul %234, %236, %cst_95 {dimension_numbers = #tpu.dot_dimension_numbers<[1], [0], [0], [1], [0, 0, 1, 1], [], []>} : vector<8x32xbf16>, vector<32x128xbf16>, vector<8x128xf32> -> vector<8x128xf32>
    %c1_96 = arith.constant 1 : index
    %c0_97 = arith.constant 0 : index
    %c0_98 = arith.constant 0 : index
    %238 = vector.load %arg9[%c1_96, %c0_97, %c0_98] : memref<4x1x128xf32, #tpu.memory_space<vmem>>, vector<1x1x128xf32>
    %239 = vector.shape_cast %238 : vector<1x1x128xf32> to vector<1x128xf32>
    %240 = vector.broadcast %239 : vector<1x128xf32> to vector<8x128xf32>
    %241 = arith.addf %237, %240 : vector<8x128xf32>
    %cst_99 = arith.constant 1.702000e+00 : f32
    %242 = vector.broadcast %cst_99 : f32 to vector<8x128xf32>
    %243 = arith.mulf %242, %241 : vector<8x128xf32>
    %244 = arith.negf %243 : vector<8x128xf32>
    %245 = math.exp %244 : vector<8x128xf32>
    %cst_100 = arith.constant 1.000000e+00 : f32
    %246 = vector.broadcast %cst_100 : f32 to vector<8x128xf32>
    %247 = arith.addf %246, %245 : vector<8x128xf32>
    %248 = arith.divf %246, %247 : vector<8x128xf32>
    %249 = arith.mulf %241, %248 : vector<8x128xf32>
    %250 = arith.truncf %249 : vector<8x128xf32> to vector<8x128xbf16>
    %c1_101 = arith.constant 1 : index
    %c0_102 = arith.constant 0 : index
    %c0_103 = arith.constant 0 : index
    %251 = vector.load %arg10[%c1_101, %c0_102, %c0_103] : memref<4x128x32xbf16, #tpu.memory_space<vmem>>, vector<1x128x32xbf16>
    %252 = vector.shape_cast %251 : vector<1x128x32xbf16> to vector<128x32xbf16>
    %cst_104 = arith.constant dense<0.000000e+00> : vector<8x32xf32>
    %253 = tpu.matmul %250, %252, %cst_104 {dimension_numbers = #tpu.dot_dimension_numbers<[1], [0], [0], [1], [0, 0, 1, 1], [], []>} : vector<8x128xbf16>, vector<128x32xbf16>, vector<8x32xf32> -> vector<8x32xf32>
    %254 = arith.addf %211, %253 : vector<8x32xf32>
    %255 = vector.extract_strided_slice %147 {offsets = [5, 0], sizes = [1, 32], strides = [1, 1]} : vector<8x32xf32> to vector<1x32xf32>
    %256 = vector.broadcast %255 : vector<1x32xf32> to vector<8x32xf32>
    %257 = arith.addf %254, %256 : vector<8x32xf32>
    %258 = vector.extract_strided_slice %257 {offsets = [1, 0], sizes = [1, 32], strides = [1, 1]} : vector<8x32xf32> to vector<1x32xf32>
    %259 = vector.extract_strided_slice %257 {offsets = [2, 0], sizes = [1, 32], strides = [1, 1]} : vector<8x32xf32> to vector<1x32xf32>
    %260 = vector.extract_strided_slice %257 {offsets = [3, 0], sizes = [1, 32], strides = [1, 1]} : vector<8x32xf32> to vector<1x32xf32>
    %261 = vector.extract_strided_slice %257 {offsets = [4, 0], sizes = [1, 32], strides = [1, 1]} : vector<8x32xf32> to vector<1x32xf32>
    %262 = tpu.concatenate %258, %259, %260, %261 in 1 : vector<1x32xf32>, vector<1x32xf32>, vector<1x32xf32>, vector<1x32xf32> -> vector<1x128xf32>
    %c2 = arith.constant 2 : index
    %c0_105 = arith.constant 0 : index
    %c0_106 = arith.constant 0 : index
    %263 = vector.load %arg11[%c2, %c0_105, %c0_106] : memref<4x8x32xf32, #tpu.memory_space<vmem>>, vector<1x8x32xf32>
    %264 = vector.shape_cast %263 : vector<1x8x32xf32> to vector<8x32xf32>
    %265 = vector.extract_strided_slice %264 {offsets = [0, 0], sizes = [1, 32], strides = [1, 1]} : vector<8x32xf32> to vector<1x32xf32>
    %266 = vector.extract_strided_slice %264 {offsets = [1, 0], sizes = [1, 32], strides = [1, 1]} : vector<8x32xf32> to vector<1x32xf32>
    %cst_107 = arith.constant dense<0.000000e+00> : vector<8xf32>
    %267 = vector.multi_reduction <add>, %257, %cst_107 [1] : vector<8x32xf32> to vector<8xf32>
    %268 = vector.shape_cast %267 : vector<8xf32> to vector<8x1xf32>
    %cst_108 = arith.constant 3.200000e+01 : f32
    %269 = vector.broadcast %cst_108 : f32 to vector<8x1xf32>
    %270 = arith.divf %268, %269 : vector<8x1xf32>
    %271 = vector.broadcast %270 : vector<8x1xf32> to vector<8x32xf32>
    %272 = arith.subf %257, %271 : vector<8x32xf32>
    %273 = arith.mulf %272, %272 : vector<8x32xf32>
    %cst_109 = arith.constant dense<0.000000e+00> : vector<8xf32>
    %274 = vector.multi_reduction <add>, %273, %cst_109 [1] : vector<8x32xf32> to vector<8xf32>
    %275 = vector.shape_cast %274 : vector<8xf32> to vector<8x1xf32>
    %cst_110 = arith.constant 3.200000e+01 : f32
    %276 = vector.broadcast %cst_110 : f32 to vector<8x1xf32>
    %277 = arith.divf %275, %276 : vector<8x1xf32>
    %cst_111 = arith.constant 9.99999974E-6 : f32
    %278 = vector.broadcast %cst_111 : f32 to vector<8x1xf32>
    %279 = arith.addf %277, %278 : vector<8x1xf32>
    %280 = math.rsqrt %279 : vector<8x1xf32>
    %281 = vector.broadcast %280 : vector<8x1xf32> to vector<8x32xf32>
    %282 = arith.mulf %272, %281 : vector<8x32xf32>
    %283 = vector.broadcast %265 : vector<1x32xf32> to vector<8x32xf32>
    %284 = arith.mulf %282, %283 : vector<8x32xf32>
    %285 = vector.broadcast %266 : vector<1x32xf32> to vector<8x32xf32>
    %286 = arith.addf %284, %285 : vector<8x32xf32>
    %287 = arith.truncf %286 : vector<8x32xf32> to vector<8x32xbf16>
    %288 = vector.shape_cast %287 : vector<8x32xbf16> to vector<1x8x32xbf16>
    %289 = vector.shape_cast %288 : vector<1x8x32xbf16> to vector<1x8x32xbf16>
    %290 = vector.broadcast %289 : vector<1x8x32xbf16> to vector<4x8x32xbf16>
    %c2_112 = arith.constant 2 : index
    %c0_113 = arith.constant 0 : index
    %c0_114 = arith.constant 0 : index
    %c0_115 = arith.constant 0 : index
    %291 = vector.load %arg5[%c2_112, %c0_113, %c0_114, %c0_115] : memref<4x4x32x24xbf16, #tpu.memory_space<vmem>>, vector<1x4x32x24xbf16>
    %292 = vector.shape_cast %291 : vector<1x4x32x24xbf16> to vector<4x32x24xbf16>
    "tpu.trace_start"() <{level = 10 : i32, message = "hlw,hwd->hld"}> : () -> ()
    %cst_116 = arith.constant dense<0.000000e+00> : vector<4x8x24xf32>
    %293 = tpu.matmul %290, %292, %cst_116 {dimension_numbers = #tpu.dot_dimension_numbers<[2], [1], [1], [2], [0, 0, 0, 1, 1, 2], [0], [0]>} : vector<4x8x32xbf16>, vector<4x32x24xbf16>, vector<4x8x24xf32> -> vector<4x8x24xf32>
    "tpu.trace_stop"() : () -> ()
    %c2_117 = arith.constant 2 : index
    %c0_118 = arith.constant 0 : index
    %c0_119 = arith.constant 0 : index
    %c0_120 = arith.constant 0 : index
    %294 = vector.load %arg6[%c2_117, %c0_118, %c0_119, %c0_120] : memref<4x4x1x24xf32, #tpu.memory_space<vmem>>, vector<1x4x1x24xf32>
    %295 = vector.shape_cast %294 : vector<1x4x1x24xf32> to vector<4x1x24xf32>
    %296 = vector.broadcast %295 : vector<4x1x24xf32> to vector<4x8x24xf32>
    %297 = arith.addf %293, %296 : vector<4x8x24xf32>
    %298 = vector.extract_strided_slice %297 {offsets = [0, 0, 0], sizes = [4, 8, 8], strides = [1, 1, 1]} : vector<4x8x24xf32> to vector<4x8x8xf32>
    %cst_121 = arith.constant 0.353553385 : f32
    %299 = vector.broadcast %cst_121 : f32 to vector<4x8x8xf32>
    %300 = arith.mulf %298, %299 : vector<4x8x8xf32>
    %301 = arith.truncf %300 : vector<4x8x8xf32> to vector<4x8x8xbf16>
    %302 = vector.extract_strided_slice %297 {offsets = [0, 0, 8], sizes = [4, 8, 8], strides = [1, 1, 1]} : vector<4x8x24xf32> to vector<4x8x8xf32>
    %303 = arith.truncf %302 : vector<4x8x8xf32> to vector<4x8x8xbf16>
    %304 = vector.extract_strided_slice %297 {offsets = [0, 0, 16], sizes = [4, 8, 8], strides = [1, 1, 1]} : vector<4x8x24xf32> to vector<4x8x8xf32>
    %305 = arith.truncf %304 : vector<4x8x8xf32> to vector<4x8x8xbf16>
    "tpu.trace_start"() <{level = 10 : i32, message = "hqd,hkd->hqk"}> : () -> ()
    %cst_122 = arith.constant dense<0.000000e+00> : vector<4x8x8xf32>
    %306 = tpu.matmul %301, %303, %cst_122 {dimension_numbers = #tpu.dot_dimension_numbers<[2], [2], [1], [1], [0, 0, 0, 1, 1, 1], [0], [0]>} : vector<4x8x8xbf16>, vector<4x8x8xbf16>, vector<4x8x8xf32> -> vector<4x8x8xf32>
    "tpu.trace_stop"() : () -> ()
    %307 = vector.broadcast %33 : vector<1x1x8xf32> to vector<4x8x8xf32>
    %308 = arith.addf %306, %307 : vector<4x8x8xf32>
    %cst_123 = arith.constant dense<0xFF800000> : vector<4x8xf32>
    %309 = vector.multi_reduction <maximumf>, %308, %cst_123 [2] : vector<4x8x8xf32> to vector<4x8xf32>
    %310 = vector.shape_cast %309 : vector<4x8xf32> to vector<4x8x1xf32>
    %311 = vector.broadcast %310 : vector<4x8x1xf32> to vector<4x8x8xf32>
    %312 = arith.subf %308, %311 : vector<4x8x8xf32>
    %313 = math.exp %312 : vector<4x8x8xf32>
    %cst_124 = arith.constant dense<0.000000e+00> : vector<4x8xf32>
    %314 = vector.multi_reduction <add>, %313, %cst_124 [2] : vector<4x8x8xf32> to vector<4x8xf32>
    %315 = vector.shape_cast %314 : vector<4x8xf32> to vector<4x8x1xf32>
    %316 = vector.broadcast %315 : vector<4x8x1xf32> to vector<4x8x8xf32>
    %317 = arith.divf %313, %316 : vector<4x8x8xf32>
    %318 = arith.truncf %317 : vector<4x8x8xf32> to vector<4x8x8xbf16>
    "tpu.trace_start"() <{level = 10 : i32, message = "hqk,hkd->hqd"}> : () -> ()
    %cst_125 = arith.constant dense<0.000000e+00> : vector<4x8x8xf32>
    %319 = tpu.matmul %318, %305, %cst_125 {dimension_numbers = #tpu.dot_dimension_numbers<[2], [1], [1], [2], [0, 0, 0, 1, 1, 2], [0], [0]>} : vector<4x8x8xbf16>, vector<4x8x8xbf16>, vector<4x8x8xf32> -> vector<4x8x8xf32>
    "tpu.trace_stop"() : () -> ()
    %320 = arith.truncf %319 : vector<4x8x8xf32> to vector<4x8x8xbf16>
    %c2_126 = arith.constant 2 : index
    %c0_127 = arith.constant 0 : index
    %c0_128 = arith.constant 0 : index
    %c0_129 = arith.constant 0 : index
    %321 = vector.load %arg7[%c2_126, %c0_127, %c0_128, %c0_129] : memref<4x4x8x32xbf16, #tpu.memory_space<vmem>>, vector<1x4x8x32xbf16>
    %322 = vector.shape_cast %321 : vector<1x4x8x32xbf16> to vector<4x8x32xbf16>
    "tpu.trace_start"() <{level = 10 : i32, message = "hqd,hdw->hqw"}> : () -> ()
    %cst_130 = arith.constant dense<0.000000e+00> : vector<4x8x32xf32>
    %323 = tpu.matmul %320, %322, %cst_130 {dimension_numbers = #tpu.dot_dimension_numbers<[2], [1], [1], [2], [0, 0, 0, 1, 1, 2], [0], [0]>} : vector<4x8x8xbf16>, vector<4x8x32xbf16>, vector<4x8x32xf32> -> vector<4x8x32xf32>
    "tpu.trace_stop"() : () -> ()
    %cst_131 = arith.constant dense<0.000000e+00> : vector<8x32xf32>
    %324 = vector.multi_reduction <add>, %323, %cst_131 [0] : vector<4x8x32xf32> to vector<8x32xf32>
    %325 = arith.addf %257, %324 : vector<8x32xf32>
    %326 = vector.extract_strided_slice %264 {offsets = [4, 0], sizes = [1, 32], strides = [1, 1]} : vector<8x32xf32> to vector<1x32xf32>
    %327 = vector.broadcast %326 : vector<1x32xf32> to vector<8x32xf32>
    %328 = arith.addf %325, %327 : vector<8x32xf32>
    %329 = vector.extract_strided_slice %264 {offsets = [2, 0], sizes = [1, 32], strides = [1, 1]} : vector<8x32xf32> to vector<1x32xf32>
    %330 = vector.extract_strided_slice %264 {offsets = [3, 0], sizes = [1, 32], strides = [1, 1]} : vector<8x32xf32> to vector<1x32xf32>
    %cst_132 = arith.constant dense<0.000000e+00> : vector<8xf32>
    %331 = vector.multi_reduction <add>, %328, %cst_132 [1] : vector<8x32xf32> to vector<8xf32>
    %332 = vector.shape_cast %331 : vector<8xf32> to vector<8x1xf32>
    %cst_133 = arith.constant 3.200000e+01 : f32
    %333 = vector.broadcast %cst_133 : f32 to vector<8x1xf32>
    %334 = arith.divf %332, %333 : vector<8x1xf32>
    %335 = vector.broadcast %334 : vector<8x1xf32> to vector<8x32xf32>
    %336 = arith.subf %328, %335 : vector<8x32xf32>
    %337 = arith.mulf %336, %336 : vector<8x32xf32>
    %cst_134 = arith.constant dense<0.000000e+00> : vector<8xf32>
    %338 = vector.multi_reduction <add>, %337, %cst_134 [1] : vector<8x32xf32> to vector<8xf32>
    %339 = vector.shape_cast %338 : vector<8xf32> to vector<8x1xf32>
    %cst_135 = arith.constant 3.200000e+01 : f32
    %340 = vector.broadcast %cst_135 : f32 to vector<8x1xf32>
    %341 = arith.divf %339, %340 : vector<8x1xf32>
    %cst_136 = arith.constant 9.99999974E-6 : f32
    %342 = vector.broadcast %cst_136 : f32 to vector<8x1xf32>
    %343 = arith.addf %341, %342 : vector<8x1xf32>
    %344 = math.rsqrt %343 : vector<8x1xf32>
    %345 = vector.broadcast %344 : vector<8x1xf32> to vector<8x32xf32>
    %346 = arith.mulf %336, %345 : vector<8x32xf32>
    %347 = vector.broadcast %329 : vector<1x32xf32> to vector<8x32xf32>
    %348 = arith.mulf %346, %347 : vector<8x32xf32>
    %349 = vector.broadcast %330 : vector<1x32xf32> to vector<8x32xf32>
    %350 = arith.addf %348, %349 : vector<8x32xf32>
    %351 = arith.truncf %350 : vector<8x32xf32> to vector<8x32xbf16>
    %c2_137 = arith.constant 2 : index
    %c0_138 = arith.constant 0 : index
    %c0_139 = arith.constant 0 : index
    %352 = vector.load %arg8[%c2_137, %c0_138, %c0_139] : memref<4x32x128xbf16, #tpu.memory_space<vmem>>, vector<1x32x128xbf16>
    %353 = vector.shape_cast %352 : vector<1x32x128xbf16> to vector<32x128xbf16>
    %cst_140 = arith.constant dense<0.000000e+00> : vector<8x128xf32>
    %354 = tpu.matmul %351, %353, %cst_140 {dimension_numbers = #tpu.dot_dimension_numbers<[1], [0], [0], [1], [0, 0, 1, 1], [], []>} : vector<8x32xbf16>, vector<32x128xbf16>, vector<8x128xf32> -> vector<8x128xf32>
    %c2_141 = arith.constant 2 : index
    %c0_142 = arith.constant 0 : index
    %c0_143 = arith.constant 0 : index
    %355 = vector.load %arg9[%c2_141, %c0_142, %c0_143] : memref<4x1x128xf32, #tpu.memory_space<vmem>>, vector<1x1x128xf32>
    %356 = vector.shape_cast %355 : vector<1x1x128xf32> to vector<1x128xf32>
    %357 = vector.broadcast %356 : vector<1x128xf32> to vector<8x128xf32>
    %358 = arith.addf %354, %357 : vector<8x128xf32>
    %cst_144 = arith.constant 1.702000e+00 : f32
    %359 = vector.broadcast %cst_144 : f32 to vector<8x128xf32>
    %360 = arith.mulf %359, %358 : vector<8x128xf32>
    %361 = arith.negf %360 : vector<8x128xf32>
    %362 = math.exp %361 : vector<8x128xf32>
    %cst_145 = arith.constant 1.000000e+00 : f32
    %363 = vector.broadcast %cst_145 : f32 to vector<8x128xf32>
    %364 = arith.addf %363, %362 : vector<8x128xf32>
    %365 = arith.divf %363, %364 : vector<8x128xf32>
    %366 = arith.mulf %358, %365 : vector<8x128xf32>
    %367 = arith.truncf %366 : vector<8x128xf32> to vector<8x128xbf16>
    %c2_146 = arith.constant 2 : index
    %c0_147 = arith.constant 0 : index
    %c0_148 = arith.constant 0 : index
    %368 = vector.load %arg10[%c2_146, %c0_147, %c0_148] : memref<4x128x32xbf16, #tpu.memory_space<vmem>>, vector<1x128x32xbf16>
    %369 = vector.shape_cast %368 : vector<1x128x32xbf16> to vector<128x32xbf16>
    %cst_149 = arith.constant dense<0.000000e+00> : vector<8x32xf32>
    %370 = tpu.matmul %367, %369, %cst_149 {dimension_numbers = #tpu.dot_dimension_numbers<[1], [0], [0], [1], [0, 0, 1, 1], [], []>} : vector<8x128xbf16>, vector<128x32xbf16>, vector<8x32xf32> -> vector<8x32xf32>
    %371 = arith.addf %328, %370 : vector<8x32xf32>
    %372 = vector.extract_strided_slice %264 {offsets = [5, 0], sizes = [1, 32], strides = [1, 1]} : vector<8x32xf32> to vector<1x32xf32>
    %373 = vector.broadcast %372 : vector<1x32xf32> to vector<8x32xf32>
    %374 = arith.addf %371, %373 : vector<8x32xf32>
    %c3 = arith.constant 3 : index
    %c0_150 = arith.constant 0 : index
    %c0_151 = arith.constant 0 : index
    %375 = vector.load %arg11[%c3, %c0_150, %c0_151] : memref<4x8x32xf32, #tpu.memory_space<vmem>>, vector<1x8x32xf32>
    %376 = vector.shape_cast %375 : vector<1x8x32xf32> to vector<8x32xf32>
    %377 = vector.extract_strided_slice %376 {offsets = [0, 0], sizes = [1, 32], strides = [1, 1]} : vector<8x32xf32> to vector<1x32xf32>
    %378 = vector.extract_strided_slice %376 {offsets = [1, 0], sizes = [1, 32], strides = [1, 1]} : vector<8x32xf32> to vector<1x32xf32>
    %cst_152 = arith.constant dense<0.000000e+00> : vector<8xf32>
    %379 = vector.multi_reduction <add>, %374, %cst_152 [1] : vector<8x32xf32> to vector<8xf32>
    %380 = vector.shape_cast %379 : vector<8xf32> to vector<8x1xf32>
    %cst_153 = arith.constant 3.200000e+01 : f32
    %381 = vector.broadcast %cst_153 : f32 to vector<8x1xf32>
    %382 = arith.divf %380, %381 : vector<8x1xf32>
    %383 = vector.broadcast %382 : vector<8x1xf32> to vector<8x32xf32>
    %384 = arith.subf %374, %383 : vector<8x32xf32>
    %385 = arith.mulf %384, %384 : vector<8x32xf32>
    %cst_154 = arith.constant dense<0.000000e+00> : vector<8xf32>
    %386 = vector.multi_reduction <add>, %385, %cst_154 [1] : vector<8x32xf32> to vector<8xf32>
    %387 = vector.shape_cast %386 : vector<8xf32> to vector<8x1xf32>
    %cst_155 = arith.constant 3.200000e+01 : f32
    %388 = vector.broadcast %cst_155 : f32 to vector<8x1xf32>
    %389 = arith.divf %387, %388 : vector<8x1xf32>
    %cst_156 = arith.constant 9.99999974E-6 : f32
    %390 = vector.broadcast %cst_156 : f32 to vector<8x1xf32>
    %391 = arith.addf %389, %390 : vector<8x1xf32>
    %392 = math.rsqrt %391 : vector<8x1xf32>
    %393 = vector.broadcast %392 : vector<8x1xf32> to vector<8x32xf32>
    %394 = arith.mulf %384, %393 : vector<8x32xf32>
    %395 = vector.broadcast %377 : vector<1x32xf32> to vector<8x32xf32>
    %396 = arith.mulf %394, %395 : vector<8x32xf32>
    %397 = vector.broadcast %378 : vector<1x32xf32> to vector<8x32xf32>
    %398 = arith.addf %396, %397 : vector<8x32xf32>
    %399 = arith.truncf %398 : vector<8x32xf32> to vector<8x32xbf16>
    %400 = vector.shape_cast %399 : vector<8x32xbf16> to vector<1x8x32xbf16>
    %401 = vector.shape_cast %400 : vector<1x8x32xbf16> to vector<1x8x32xbf16>
    %402 = vector.broadcast %401 : vector<1x8x32xbf16> to vector<4x8x32xbf16>
    %c3_157 = arith.constant 3 : index
    %c0_158 = arith.constant 0 : index
    %c0_159 = arith.constant 0 : index
    %c0_160 = arith.constant 0 : index
    %403 = vector.load %arg5[%c3_157, %c0_158, %c0_159, %c0_160] : memref<4x4x32x24xbf16, #tpu.memory_space<vmem>>, vector<1x4x32x24xbf16>
    %404 = vector.shape_cast %403 : vector<1x4x32x24xbf16> to vector<4x32x24xbf16>
    "tpu.trace_start"() <{level = 10 : i32, message = "hlw,hwd->hld"}> : () -> ()
    %cst_161 = arith.constant dense<0.000000e+00> : vector<4x8x24xf32>
    %405 = tpu.matmul %402, %404, %cst_161 {dimension_numbers = #tpu.dot_dimension_numbers<[2], [1], [1], [2], [0, 0, 0, 1, 1, 2], [0], [0]>} : vector<4x8x32xbf16>, vector<4x32x24xbf16>, vector<4x8x24xf32> -> vector<4x8x24xf32>
    "tpu.trace_stop"() : () -> ()
    %c3_162 = arith.constant 3 : index
    %c0_163 = arith.constant 0 : index
    %c0_164 = arith.constant 0 : index
    %c0_165 = arith.constant 0 : index
    %406 = vector.load %arg6[%c3_162, %c0_163, %c0_164, %c0_165] : memref<4x4x1x24xf32, #tpu.memory_space<vmem>>, vector<1x4x1x24xf32>
    %407 = vector.shape_cast %406 : vector<1x4x1x24xf32> to vector<4x1x24xf32>
    %408 = vector.broadcast %407 : vector<4x1x24xf32> to vector<4x8x24xf32>
    %409 = arith.addf %405, %408 : vector<4x8x24xf32>
    %410 = vector.extract_strided_slice %409 {offsets = [0, 0, 0], sizes = [4, 8, 8], strides = [1, 1, 1]} : vector<4x8x24xf32> to vector<4x8x8xf32>
    %cst_166 = arith.constant 0.353553385 : f32
    %411 = vector.broadcast %cst_166 : f32 to vector<4x8x8xf32>
    %412 = arith.mulf %410, %411 : vector<4x8x8xf32>
    %413 = arith.truncf %412 : vector<4x8x8xf32> to vector<4x8x8xbf16>
    %414 = vector.extract_strided_slice %409 {offsets = [0, 0, 8], sizes = [4, 8, 8], strides = [1, 1, 1]} : vector<4x8x24xf32> to vector<4x8x8xf32>
    %415 = arith.truncf %414 : vector<4x8x8xf32> to vector<4x8x8xbf16>
    %416 = vector.extract_strided_slice %409 {offsets = [0, 0, 16], sizes = [4, 8, 8], strides = [1, 1, 1]} : vector<4x8x24xf32> to vector<4x8x8xf32>
    %417 = arith.truncf %416 : vector<4x8x8xf32> to vector<4x8x8xbf16>
    "tpu.trace_start"() <{level = 10 : i32, message = "hqd,hkd->hqk"}> : () -> ()
    %cst_167 = arith.constant dense<0.000000e+00> : vector<4x8x8xf32>
    %418 = tpu.matmul %413, %415, %cst_167 {dimension_numbers = #tpu.dot_dimension_numbers<[2], [2], [1], [1], [0, 0, 0, 1, 1, 1], [0], [0]>} : vector<4x8x8xbf16>, vector<4x8x8xbf16>, vector<4x8x8xf32> -> vector<4x8x8xf32>
    "tpu.trace_stop"() : () -> ()
    %419 = vector.broadcast %33 : vector<1x1x8xf32> to vector<4x8x8xf32>
    %420 = arith.addf %418, %419 : vector<4x8x8xf32>
    %cst_168 = arith.constant dense<0xFF800000> : vector<4x8xf32>
    %421 = vector.multi_reduction <maximumf>, %420, %cst_168 [2] : vector<4x8x8xf32> to vector<4x8xf32>
    %422 = vector.shape_cast %421 : vector<4x8xf32> to vector<4x8x1xf32>
    %423 = vector.broadcast %422 : vector<4x8x1xf32> to vector<4x8x8xf32>
    %424 = arith.subf %420, %423 : vector<4x8x8xf32>
    %425 = math.exp %424 : vector<4x8x8xf32>
    %cst_169 = arith.constant dense<0.000000e+00> : vector<4x8xf32>
    %426 = vector.multi_reduction <add>, %425, %cst_169 [2] : vector<4x8x8xf32> to vector<4x8xf32>
    %427 = vector.shape_cast %426 : vector<4x8xf32> to vector<4x8x1xf32>
    %428 = vector.broadcast %427 : vector<4x8x1xf32> to vector<4x8x8xf32>
    %429 = arith.divf %425, %428 : vector<4x8x8xf32>
    %430 = arith.truncf %429 : vector<4x8x8xf32> to vector<4x8x8xbf16>
    "tpu.trace_start"() <{level = 10 : i32, message = "hqk,hkd->hqd"}> : () -> ()
    %cst_170 = arith.constant dense<0.000000e+00> : vector<4x8x8xf32>
    %431 = tpu.matmul %430, %417, %cst_170 {dimension_numbers = #tpu.dot_dimension_numbers<[2], [1], [1], [2], [0, 0, 0, 1, 1, 2], [0], [0]>} : vector<4x8x8xbf16>, vector<4x8x8xbf16>, vector<4x8x8xf32> -> vector<4x8x8xf32>
    "tpu.trace_stop"() : () -> ()
    %432 = arith.truncf %431 : vector<4x8x8xf32> to vector<4x8x8xbf16>
    %c3_171 = arith.constant 3 : index
    %c0_172 = arith.constant 0 : index
    %c0_173 = arith.constant 0 : index
    %c0_174 = arith.constant 0 : index
    %433 = vector.load %arg7[%c3_171, %c0_172, %c0_173, %c0_174] : memref<4x4x8x32xbf16, #tpu.memory_space<vmem>>, vector<1x4x8x32xbf16>
    %434 = vector.shape_cast %433 : vector<1x4x8x32xbf16> to vector<4x8x32xbf16>
    "tpu.trace_start"() <{level = 10 : i32, message = "hqd,hdw->hqw"}> : () -> ()
    %cst_175 = arith.constant dense<0.000000e+00> : vector<4x8x32xf32>
    %435 = tpu.matmul %432, %434, %cst_175 {dimension_numbers = #tpu.dot_dimension_numbers<[2], [1], [1], [2], [0, 0, 0, 1, 1, 2], [0], [0]>} : vector<4x8x8xbf16>, vector<4x8x32xbf16>, vector<4x8x32xf32> -> vector<4x8x32xf32>
    "tpu.trace_stop"() : () -> ()
    %cst_176 = arith.constant dense<0.000000e+00> : vector<8x32xf32>
    %436 = vector.multi_reduction <add>, %435, %cst_176 [0] : vector<4x8x32xf32> to vector<8x32xf32>
    %437 = arith.addf %374, %436 : vector<8x32xf32>
    %438 = vector.extract_strided_slice %376 {offsets = [4, 0], sizes = [1, 32], strides = [1, 1]} : vector<8x32xf32> to vector<1x32xf32>
    %439 = vector.broadcast %438 : vector<1x32xf32> to vector<8x32xf32>
    %440 = arith.addf %437, %439 : vector<8x32xf32>
    %441 = vector.extract_strided_slice %376 {offsets = [2, 0], sizes = [1, 32], strides = [1, 1]} : vector<8x32xf32> to vector<1x32xf32>
    %442 = vector.extract_strided_slice %376 {offsets = [3, 0], sizes = [1, 32], strides = [1, 1]} : vector<8x32xf32> to vector<1x32xf32>
    %cst_177 = arith.constant dense<0.000000e+00> : vector<8xf32>
    %443 = vector.multi_reduction <add>, %440, %cst_177 [1] : vector<8x32xf32> to vector<8xf32>
    %444 = vector.shape_cast %443 : vector<8xf32> to vector<8x1xf32>
    %cst_178 = arith.constant 3.200000e+01 : f32
    %445 = vector.broadcast %cst_178 : f32 to vector<8x1xf32>
    %446 = arith.divf %444, %445 : vector<8x1xf32>
    %447 = vector.broadcast %446 : vector<8x1xf32> to vector<8x32xf32>
    %448 = arith.subf %440, %447 : vector<8x32xf32>
    %449 = arith.mulf %448, %448 : vector<8x32xf32>
    %cst_179 = arith.constant dense<0.000000e+00> : vector<8xf32>
    %450 = vector.multi_reduction <add>, %449, %cst_179 [1] : vector<8x32xf32> to vector<8xf32>
    %451 = vector.shape_cast %450 : vector<8xf32> to vector<8x1xf32>
    %cst_180 = arith.constant 3.200000e+01 : f32
    %452 = vector.broadcast %cst_180 : f32 to vector<8x1xf32>
    %453 = arith.divf %451, %452 : vector<8x1xf32>
    %cst_181 = arith.constant 9.99999974E-6 : f32
    %454 = vector.broadcast %cst_181 : f32 to vector<8x1xf32>
    %455 = arith.addf %453, %454 : vector<8x1xf32>
    %456 = math.rsqrt %455 : vector<8x1xf32>
    %457 = vector.broadcast %456 : vector<8x1xf32> to vector<8x32xf32>
    %458 = arith.mulf %448, %457 : vector<8x32xf32>
    %459 = vector.broadcast %441 : vector<1x32xf32> to vector<8x32xf32>
    %460 = arith.mulf %458, %459 : vector<8x32xf32>
    %461 = vector.broadcast %442 : vector<1x32xf32> to vector<8x32xf32>
    %462 = arith.addf %460, %461 : vector<8x32xf32>
    %463 = arith.truncf %462 : vector<8x32xf32> to vector<8x32xbf16>
    %c3_182 = arith.constant 3 : index
    %c0_183 = arith.constant 0 : index
    %c0_184 = arith.constant 0 : index
    %464 = vector.load %arg8[%c3_182, %c0_183, %c0_184] : memref<4x32x128xbf16, #tpu.memory_space<vmem>>, vector<1x32x128xbf16>
    %465 = vector.shape_cast %464 : vector<1x32x128xbf16> to vector<32x128xbf16>
    %cst_185 = arith.constant dense<0.000000e+00> : vector<8x128xf32>
    %466 = tpu.matmul %463, %465, %cst_185 {dimension_numbers = #tpu.dot_dimension_numbers<[1], [0], [0], [1], [0, 0, 1, 1], [], []>} : vector<8x32xbf16>, vector<32x128xbf16>, vector<8x128xf32> -> vector<8x128xf32>
    %c3_186 = arith.constant 3 : index
    %c0_187 = arith.constant 0 : index
    %c0_188 = arith.constant 0 : index
    %467 = vector.load %arg9[%c3_186, %c0_187, %c0_188] : memref<4x1x128xf32, #tpu.memory_space<vmem>>, vector<1x1x128xf32>
    %468 = vector.shape_cast %467 : vector<1x1x128xf32> to vector<1x128xf32>
    %469 = vector.broadcast %468 : vector<1x128xf32> to vector<8x128xf32>
    %470 = arith.addf %466, %469 : vector<8x128xf32>
    %cst_189 = arith.constant 1.702000e+00 : f32
    %471 = vector.broadcast %cst_189 : f32 to vector<8x128xf32>
    %472 = arith.mulf %471, %470 : vector<8x128xf32>
    %473 = arith.negf %472 : vector<8x128xf32>
    %474 = math.exp %473 : vector<8x128xf32>
    %cst_190 = arith.constant 1.000000e+00 : f32
    %475 = vector.broadcast %cst_190 : f32 to vector<8x128xf32>
    %476 = arith.addf %475, %474 : vector<8x128xf32>
    %477 = arith.divf %475, %476 : vector<8x128xf32>
    %478 = arith.mulf %470, %477 : vector<8x128xf32>
    %479 = arith.truncf %478 : vector<8x128xf32> to vector<8x128xbf16>
    %c3_191 = arith.constant 3 : index
    %c0_192 = arith.constant 0 : index
    %c0_193 = arith.constant 0 : index
    %480 = vector.load %arg10[%c3_191, %c0_192, %c0_193] : memref<4x128x32xbf16, #tpu.memory_space<vmem>>, vector<1x128x32xbf16>
    %481 = vector.shape_cast %480 : vector<1x128x32xbf16> to vector<128x32xbf16>
    %cst_194 = arith.constant dense<0.000000e+00> : vector<8x32xf32>
    %482 = tpu.matmul %479, %481, %cst_194 {dimension_numbers = #tpu.dot_dimension_numbers<[1], [0], [0], [1], [0, 0, 1, 1], [], []>} : vector<8x128xbf16>, vector<128x32xbf16>, vector<8x32xf32> -> vector<8x32xf32>
    %483 = arith.addf %440, %482 : vector<8x32xf32>
    %484 = vector.extract_strided_slice %376 {offsets = [5, 0], sizes = [1, 32], strides = [1, 1]} : vector<8x32xf32> to vector<1x32xf32>
    %485 = vector.broadcast %484 : vector<1x32xf32> to vector<8x32xf32>
    %486 = arith.addf %483, %485 : vector<8x32xf32>
    %487 = vector.extract_strided_slice %486 {offsets = [1, 0], sizes = [1, 32], strides = [1, 1]} : vector<8x32xf32> to vector<1x32xf32>
    %488 = vector.extract_strided_slice %486 {offsets = [2, 0], sizes = [1, 32], strides = [1, 1]} : vector<8x32xf32> to vector<1x32xf32>
    %489 = vector.extract_strided_slice %486 {offsets = [3, 0], sizes = [1, 32], strides = [1, 1]} : vector<8x32xf32> to vector<1x32xf32>
    %490 = vector.extract_strided_slice %486 {offsets = [4, 0], sizes = [1, 32], strides = [1, 1]} : vector<8x32xf32> to vector<1x32xf32>
    %491 = tpu.concatenate %487, %488, %489, %490 in 1 : vector<1x32xf32>, vector<1x32xf32>, vector<1x32xf32>, vector<1x32xf32> -> vector<1x128xf32>
    %492 = tpu.concatenate %262, %491 in 0 : vector<1x128xf32>, vector<1x128xf32> -> vector<2x128xf32>
    %493 = vector.shape_cast %492 : vector<2x128xf32> to vector<1x2x128xf32>
    %c0_195 = arith.constant 0 : index
    %c0_196 = arith.constant 0 : index
    %c0_197 = arith.constant 0 : index
    %494 = vector.load %arg12[%c0_195, %c0_196, %c0_197] : memref<1x2x128xf32, #tpu.memory_space<vmem>>, vector<1x2x128xf32>
    tpu.vector_store %arg12[%c0_195, %c0_196, %c0_197], %493 {strides = array<i32>} : memref<1x2x128xf32, #tpu.memory_space<vmem>>, vector<1x2x128xf32>,
    %495 = vector.extract_strided_slice %486 {offsets = [0, 0], sizes = [1, 32], strides = [1, 1]} : vector<8x32xf32> to vector<1x32xf32>
    %c10 = arith.constant 10 : index
    %c0_198 = arith.constant 0 : index
    %496 = vector.load %arg3[%c10, %c0_198] : memref<16x32xf32, #tpu.memory_space<vmem>>, vector<1x32xf32>
    %c11 = arith.constant 11 : index
    %c0_199 = arith.constant 0 : index
    %497 = vector.load %arg3[%c11, %c0_199] : memref<16x32xf32, #tpu.memory_space<vmem>>, vector<1x32xf32>
    %cst_200 = arith.constant dense<0.000000e+00> : vector<1xf32>
    %498 = vector.multi_reduction <add>, %495, %cst_200 [1] : vector<1x32xf32> to vector<1xf32>
    %499 = vector.shape_cast %498 : vector<1xf32> to vector<1x1xf32>
    %cst_201 = arith.constant 3.200000e+01 : f32
    %500 = vector.broadcast %cst_201 : f32 to vector<1x1xf32>
    %501 = arith.divf %499, %500 : vector<1x1xf32>
    %502 = vector.broadcast %501 : vector<1x1xf32> to vector<1x32xf32>
    %503 = arith.subf %495, %502 : vector<1x32xf32>
    %504 = arith.mulf %503, %503 : vector<1x32xf32>
    %cst_202 = arith.constant dense<0.000000e+00> : vector<1xf32>
    %505 = vector.multi_reduction <add>, %504, %cst_202 [1] : vector<1x32xf32> to vector<1xf32>
    %506 = vector.shape_cast %505 : vector<1xf32> to vector<1x1xf32>
    %cst_203 = arith.constant 3.200000e+01 : f32
    %507 = vector.broadcast %cst_203 : f32 to vector<1x1xf32>
    %508 = arith.divf %506, %507 : vector<1x1xf32>
    %cst_204 = arith.constant 9.99999974E-6 : f32
    %509 = vector.broadcast %cst_204 : f32 to vector<1x1xf32>
    %510 = arith.addf %508, %509 : vector<1x1xf32>
    %511 = math.rsqrt %510 : vector<1x1xf32>
    %512 = vector.broadcast %511 : vector<1x1xf32> to vector<1x32xf32>
    %513 = arith.mulf %503, %512 : vector<1x32xf32>
    %514 = arith.mulf %513, %496 : vector<1x32xf32>
    %515 = arith.addf %514, %497 : vector<1x32xf32>
    %516 = arith.truncf %515 : vector<1x32xf32> to vector<1x32xbf16>
    %c0_205 = arith.constant 0 : index
    %c0_206 = arith.constant 0 : index
    %517 = vector.load %arg4[%c0_205, %c0_206] : memref<32x16xbf16, #tpu.memory_space<vmem>>, vector<32x16xbf16>
    %cst_207 = arith.constant dense<0.000000e+00> : vector<1x16xf32>
    %518 = tpu.matmul %516, %517, %cst_207 {dimension_numbers = #tpu.dot_dimension_numbers<[1], [0], [0], [1], [0, 0, 1, 1], [], []>} : vector<1x32xbf16>, vector<32x16xbf16>, vector<1x16xf32> -> vector<1x16xf32>
    %519 = arith.mulf %518, %518 : vector<1x16xf32>
    %cst_208 = arith.constant dense<0.000000e+00> : vector<1xf32>
    %520 = vector.multi_reduction <add>, %519, %cst_208 [1] : vector<1x16xf32> to vector<1xf32>
    %521 = vector.shape_cast %520 : vector<1xf32> to vector<1x1xf32>
    %522 = math.rsqrt %521 : vector<1x1xf32>
    %523 = vector.broadcast %522 : vector<1x1xf32> to vector<1x16xf32>
    %524 = arith.mulf %518, %523 : vector<1x16xf32>
    %525 = vector.shape_cast %524 : vector<1x16xf32> to vector<1x1x16xf32>
    %c0_209 = arith.constant 0 : index
    %c0_210 = arith.constant 0 : index
    %c0_211 = arith.constant 0 : index
    %526 = vector.load %arg13[%c0_209, %c0_210, %c0_211] : memref<1x1x16xf32, #tpu.memory_space<vmem>>, vector<1x1x16xf32>
    tpu.vector_store %arg13[%c0_209, %c0_210, %c0_211], %525 {strides = array<i32>} : memref<1x1x16xf32, #tpu.memory_space<vmem>>, vector<1x1x16xf32>,
    return
  }
  func.func @transform_0(%arg0: i32) -> (i32, i32) {
    %c0_i32 = arith.constant 0 : i32
    %c0_i32_0 = arith.constant 0 : i32
    return %arg0, %c0_i32 : i32, i32
  }
  func.func @transform_1(%arg0: i32) -> (i32, i32) {
    %c0_i32 = arith.constant 0 : i32
    %c0_i32_0 = arith.constant 0 : i32
    %c0_i32_1 = arith.constant 0 : i32
    return %c0_i32, %c0_i32_0 : i32, i32
  }
  func.func @transform_2(%arg0: i32) -> (i32, i32) {
    %c0_i32 = arith.constant 0 : i32
    %c0_i32_0 = arith.constant 0 : i32
    %c0_i32_1 = arith.constant 0 : i32
    return %c0_i32, %c0_i32_0 : i32, i32
  }
  func.func @transform_3(%arg0: i32) -> (i32, i32) {
    %c0_i32 = arith.constant 0 : i32
    %c0_i32_0 = arith.constant 0 : i32
    %c0_i32_1 = arith.constant 0 : i32
    return %c0_i32, %c0_i32_0 : i32, i32
  }
  func.func @transform_4(%arg0: i32) -> (i32, i32, i32, i32) {
    %c0_i32 = arith.constant 0 : i32
    %c0_i32_0 = arith.constant 0 : i32
    %c0_i32_1 = arith.constant 0 : i32
    %c0_i32_2 = arith.constant 0 : i32
    %c0_i32_3 = arith.constant 0 : i32
    return %c0_i32, %c0_i32_0, %c0_i32_1, %c0_i32_2 : i32, i32, i32, i32
  }
  func.func @transform_5(%arg0: i32) -> (i32, i32, i32, i32) {
    %c0_i32 = arith.constant 0 : i32
    %c0_i32_0 = arith.constant 0 : i32
    %c0_i32_1 = arith.constant 0 : i32
    %c0_i32_2 = arith.constant 0 : i32
    %c0_i32_3 = arith.constant 0 : i32
    return %c0_i32, %c0_i32_0, %c0_i32_1, %c0_i32_2 : i32, i32, i32, i32
  }
  func.func @transform_6(%arg0: i32) -> (i32, i32, i32, i32) {
    %c0_i32 = arith.constant 0 : i32
    %c0_i32_0 = arith.constant 0 : i32
    %c0_i32_1 = arith.constant 0 : i32
    %c0_i32_2 = arith.constant 0 : i32
    %c0_i32_3 = arith.constant 0 : i32
    return %c0_i32, %c0_i32_0, %c0_i32_1, %c0_i32_2 : i32, i32, i32, i32
  }
  func.func @transform_7(%arg0: i32) -> (i32, i32, i32) {
    %c0_i32 = arith.constant 0 : i32
    %c0_i32_0 = arith.constant 0 : i32
    %c0_i32_1 = arith.constant 0 : i32
    %c0_i32_2 = arith.constant 0 : i32
    return %c0_i32, %c0_i32_0, %c0_i32_1 : i32, i32, i32
  }
  func.func @transform_8(%arg0: i32) -> (i32, i32, i32) {
    %c0_i32 = arith.constant 0 : i32
    %c0_i32_0 = arith.constant 0 : i32
    %c0_i32_1 = arith.constant 0 : i32
    %c0_i32_2 = arith.constant 0 : i32
    return %c0_i32, %c0_i32_0, %c0_i32_1 : i32, i32, i32
  }
  func.func @transform_9(%arg0: i32) -> (i32, i32, i32) {
    %c0_i32 = arith.constant 0 : i32
    %c0_i32_0 = arith.constant 0 : i32
    %c0_i32_1 = arith.constant 0 : i32
    %c0_i32_2 = arith.constant 0 : i32
    return %c0_i32, %c0_i32_0, %c0_i32_1 : i32, i32, i32
  }
  func.func @transform_10(%arg0: i32) -> (i32, i32, i32) {
    %c0_i32 = arith.constant 0 : i32
    %c0_i32_0 = arith.constant 0 : i32
    %c0_i32_1 = arith.constant 0 : i32
    %c0_i32_2 = arith.constant 0 : i32
    return %c0_i32, %c0_i32_0, %c0_i32_1 : i32, i32, i32
  }
  func.func @transform_11(%arg0: i32) -> (i32, i32, i32) {
    %c0_i32 = arith.constant 0 : i32
    %c0_i32_0 = arith.constant 0 : i32
    %c0_i32_1 = arith.constant 0 : i32
    return %arg0, %c0_i32, %c0_i32_0 : i32, i32, i32
  }
  func.func @transform_12(%arg0: i32) -> (i32, i32, i32) {
    %c0_i32 = arith.constant 0 : i32
    %c0_i32_0 = arith.constant 0 : i32
    %c0_i32_1 = arith.constant 0 : i32
    return %arg0, %c0_i32, %c0_i32_0 : i32, i32, i32
  }
}

</mosaic_0001>

<bundles_post_ra>
// kernel: clip_vit_forward.1
= control target key start
LH: loop header
LB: loop body
LE: loop exit
PB: predicated region body
PF: predicated region fallthrough
CT: control target
= control target key end

     0   :  { %18 = vsyncpa [#allocation3], 0  ;;  %s5638_s0 = inlined_call_operand.vmem [shape: f32[16,192], index: 0, kind: input, shape index: {}]   ;;  %s5639_s1 = inlined_call_operand.vmem [shape: bf16[192,32], index: 1, kind: input, shape index: {}]   ;;  %s5640_s2 = inlined_call_operand.vmem [shape: f32[16,32], index: 2, kind: input, shape index: {}]   ;;  %s5641_s3 = inlined_call_operand.vmem [shape: bf16[32,16], index: 3, kind: input, shape index: {}]   ;;  %s5642_s4 = inlined_call_operand.vmem [shape: bf16[4,4,32,24], index: 4, kind: input, shape index: {}]   ;;  %s5643_s5 = inlined_call_operand.vmem [shape: f32[4,4,1,24], index: 5, kind: input, shape index: {}]   ;;  %s5644_s6 = inlined_call_operand.vmem [shape: bf16[4,4,8,32], index: 6, kind: input, shape index: {}]   ;;  %s5645_s7 = inlined_call_operand.vmem [shape: bf16[4,32,128], index: 7, kind: input, shape index: {}]   ;;  %s5646_s8 = inlined_call_operand.vmem [shape: f32[4,1,128], index: 8, kind: input, shape index: {}]   ;;  %s5647_s9 = inlined_call_operand.vmem [shape: bf16[4,128,32], index: 9, kind: input, shape index: {}]   ;;  %s5648_s10 = inlined_call_operand.vmem [shape: f32[4,8,32], index: 10, kind: input, shape index: {}]   ;;  %s5649_s11 = inlined_call_operand.vmem [shape: f32[2,2,128], index: 11, kind: output, shape index: {0}]   ;;  %s5650_s12 = inlined_call_operand.hbm [shape: f32[2,1,16], index: 12, kind: output, shape index: {1}]  }
   0x1   :  { %20 = vsyncpa [#allocation3 + $0x1], 0  ;;  %s4648_s21 = smov 0   ;;  %s4650_s22 = smov 0  }
   0x2   :  { %s4652_s23 = smov 0   ;;  %s4654_s24 = smov 0  }
   0x3 LB: > { %5655 = sst [smem:[#allocation5_spill]] %s4570_s23  ;;  %s4669_s25 = sadd.s32 4294967295, %s4574_s24   ;;  %s4574_s24 = sphi %s4654_s24, %s5666_s24   ;;  %s4570_s23 = sphi %s4652_s23, %s5668_s23   ;;  %s4566_s22 = sphi %s4650_s22, %s5670_s22   ;;  %s4562_s21 = sphi %s4648_s21, %s5669_s21  }
   0x4   : > { %s3688_s26 = sadd.s32 4294967294, %s4574_s24   ;;  %s4673_s27 = sadd.s32 1, %s4574_s24  }
   0x5   : > { %5656 = sst [smem:[#allocation6_spill]] %s4673_s27  ;;  %s295_s28 = sadd.s32 1, %s4570_s23 }
   0x6   : > { %s292_s29 = ssub.s32 %s4574_s24, %s4673_s27  ;;  %p305_p0 = scmp.ne.s32.totalorder %s4570_s23, %s4566_s22 }
   0x7   : > { %p293_p1 = scmp.eq.s32.totalorder %s292_s29, 0  ;;  %p306_p2 = scmp.eq.s32.totalorder %s4669_s25, 1 }
   0x8   : > { %p311_p3 = scmp.ne.s32.totalorder %s4566_s22, %s4562_s21  ;;  %p312_p4 = scmp.eq.s32.totalorder %s3688_s26, 1 }
   0x9   : > { %s4684_s30 = scalar_select %p293_p1, %s4570_s23, %s295_s28  }
   0xa   : > { %p4686_p5 = por %p306_p2, %p305_p0  ;;  %p4690_p6 = por %p312_p4, %p311_p3 }
   0xb   : > { %5657 = sst [smem:[#allocation7_spill]] %s4684_s30  ;;  %p3691_p7 = scmp.ge.s32.totalorder %s4574_s24, 1 }
   0xc   : > { %s5659_s14 = scalar_select %p4690_p6, 1, 0 }
   0xd   : > { %p368_p8 = scmp.lt.s32.totalorder %s4574_s24, 3 }
   0xe   : > { %5660 = sst [smem:[#allocation8_spill]] %s5659_s14 }
   0xf   : > { %p369_p9 = pnand %p3691_p7, %p368_p8 }
  0x10   : > { %p413_p10 = scmp.lt.s32.totalorder (!%p369_p9), %s4669_s25, 1  ;;  %s4579_s14 = smov (!%p369_p9), 112  }
  0x11   : > { %372 = sbr.rel (%p369_p9) target bundleno = 8160 (0x1fe0), region = 64  ;;  %s4581_s29 = smov (!%p369_p9), 32  }
  0x12   : > { %s4582_s30 = smov (!%p369_p9), 64   ;;  %s411_s28 = sand.u32 (!%p369_p9), 1, %s4566_s22  }
  0x13   : > { %s3594_s18 = scalar_lea.sflag (!%p369_p9), [#allocation3], %s411_s28 }
  0x16   : > { %v4261_v0 = vld [vmem:[%s5639_s1 + $0x38] sm:$0xff]  ;;  %v4260_v2 = vld [vmem:[%s5639_s1 + $0x30] sm:$0xff]  ;;  %s4707_s26 = scalar_select %p413_p10, %s4669_s25, 1  ;;  %v4259_v4 = vld [vmem:[%s5639_s1 + $0x28] sm:$0xff]  ;;  %vm524_vm0 = vcmask 523264   ;;  %vm556_vm1 = vcmask 261120  }
  0x17   : > { %v4265_v1 = vld [vmem:[%s5639_s1 + $0x58] sm:$0xff]  ;;  %528 = vmatpush.bf16.msra.mxu0 %v4261_v0  ;;  %v4264_v3 = vld [vmem:[%s5639_s1 + $0x50] sm:$0xff]  ;;  %v4263_v5 = vld [vmem:[%s5639_s1 + $0x48] sm:$0xff]  ;;  %v4576_v24 = vmov 32.0   ;;  %vm774_vm9 = vcmask 64512   ;;  %vm971_vm11 = vcmask 1043456  }
  0x18   : > { %545 = vmatpush.bf16.msra.mxu1 %v4265_v1  ;;  %s4253_s15 = sshll.u32 %s4707_s26, 4  ;;  %v4258_v6 = vld [vmem:[%s5639_s1 + $0x20] sm:$0xff]  ;;  %v4257_v9 = vld [vmem:[%s5639_s1 + $0x18] sm:$0xff]  ;;  %v4256_v11 = vld [vmem:[%s5639_s1 + $0x10] sm:$0xff]  ;;  %4408 = vrcp.f32 %v4576_v24  ;;  %s3694_s16 = sshll.u32 %s4707_s26, 1 }
  0x19   : > { %s417_s23 = scalar_lea.vmem %s5638_s0, %s4253_s15  ;;  %v4262_v7 = vld [vmem:[%s5639_s1 + $0x40] sm:$0xff]  ;;  %v4255_v12 = vld [vmem:[%s5639_s1 + $0x8] sm:$0xff]  ;;  %v4269_v58 = vld [vmem:[%s5642_s4 + $0x18] sm:$0xff]  ;;  %s4577_s15 = smov 120  }
  0x1a   : > { %v424_v8 = vld [vmem:[%s417_s23 + $0x8] sm:$0xff]  ;;  %v4254_v13 = vld [vmem:[%s5639_s1] sm:$0xff]  ;;  %v4273_v59 = vld [vmem:[%s5642_s4 + $0x38] sm:$0xff]  ;;  %s421_s26 = scalar_lea.vmem %s5649_s11, %s3694_s16 }
  0x1b   : > { %529 = vmatpush.bf16.msra.mxu0 %v4260_v2  ;;  %v426_v10 = vpack.c.bf16 %v424_v8, %v424_v8  ;;  %v423_v14 = vld [vmem:[%s417_s23] sm:$0xff]  ;;  %v4386_v45 = vld [vmem:[%s5640_s2 + $0x8] ss:$0 sm:$0xff]  ;;  %v4387_v48 = vld [vmem:[%s5640_s2 + $0x9] ss:$0 sm:$0xff]  ;;  %750 = vmatpush.bf16.msra.mxu3 %v4273_v59  ;;  %s4580_s23 = smov 96  }
  0x1c   : > { %546 = vmatpush.bf16.msra.mxu1 %v4264_v3  ;;  %v425_v15 = vpack.c.bf16 %v423_v14, %v423_v14  ;;  %v451_v18 = vld [vmem:[%s5640_s2] sm:$0xff]  ;;  %v4267_v57 = vld [vmem:[%s5642_s4 + $0x8] sm:$0xff]  ;;  %v4268_v61 = vld [vmem:[%s5642_s4 + $0x10] sm:$0xff] }
  0x1d   : > { %675 = vmatpush.bf16.msra.mxu2 %v4267_v57  ;;  %v4266_v60 = vld [vmem:[%s5642_s4] sm:$0xff]  ;;  %v4272_v62 = vld [vmem:[%s5642_s4 + $0x30] sm:$0xff]  ;;  %v4271_v0 = vld [vmem:[%s5642_s4 + $0x28] sm:$0xff] }
  0x1e   : > { %v4409_v25 = vpop.eup %4408  ;;  %v4270_v2 = vld [vmem:[%s5642_s4 + $0x20] sm:$0xff] }
  0x1f   : > { %530 = vmatpush.bf16.msra.mxu0 %v4259_v4  ;;  %v561_v26 = vmul.f32 32.0, %v4409_v25  ;;  %vm565_vm2 = vweird.f32 %v4409_v25  ;;  %751 = vmatpush.bf16.msra.mxu3 %v4272_v62 }
  0x20   : > { %547 = vmatpush.bf16.msra.mxu1 %v4263_v5 }
  0x21   : > { %v562_v27 = vsub.f32 1.0, %v561_v26  ;;  %676 = vmatpush.bf16.msra.mxu2 %v4266_v60 }
  0x23   : > { %531 = vmatpush.bf16.msra.mxu0 %v4258_v6  ;;  %v563_v28 = vmul.f32 %v4409_v25, %v562_v27 }
  0x24   : > { %548 = vmatpush.bf16.msra.mxu1 %v4262_v7 }
  0x25   : > { %v564_v29 = vadd.f32 %v4409_v25, %v563_v28  ;;  %725 = vmatpush.bf16.msrb.mxu2 %v4271_v0  ;;  %v590_v0 = vlaneseq }
  0x27   : > { %532 = vmatpush.bf16.msra.mxu0 %v4257_v9  ;;  %3743 = vmatmul.msk.bf16.vlgmr.msra.gmra.mxu1 %vm524_vm0, %v426_v10  ;;  %v4745_v30 = vsel %vm565_vm2, %v4409_v25, %v564_v29  ;;  %v4791_v9 = vld [vmem:[%s5648_s10] sm:$0xff] }
  0x28   : > { %700 = vmatpush.bf16.msrb.mxu1 %v4269_v58  ;;  %v619_v14 = vperm.slane %v4791_v9, 1 }
  0x29   : > { %726 = vmatpush.bf16.msrb.mxu2 %v4270_v2  ;;  %v4578_v2 = vmov -1e+30  }
  0x2b   : > { %533 = vmatpush.bf16.msra.mxu0 %v4256_v11  ;;  %v617_v11 = vperm.slane %v4791_v9, 0 }
  0x2c   : > { %701 = vmatpush.bf16.msrb.mxu1 %v4268_v61 }
  0x2f   : > { %534 = vmatpush.bf16.msra.mxu0 %v4255_v12 }
  0x33   : > { %535 = vmatpush.bf16.msra.mxu0 %v4254_v13 }
  0x36   : > { %536 = vmatmul.bf16.vlgmr.msra.gmra.mxu0 %v425_v15 }
  0xa4   : > { %v550_v16 = vpop.f32.mrf.mxu1 }
  0xac   : > { %v552_v17 = vpop.f32.mrf.mxu1 }
  0xb3   : > { %v537_v19 = vpop.f32.mrf.mxu0 }
  0xb4   : > { %v538_v20 = vadd.f32 %v537_v19, %v451_v18  ;;  %v4388_v18 = vld [vmem:[%s5643_s5 + $0x1] ss:$0 sm:$0xff] }
  0xb6   : > { %v551_v21 = vadd.f32 %v550_v16, %v538_v20 }
  0xb8   : > { %v557_v22 = vsel %vm556_vm1, %v551_v21, 0.0 }
  0xb9   : > { %558 = vadd.xlane.f32.xlu0 %v557_v22 }
  0xbb   : > { %v539_v23 = vpop.f32.mrf.mxu0 }
  0xbc   : > { %v4390_v23 = vld [vmem:[%s5643_s5 + $0x3] ss:$0 sm:$0xff] }
 0x12c   : > { %v559_v31 = vpop.xlane.xlu0 %558 }
 0x12d   : > { %v567_v32 = vmul.f32 %v4745_v30, %v559_v31 }
 0x12f   : > { %v568_v33 = vsub.f32 %v551_v21, %v567_v32  ;;  %v4389_v21 = vld [vmem:[%s5643_s5] ss:$0 sm:$0xff] }
 0x131   : > { %v569_v34 = vmul.f32 %v568_v33, %v568_v33 }
 0x133   : > { %v570_v35 = vsel %vm556_vm1, %v569_v34, 0.0 }
 0x134   : > { %571 = vadd.xlane.f32.xlu0 %v570_v35 }
 0x1a7   : > { %v572_v36 = vpop.xlane.xlu0 %571 }
 0x1a8   : > { %v573_v37 = vmul.f32 %v572_v36, %v4745_v30 }
 0x1aa   : > { %v574_v38 = vadd.f32 1e-05, %v573_v37 }
 0x1ac   : > { %4410 = vrsqrt.f32 %v574_v38  ;;  %vm581_vm4 = vweird.f32 %v574_v38 }
 0x1b2   : > { %v4411_v39 = vpop.eup %4410 }
 0x1b3   : > { %v576_v40 = vmul.f32 %v4411_v39, %v574_v38  ;;  %vm582_vm3 = vweird.f32 %v4411_v39 }
 0x1b4   : > { %vm583_vm5 = vmor %vm581_vm4, %vm582_vm3 }
 0x1b5   : > { %v577_v41 = vmul.f32 %v4411_v39, %v576_v40  ;;  %v4391_v40 = vld [vmem:[%s5643_s5 + $0x2] ss:$0 sm:$0xff] }
 0x1b7   : > { %v578_v42 = vmul.f32 0.5, %v577_v41 }
 0x1b9   : > { %v579_v43 = vsub.f32 1.5, %v578_v42 }
 0x1bb   : > { %v580_v44 = vmul.f32 %v4411_v39, %v579_v43 }
 0x1bd   : > { %v584_v46 = vsel %vm583_vm5, %v4411_v39, %v580_v44 }
 0x1be   : > { %v585_v47 = vmul.f32 %v584_v46, %v568_v33 }
 0x1c0   : > { %v587_v49 = vmul.f32 %v4386_v45, %v585_v47 }
 0x1c2   : > { %v4756_v50 = vadd.f32 %v4387_v48, %v587_v49 }
 0x1c4   : > { %v595_v51 = vsel %vm556_vm1, %v4756_v50, 0.0 }
 0x1c5   : > { %596 = vadd.xlane.f32.xlu1 %v595_v51 }
 0x238   : > { %v597_v52 = vpop.xlane.xlu1 %596 }
 0x239   : > { %v598_v53 = vmul.f32 %v597_v52, %v4745_v30 }
 0x23b   : > { %v599_v54 = vsub.f32 %v4756_v50, %v598_v53 }
 0x23d   : > { %v600_v55 = vmul.f32 %v599_v54, %v599_v54 }
 0x23f   : > { %v601_v56 = vsel %vm556_vm1, %v600_v55, 0.0 }
 0x240   : > { %602 = vadd.xlane.f32.xlu1 %v601_v56 }
 0x2b3   : > { %v603_v63 = vpop.xlane.xlu1 %602 }
 0x2b4   : > { %v604_v1 = vmul.f32 %v603_v63, %v4745_v30 }
 0x2b6   : > { %v605_v3 = vadd.f32 1e-05, %v604_v1  ;;  %v591_v1 = vand.u32 127, %v590_v0 }
 0x2b8   : > { %4412 = vrsqrt.f32 %v605_v3  ;;  %vm612_vm7 = vweird.f32 %v605_v3  ;;  %vm592_vm10 = vcmp.lt.s32.totalorder %v591_v1, 5 }
 0x2be   : > { %v4413_v4 = vpop.eup %4412 }
 0x2bf   : > { %v607_v5 = vmul.f32 %v4413_v4, %v605_v3  ;;  %vm613_vm6 = vweird.f32 %v4413_v4  ;;  %v4832_v3 = vsel %vm592_vm10, 0.0, %v4578_v2 }
 0x2c0   : > { %vm614_vm8 = vmor %vm612_vm7, %vm613_vm6 }
 0x2c1   : > { %v608_v6 = vmul.f32 %v4413_v4, %v607_v5 }
 0x2c3   : > { %v609_v7 = vmul.f32 0.5, %v608_v6 }
 0x2c5   : > { %v610_v8 = vsub.f32 1.5, %v609_v7 }
 0x2c7   : > { %v611_v10 = vmul.f32 %v4413_v4, %v610_v8 }
 0x2c9   : > { %v615_v12 = vsel %vm614_vm8, %v4413_v4, %v611_v10 }
 0x2ca   : > { %v616_v13 = vmul.f32 %v615_v12, %v599_v54 }
 0x2cc   : > { %v618_v15 = vmul.f32 %v617_v11, %v616_v13 }
 0x2ce   : > { %v620_v16 = vadd.f32 %v619_v14, %v618_v15 }
 0x2d0   : > { %v621_v17 = vpack.c.bf16 %v620_v16, %v620_v16 }
 0x2d2   : > { %3752 = vmatmul.msk.bf16.vlgmr.msra.gmra.mxu2 %vm556_vm1, %v621_v17  ;;  %3761 = vmatmul.msk.bf16.vlgmr.msrb.gmra.mxu1 %vm556_vm1, %v621_v17 }
 0x2d3   : > { %3779 = vmatmul.msk.bf16.vlgmr.msra.gmra.mxu3 %vm556_vm1, %v621_v17 }
 0x2e2   : > { %3770 = vmatmul.msk.bf16.vlgmr.msrb.gmra.mxu2 %vm556_vm1, %v621_v17 }
 0x34f   : > { %v703_v19 = vpop.f32.mrf.mxu1 }
 0x350   : > { %v704_v20 = vadd.f32 %v4388_v18, %v703_v19 }
 0x352   : > { %v766_v22 = vpack.c.bf16 %v704_v20, %v704_v20  ;;  %v758_v49 = vmul.f32 0.35355338, %v704_v20 }
 0x354   : > { %v795_v24 = vunpack.c.l.b16 %v766_v22  ;;  %v762_v51 = vpack.c.bf16 %v758_v49, %v758_v49 }
 0x355   : > { %v678_v25 = vpop.f32.mrf.mxu2 }
 0x356   : > { %v679_v26 = vadd.f32 %v4389_v21, %v678_v25  ;;  %v753_v27 = vpop.f32.mrf.mxu3  ;;  %v4808_v28 = vpack.c.b16 %v795_v24, %v795_v24 }
 0x357   : > { %v754_v29 = vadd.f32 %v4390_v23, %v753_v27  ;;  %v705_v31 = vpop.f32.mrf.mxu1 }
 0x358   : > { %v765_v32 = vpack.c.bf16 %v679_v26, %v679_v26  ;;  %797 = vrot.lane.b32.xlu2 %v4808_v28, %s4577_s15  ;;  %v757_v60 = vmul.f32 0.35355338, %v679_v26 }
 0x359   : > { %v768_v33 = vpack.c.bf16 %v754_v29, %v754_v29  ;;  %v760_v61 = vmul.f32 0.35355338, %v754_v29 }
 0x35a   : > { %v770_v34 = vunpack.c.l.b16 %v765_v32  ;;  %v761_v62 = vpack.c.bf16 %v757_v60, %v757_v60 }
 0x35b   : > { %v843_v35 = vunpack.c.l.b16 %v768_v33  ;;  %v764_v63 = vpack.c.bf16 %v760_v61, %v760_v61 }
 0x35c   : > { %v4812_v36 = vpack.c.b16 %v770_v34, %v770_v34 }
 0x35d   : > { %v4814_v37 = vpack.c.b16 %v843_v35, %v843_v35  ;;  %v680_v38 = vpop.f32.mrf.mxu2 }
 0x35e   : > { %v755_v39 = vpop.f32.mrf.mxu3  ;;  %772 = vrot.lane.b32.xlu0 %v4812_v36, %s4577_s15 }
 0x35f   : > { %845 = vrot.lane.b32.xlu1 %v4814_v37, %s4577_s15 }
 0x365   : > { %v728_v41 = vpop.f32.mrf.mxu2 }
 0x366   : > { %v729_v42 = vadd.f32 %v4391_v40, %v728_v41 }
 0x368   : > { %v767_v43 = vpack.c.bf16 %v729_v42, %v729_v42  ;;  %v759_v54 = vmul.f32 0.35355338, %v729_v42 }
 0x36a   : > { %v819_v44 = vunpack.c.l.b16 %v767_v43  ;;  %v763_v55 = vpack.c.bf16 %v759_v54, %v759_v54 }
 0x36c   : > { %v820_v45 = vpack.c.b16 %v819_v44, %v819_v44 }
 0x36d   : > { %v730_v46 = vpop.f32.mrf.mxu2 }
 0x36e   : > { %821 = vrot.lane.b32.xlu2 %v820_v45, %s4577_s15 }
 0x3b2   : > { %v798_v47 = vpop.permute.xlu2 %797 }
 0x3b3   : > { %v803_v48 = vsel %vm774_vm9, %v798_v47, 0 }
 0x3b4   : > { %812 = vmatpush.bf16.xpose.msra.mxu2 %v803_v48 }
 0x3bb   : > { %3781 = vmatmul.msk.bf16.vlgmr.msra.gmra.mxu2 %vm774_vm9, %v762_v51 }
 0x3c8   : > { %v822_v52 = vpop.permute.xlu2 %821 }
 0x3c9   : > { %v827_v53 = vsel %vm774_vm9, %v822_v52, 0 }
 0x3ca   : > { %836 = vmatpush.bf16.xpose.msrb.mxu3 %v827_v53 }
 0x3d0   : > { %v773_v56 = vpop.permute.xlu0 %772 }
 0x3d1   : > { %v846_v57 = vpop.permute.xlu1 %845  ;;  %v779_v58 = vsel %vm774_vm9, %v773_v56, 0  ;;  %3782 = vmatmul.msk.bf16.vlgmr.msrb.gmra.mxu3 %vm774_vm9, %v763_v55 }
 0x3d2   : > { %788 = vmatpush.bf16.xpose.msra.mxu1 %v779_v58  ;;  %v851_v59 = vsel %vm774_vm9, %v846_v57, 0 }
 0x3d3   : > { %860 = vmatpush.bf16.xpose.msrb.mxu0 %v851_v59 }
 0x3d9   : > { %3780 = vmatmul.msk.bf16.vlgmr.msra.gmra.mxu1 %vm774_vm9, %v761_v62 }
 0x3da   : > { %3783 = vmatmul.msk.bf16.vlgmr.msrb.gmra.mxu0 %vm774_vm9, %v764_v63 }
 0x43e   : > { %v814_v4 = vpop.f32.mrf.mxu2 }
 0x43f   : > { %v815_v5 = vadd.f32 %v814_v4, %v4832_v3 }
 0x441   : > { %v869_v6 = vsel %vm774_vm9, %v815_v5, -inf }
 0x442   : > { %870 = vmax.xlane.f32.xlu2 %v869_v6 }
 0x446   : > { %v816_v7 = vpop.f32.mrf.mxu2 }
 0x454   : > { %v838_v8 = vpop.f32.mrf.mxu3 }
 0x455   : > { %v839_v10 = vadd.f32 %v838_v8, %v4832_v3 }
 0x456   : > { %v790_v11 = vpop.f32.mrf.mxu1 }
 0x457   : > { %v791_v12 = vadd.f32 %v790_v11, %v4832_v3  ;;  %v862_v13 = vpop.f32.mrf.mxu0  ;;  %v872_v14 = vsel %vm774_vm9, %v839_v10, -inf }
 0x458   : > { %v863_v15 = vadd.f32 %v862_v13, %v4832_v3  ;;  %873 = vmax.xlane.f32.xlu0 %v872_v14 }
 0x459   : > { %v866_v16 = vsel %vm774_vm9, %v791_v12, -inf }
 0x45a   : > { %v875_v17 = vsel %vm774_vm9, %v863_v15, -inf  ;;  %867 = vmax.xlane.f32.xlu1 %v866_v16 }
 0x45b   : > { %876 = vmax.xlane.f32.xlu2 %v875_v17 }
 0x45c   : > { %v840_v18 = vpop.f32.mrf.mxu3 }
 0x45e   : > { %v792_v19 = vpop.f32.mrf.mxu1 }
 0x45f   : > { %v864_v20 = vpop.f32.mrf.mxu0 }
 0x46c   : > { %1009 = vrot.lane.b32.xlu0 %v820_v45, %s4579_s14 }
 0x473   : > { %988 = vrot.lane.b32.xlu1 %v4808_v28, %s4579_s14 }
 0x4b5   : > { %v871_v21 = vpop.xlane.xlu2 %870 }
 0x4b6   : > { %v879_v22 = vsub.f32 %v815_v5, %v871_v21 }
 0x4b8   : > { %v884_v23 = vmul.f32 1.442695, %v879_v22 }
 0x4ba   : > { %4414 = vpow2.f32 %v884_v23 }
 0x4c0   : > { %v4415_v24 = vpop.eup %4414 }
 0x4c1   : > { %v893_v25 = vsel %vm774_vm9, %v4415_v24, 0.0 }
 0x4c2   : > { %894 = vadd.xlane.f32.xlu2 %v893_v25 }
 0x4cb   : > { %v874_v27 = vpop.xlane.xlu0 %873 }
 0x4cc   : > { %v880_v34 = vsub.f32 %v839_v10, %v874_v27 }
 0x4cd   : > { %v868_v26 = vpop.xlane.xlu1 %867 }
 0x4ce   : > { %v877_v29 = vpop.xlane.xlu2 %876  ;;  %v878_v31 = vsub.f32 %v791_v12, %v868_v26  ;;  %v886_v38 = vmul.f32 1.442695, %v880_v34 }
 0x4cf   : > { %v881_v32 = vsub.f32 %v863_v15, %v877_v29 }
 0x4d0   : > { %v882_v33 = vmul.f32 1.442695, %v878_v31 }
 0x4d1   : > { %v888_v35 = vmul.f32 1.442695, %v881_v32 }
 0x4d2   : > { %4416 = vpow2.f32 %v882_v33 }
 0x4d3   : > { %4418 = vpow2.f32 %v888_v35 }
 0x4d4   : > { %4420 = vpow2.f32 %v886_v38 }
 0x4d8   : > { %v4846_v28 = vpop.eup %4416 }
 0x4d9   : > { %v4848_v39 = vpop.eup %4418  ;;  %v890_v40 = vsel %vm774_vm9, %v4846_v28, 0.0 }
 0x4da   : > { %v899_v41 = vsel %vm774_vm9, %v4848_v39, 0.0  ;;  %891 = vadd.xlane.f32.xlu0 %v890_v40  ;;  %v4854_v43 = vpop.eup %4420 }
 0x4db   : > { %900 = vadd.xlane.f32.xlu2 %v899_v41  ;;  %v896_v45 = vsel %vm774_vm9, %v4854_v43, 0.0 }
 0x4de   : > { %v1010_v42 = vpop.permute.xlu0 %1009 }
 0x4df   : > { %v1015_v44 = vsel %vm971_vm11, %v1010_v42, 0 }
 0x4e0   : > { %1024 = vmatpush.bf16.msra.mxu3 %v1015_v44 }
 0x4e3   : > { %897 = vadd.xlane.f32.xlu2 %v896_v45  ;;  %v1056_v45 = vld [vmem:[%s5644_s6 + $0x4] sm:$0xf] }
 0x4e5   : > { %v989_v46 = vpop.permute.xlu1 %988 }
 0x4e6   : > { %v994_v47 = vsel %vm971_vm11, %v989_v46, 0  ;;  %v1082_v46 = vsel %vm971_vm11, %v1056_v45, 0 }
 0x4e7   : > { %1003 = vmatpush.bf16.msrb.mxu2 %v994_v47  ;;  %v1055_v47 = vld [vmem:[%s5644_s6] sm:$0xf] }
 0x4eb   : > { %1091 = vmatpush.bf16.msra.mxu2 %v1082_v46  ;;  %v4283_v46 = vld [vmem:[%s5647_s9 + $0x38] sm:$0xff] }
 0x4ee   : > { %1030 = vrot.lane.b32.xlu0 %v4814_v37, %s4579_s14 }
 0x4fb   : > { %966 = vrot.lane.b32.xlu2 %v4812_v36, %s4579_s14 }
 0x535   : > { %v895_v48 = vpop.xlane.xlu2 %894 }
 0x536   : > { %4422 = vrcp.f32 %v895_v48  ;;  %v928_v53 = vand.u32 2147483648, %v895_v48  ;;  %v926_v55 = vand.u32 2147483647, %v895_v48  ;;  %vm922_vm13 = vweird.f32 %v895_v48 }
 0x538   : > { %v929_v57 = vor.u32 1.1754944e-38, %v928_v53  ;;  %vm927_vm15 = vcmp.eq.f32.partialorder %v926_v55, 8.507059e+37 }
 0x53c   : > { %v4423_v49 = vpop.eup %4422 }
 0x53d   : > { %v918_v51 = vmul.f32 %v4423_v49, %v895_v48  ;;  %vm923_vm12 = vweird.f32 %v4423_v49  ;;  %v1063_v48 = vsel %vm971_vm11, %v1055_v47, 0  ;;  %v4282_v47 = vld [vmem:[%s5647_s9 + $0x30] sm:$0xff] }
 0x53e   : > { %vm924_vm14 = vmor %vm922_vm13, %vm923_vm12 }
 0x53f   : > { %v919_v52 = vsub.f32 1.0, %v918_v51  ;;  %v1057_v51 = vld [vmem:[%s5644_s6 + $0x8] sm:$0xf] }
 0x541   : > { %v920_v54 = vmul.f32 %v4423_v49, %v919_v52  ;;  %v1101_v52 = vsel %vm971_vm11, %v1057_v51, 0  ;;  %v4278_v51 = vld [vmem:[%s5647_s9 + $0x10] sm:$0xff] }
 0x542   : > { %1110 = vmatpush.bf16.msrb.mxu3 %v1101_v52  ;;  %v4392_v52 = vld [vmem:[%s5646_s8] ss:$0 sm:$0xff] }
 0x543   : > { %v921_v56 = vadd.f32 %v4423_v49, %v920_v54 }
 0x545   : > { %v925_v58 = vsel %vm924_vm14, %v4423_v49, %v921_v56 }
 0x546   : > { %v930_v59 = vsel %vm927_vm15, %v929_v57, %v925_v58 }
 0x547   : > { %v931_v37 = vmul.f32 %v4415_v24, %v930_v59 }
 0x549   : > { %v963_v60 = vpack.c.bf16 %v931_v37, %v931_v37 }
 0x54b   : > { %3785 = vmatmul.msk.bf16.vlgmr.msrb.gmra.mxu2 %vm774_vm9, %v963_v60 }
 0x54c   : > { %1294 = vmatpush.bf16.msrb.mxu2 %v4283_v46 }
 0x54d   : > { %v892_v36 = vpop.xlane.xlu0 %891 }
 0x54e   : > { %v901_v61 = vpop.xlane.xlu2 %900  ;;  %4424 = vrcp.f32 %v892_v36  ;;  %v913_v6 = vand.u32 2147483648, %v892_v36  ;;  %v911_v10 = vand.u32 2147483647, %v892_v36  ;;  %vm907_vm4 = vweird.f32 %v892_v36 }
 0x54f   : > { %4426 = vrcp.f32 %v901_v61  ;;  %v958_v7 = vand.u32 2147483648, %v901_v61  ;;  %v956_v12 = vand.u32 2147483647, %v901_v61  ;;  %vm952_vm5 = vweird.f32 %v901_v61 }
 0x550   : > { %v914_v15 = vor.u32 1.1754944e-38, %v913_v6  ;;  %vm912_vm8 = vcmp.eq.f32.partialorder %v911_v10, 8.507059e+37  ;;  %1295 = vmatpush.bf16.msrb.mxu2 %v4282_v47 }
 0x551   : > { %v959_v17 = vor.u32 1.1754944e-38, %v958_v7  ;;  %vm957_vm10 = vcmp.eq.f32.partialorder %v956_v12, 8.507059e+37 }
 0x554   : > { %v4425_v62 = vpop.eup %4424 }
 0x555   : > { %v4427_v63 = vpop.eup %4426  ;;  %v903_v0 = vmul.f32 %v4425_v62, %v892_v36  ;;  %vm908_vm2 = vweird.f32 %v4425_v62 }
 0x556   : > { %v948_v1 = vmul.f32 %v4427_v63, %v901_v61  ;;  %v898_v2 = vpop.xlane.xlu2 %897  ;;  %vm953_vm3 = vweird.f32 %v4427_v63  ;;  %vm909_vm6 = vmor %vm907_vm4, %vm908_vm2 }
 0x557   : > { %v904_v4 = vsub.f32 1.0, %v903_v0  ;;  %4428 = vrcp.f32 %v898_v2  ;;  %vm954_vm7 = vmor %vm952_vm5, %vm953_vm3  ;;  %v943_v31 = vand.u32 2147483648, %v898_v2  ;;  %v941_v35 = vand.u32 2147483647, %v898_v2 }
 0x558   : > { %v949_v5 = vsub.f32 1.0, %v948_v1  ;;  %vm937_vm13 = vweird.f32 %v898_v2 }
 0x559   : > { %v905_v8 = vmul.f32 %v4425_v62, %v904_v4  ;;  %vm942_vm15 = vcmp.eq.f32.partialorder %v941_v35, 8.507059e+37 }
 0x55a   : > { %v950_v11 = vmul.f32 %v4427_v63, %v949_v5 }
 0x55b   : > { %v906_v13 = vadd.f32 %v4425_v62, %v905_v8 }
 0x55c   : > { %v951_v14 = vadd.f32 %v4427_v63, %v950_v11 }
 0x55d   : > { %v4429_v16 = vpop.eup %4428  ;;  %v910_v18 = vsel %vm909_vm6, %v4425_v62, %v906_v13 }
 0x55e   : > { %v955_v19 = vsel %vm954_vm7, %v4427_v63, %v951_v14  ;;  %v915_v20 = vsel %vm912_vm8, %v914_v15, %v910_v18  ;;  %v933_v21 = vmul.f32 %v4429_v16, %v898_v2  ;;  %v967_v22 = vpop.permute.xlu2 %966  ;;  %vm938_vm12 = vweird.f32 %v4429_v16 }
 0x55f   : > { %v960_v23 = vsel %vm957_vm10, %v959_v17, %v955_v19  ;;  %v916_v24 = vmul.f32 %v4846_v28, %v915_v20  ;;  %v973_v25 = vsel %vm971_vm11, %v967_v22, 0  ;;  %vm939_vm14 = vmor %vm937_vm13, %vm938_vm12  ;;  %v944_v28 = vor.u32 1.1754944e-38, %v943_v31 }
 0x560   : > { %v961_v26 = vmul.f32 %v4848_v39, %v960_v23  ;;  %v934_v27 = vsub.f32 1.0, %v933_v21  ;;  %982 = vmatpush.bf16.msrb.mxu1 %v973_v25  ;;  %v1031_v29 = vpop.permute.xlu0 %1030  ;;  %v1143_v15 = vperm.slane %v4791_v9, 4  ;;  %v4274_v25 = vld [vmem:[%s5645_s7] sm:$0xff] }
 0x561   : > { %v1036_v32 = vsel %vm971_vm11, %v1031_v29, 0  ;;  %v962_v33 = vpack.c.bf16 %v916_v24, %v916_v24 }
 0x562   : > { %v935_v34 = vmul.f32 %v4429_v16, %v934_v27  ;;  %1045 = vmatpush.bf16.msra.mxu0 %v1036_v32  ;;  %v965_v38 = vpack.c.bf16 %v961_v26, %v961_v26 }
 0x563   : > { %3784 = vmatmul.msk.bf16.vlgmr.msrb.gmra.mxu1 %vm774_vm9, %v962_v33 }
 0x564   : > { %v936_v40 = vadd.f32 %v4429_v16, %v935_v34  ;;  %1072 = vmatpush.bf16.msra.mxu1 %v1063_v48  ;;  %v4281_v48 = vld [vmem:[%s5647_s9 + $0x28] sm:$0xff] }
 0x565   : > { %3787 = vmatmul.msk.bf16.vlgmr.msra.gmra.mxu0 %vm774_vm9, %v965_v38  ;;  %1296 = vmatpush.bf16.msrb.mxu2 %v4281_v48  ;;  %v4394_v48 = vld [vmem:[%s5643_s5 + $0x6] ss:$0 sm:$0xff] }
 0x566   : > { %v940_v39 = vsel %vm939_vm14, %v4429_v16, %v936_v40  ;;  %v1167_v40 = vperm.slane %v4791_v9, 2 }
 0x567   : > { %v945_v41 = vsel %vm942_vm15, %v944_v28, %v940_v39 }
 0x568   : > { %v946_v42 = vmul.f32 %v4854_v43, %v945_v41  ;;  %v1058_v43 = vld [vmem:[%s5644_s6 + $0xc] sm:$0xf]  ;;  %v1169_v41 = vperm.slane %v4791_v9, 3 }
 0x569   : > { %v1120_v49 = vsel %vm971_vm11, %v1058_v43, 0  ;;  %v4280_v43 = vld [vmem:[%s5647_s9 + $0x20] sm:$0xff] }
 0x56a   : > { %v964_v44 = vpack.c.bf16 %v946_v42, %v946_v42  ;;  %1129 = vmatpush.bf16.msrb.mxu0 %v1120_v49  ;;  %1297 = vmatpush.bf16.msrb.mxu2 %v4280_v43  ;;  %v4279_v49 = vld [vmem:[%s5647_s9 + $0x18] sm:$0xff] }
 0x56c   : > { %3786 = vmatmul.msk.bf16.vlgmr.msra.gmra.mxu3 %vm774_vm9, %v964_v44 }
 0x56e   : > { %1298 = vmatpush.bf16.msrb.mxu2 %v4279_v49 }
 0x572   : > { %1299 = vmatpush.bf16.msrb.mxu2 %v4278_v51 }
 0x5ce   : > { %v1005_v53 = vpop.f32.mrf.mxu2 }
 0x5cf   : > { %v1052_v54 = vpack.c.bf16 %v1005_v53, %v1005_v53  ;;  %v4277_v53 = vld [vmem:[%s5647_s9 + $0x8] sm:$0xff] }
 0x5d0   : > { %1300 = vmatpush.bf16.msrb.mxu2 %v4277_v53 }
 0x5d1   : > { %3789 = vmatmul.msk.bf16.vlgmr.msra.gmra.mxu2 %vm774_vm9, %v1052_v54 }
 0x5d6   : > { %v1007_v55 = vpop.f32.mrf.mxu2 }
 0x5e0   : > { %v984_v56 = vpop.f32.mrf.mxu1 }
 0x5e1   : > { %v1051_v57 = vpack.c.bf16 %v984_v56, %v984_v56  ;;  %v4276_v56 = vld [vmem:[%s5647_s9] sm:$0xff] }
 0x5e2   : > { %v1047_v58 = vpop.f32.mrf.mxu0  ;;  %1301 = vmatpush.bf16.msrb.mxu2 %v4276_v56 }
 0x5e3   : > { %v1054_v59 = vpack.c.bf16 %v1047_v58, %v1047_v58  ;;  %3788 = vmatmul.msk.bf16.vlgmr.msra.gmra.mxu1 %vm774_vm9, %v1051_v57 }
 0x5e5   : > { %3791 = vmatmul.msk.bf16.vlgmr.msrb.gmra.mxu0 %vm774_vm9, %v1054_v59 }
 0x5e8   : > { %v986_v37 = vpop.f32.mrf.mxu1 }
 0x5ea   : > { %v1049_v60 = vpop.f32.mrf.mxu0 }
 0x5ef   : > { %v1026_v36 = vpop.f32.mrf.mxu3 }
 0x5f0   : > { %v1053_v61 = vpack.c.bf16 %v1026_v36, %v1026_v36 }
 0x5f2   : > { %3790 = vmatmul.msk.bf16.vlgmr.msrb.gmra.mxu3 %vm774_vm9, %v1053_v61 }
 0x5f7   : > { %v1028_v62 = vpop.f32.mrf.mxu3 }
 0x654   : > { %v1093_v63 = vpop.f32.mrf.mxu2 }
 0x655   : > { %v1136_v7 = vsel %vm556_vm1, %v1093_v63, 0.0 }
 0x65c   : > { %v1095_v0 = vpop.f32.mrf.mxu2 }
 0x660   : > { %v1074_v1 = vpop.f32.mrf.mxu1 }
 0x661   : > { %v1135_v6 = vsel %vm556_vm1, %v1074_v1, 0.0 }
 0x662   : > { %v1131_v2 = vpop.f32.mrf.mxu0  ;;  %v1137_v8 = vadd.f32 %v1136_v7, %v1135_v6 }
 0x663   : > { %v1140_v13 = vsel %vm556_vm1, %v1131_v2, 0.0 }
 0x668   : > { %v1076_v4 = vpop.f32.mrf.mxu1 }
 0x66a   : > { %v1133_v5 = vpop.f32.mrf.mxu0 }
 0x675   : > { %v1112_v10 = vpop.f32.mrf.mxu3 }
 0x676   : > { %v1138_v11 = vsel %vm556_vm1, %v1112_v10, 0.0  ;;  %v1308_v10 = vperm.slane %v4791_v9, 5  ;;  %v4285_v9 = vld [vmem:[%s5642_s4 + $0x48] sm:$0xff] }
 0x677   : > { %v1139_v12 = vadd.f32 %v1138_v11, %v1137_v8  ;;  %1394 = vmatpush.bf16.msra.mxu3 %v4285_v9 }
 0x679   : > { %v1141_v14 = vadd.f32 %v1140_v13, %v1139_v12 }
 0x67b   : > { %v1142_v16 = vadd.f32 %v1141_v14, %v4756_v50  ;;  %v4275_v50 = vld [vmem:[%s5645_s7 + $0x8] sm:$0xff] }
 0x67c   : > { %1201 = vmatpush.bf16.msrb.mxu1 %v4275_v50  ;;  %v4288_v50 = vld [vmem:[%s5642_s4 + $0x60] sm:$0xff] }
 0x67d   : > { %v1114_v17 = vpop.f32.mrf.mxu3  ;;  %v4899_v18 = vadd.f32 %v1143_v15, %v1142_v16 }
 0x67f   : > { %v1145_v19 = vsel %vm556_vm1, %v4899_v18, 0.0 }
 0x680   : > { %1146 = vadd.xlane.f32.xlu1 %v1145_v19  ;;  %1202 = vmatpush.bf16.msrb.mxu1 %v4274_v25 }
 0x6f3   : > { %v1147_v20 = vpop.xlane.xlu1 %1146 }
 0x6f4   : > { %v1148_v21 = vmul.f32 %v1147_v20, %v4745_v30 }
 0x6f6   : > { %v1149_v22 = vsub.f32 %v4899_v18, %v1148_v21 }
 0x6f8   : > { %v1150_v23 = vmul.f32 %v1149_v22, %v1149_v22 }
 0x6fa   : > { %v1151_v24 = vsel %vm556_vm1, %v1150_v23, 0.0  ;;  %v4284_v23 = vld [vmem:[%s5642_s4 + $0x40] sm:$0xff] }
 0x6fb   : > { %1152 = vadd.xlane.f32.xlu2 %v1151_v24  ;;  %v4286_v24 = vld [vmem:[%s5642_s4 + $0x50] sm:$0xff]  ;;  %1395 = vmatpush.bf16.msra.mxu3 %v4284_v23 }
 0x76e   : > { %v1153_v26 = vpop.xlane.xlu2 %1152 }
 0x76f   : > { %v1154_v27 = vmul.f32 %v1153_v26, %v4745_v30  ;;  %v4291_v26 = vld [vmem:[%s5642_s4 + $0x78] sm:$0xff] }
 0x770   : > { %1469 = vmatpush.bf16.msrb.mxu3 %v4291_v26 }
 0x771   : > { %v1155_v29 = vadd.f32 1e-05, %v1154_v27 }
 0x773   : > { %4430 = vrsqrt.f32 %v1155_v29  ;;  %vm1162_vm3 = vweird.f32 %v1155_v29 }
 0x779   : > { %v4431_v31 = vpop.eup %4430 }
 0x77a   : > { %v1157_v32 = vmul.f32 %v4431_v31, %v1155_v29  ;;  %vm1163_vm2 = vweird.f32 %v4431_v31  ;;  %v4290_v29 = vld [vmem:[%s5642_s4 + $0x70] sm:$0xff] }
 0x77b   : > { %vm1164_vm4 = vmor %vm1162_vm3, %vm1163_vm2  ;;  %1470 = vmatpush.bf16.msrb.mxu3 %v4290_v29 }
 0x77c   : > { %v1158_v33 = vmul.f32 %v4431_v31, %v1157_v32 }
 0x77e   : > { %v1159_v34 = vmul.f32 0.5, %v1158_v33 }
 0x780   : > { %v1160_v35 = vsub.f32 1.5, %v1159_v34 }
 0x782   : > { %v1161_v38 = vmul.f32 %v4431_v31, %v1160_v35 }
 0x784   : > { %v1165_v28 = vsel %vm1164_vm4, %v4431_v31, %v1161_v38  ;;  %v4980_v38 = vld [vmem:[%s5648_s10 + $0x8] sm:$0xff] }
 0x785   : > { %v1166_v39 = vmul.f32 %v1165_v28, %v1149_v22  ;;  %v4289_v22 = vld [vmem:[%s5642_s4 + $0x68] sm:$0xff] }
 0x786   : > { %1444 = vmatpush.bf16.msra.mxu1 %v4289_v22 }
 0x787   : > { %v1168_v42 = vmul.f32 %v1167_v40, %v1166_v39  ;;  %v1334_v39 = vperm.slane %v4980_v38, 0 }
 0x789   : > { %v1170_v44 = vadd.f32 %v1169_v41, %v1168_v42 }
 0x78a   : > { %1445 = vmatpush.bf16.msra.mxu1 %v4288_v50 }
 0x78b   : > { %v1171_v45 = vpack.c.bf16 %v1170_v44, %v1170_v44  ;;  %v1336_v44 = vperm.slane %v4980_v38, 1 }
 0x78d   : > { %3800 = vmatmul.msk.bf16.vlgmr.msrb.gmra.mxu1 %vm556_vm1, %v1171_v45 }
 0x80a   : > { %v1204_v54 = vpop.f32.mrf.mxu1 }
 0x80b   : > { %v1205_v55 = vadd.f32 %v4392_v52, %v1204_v54  ;;  %v4395_v52 = vld [vmem:[%s5643_s5 + $0x4] ss:$0 sm:$0xff] }
 0x80d   : > { %v3801_v57 = vmul.f32 -1.702, %v1205_v55 }
 0x80f   : > { %v1210_v58 = vmul.f32 1.442695, %v3801_v57 }
 0x811   : > { %4432 = vpow2.f32 %v1210_v58 }
 0x812   : > { %v1206_v59 = vpop.f32.mrf.mxu1 }
 0x817   : > { %v4433_v37 = vpop.eup %4432 }
 0x818   : > { %v1212_v60 = vadd.f32 1.0, %v4433_v37 }
 0x81a   : > { %4434 = vrcp.f32 %v1212_v60  ;;  %v1224_v63 = vand.u32 2147483648, %v1212_v60  ;;  %v1222_v1 = vand.u32 2147483647, %v1212_v60  ;;  %vm1218_vm6 = vweird.f32 %v1212_v60 }
 0x81c   : > { %v1225_v4 = vor.u32 1.1754944e-38, %v1224_v63  ;;  %vm1223_vm8 = vcmp.eq.f32.partialorder %v1222_v1, 8.507059e+37  ;;  %v4393_v63 = vld [vmem:[%s5643_s5 + $0x5] ss:$0 sm:$0xff] }
 0x820   : > { %v4435_v36 = vpop.eup %4434 }
 0x821   : > { %v1214_v61 = vmul.f32 %v4435_v36, %v1212_v60  ;;  %vm1219_vm5 = vweird.f32 %v4435_v36 }
 0x822   : > { %vm1220_vm7 = vmor %vm1218_vm6, %vm1219_vm5 }
 0x823   : > { %v1215_v62 = vsub.f32 1.0, %v1214_v61 }
 0x825   : > { %v1216_v0 = vmul.f32 %v4435_v36, %v1215_v62  ;;  %v4396_v62 = vld [vmem:[%s5643_s5 + $0x7] ss:$0 sm:$0xff] }
 0x827   : > { %v1217_v2 = vadd.f32 %v4435_v36, %v1216_v0 }
 0x829   : > { %v1221_v5 = vsel %vm1220_vm7, %v4435_v36, %v1217_v2 }
 0x82a   : > { %v1226_v6 = vsel %vm1223_vm8, %v1225_v4, %v1221_v5 }
 0x82b   : > { %v1228_v7 = vmul.f32 %v1226_v6, %v1205_v55 }
 0x82d   : > { %v1229_v8 = vpack.c.bf16 %v1228_v7, %v1228_v7 }
 0x82f   : > { %1302 = vmatmul.bf16.vlgmr.msrb.gmra.mxu2 %v1229_v8 }
 0x8b2   : > { %v1303_v11 = vpop.f32.mrf.mxu2 }
 0x8b3   : > { %v1307_v12 = vadd.f32 %v1303_v11, %v4899_v18  ;;  %v4287_v18 = vld [vmem:[%s5642_s4 + $0x58] sm:$0xff] }
 0x8b4   : > { %1419 = vmatpush.bf16.msra.mxu0 %v4287_v18 }
 0x8b5   : > { %v4945_v13 = vadd.f32 %v1308_v10, %v1307_v12 }
 0x8b7   : > { %v1312_v14 = vsel %vm556_vm1, %v4945_v13, 0.0 }
 0x8b8   : > { %1313 = vadd.xlane.f32.xlu0 %v1312_v14  ;;  %1420 = vmatpush.bf16.msra.mxu0 %v4286_v24 }
 0x8ba   : > { %v1305_v15 = vpop.f32.mrf.mxu2 }
 0x92b   : > { %v1314_v16 = vpop.xlane.xlu0 %1313 }
 0x92c   : > { %v1315_v17 = vmul.f32 %v1314_v16, %v4745_v30 }
 0x92e   : > { %v1316_v19 = vsub.f32 %v4945_v13, %v1315_v17 }
 0x930   : > { %v1317_v20 = vmul.f32 %v1316_v19, %v1316_v19 }
 0x932   : > { %v1318_v21 = vsel %vm556_vm1, %v1317_v20, 0.0 }
 0x933   : > { %1319 = vadd.xlane.f32.xlu1 %v1318_v21 }
 0x9a6   : > { %v1320_v25 = vpop.xlane.xlu1 %1319 }
 0x9a7   : > { %v1321_v27 = vmul.f32 %v1320_v25, %v4745_v30 }
 0x9a9   : > { %v1322_v31 = vadd.f32 1e-05, %v1321_v27 }
 0x9ab   : > { %4436 = vrsqrt.f32 %v1322_v31  ;;  %vm1329_vm12 = vweird.f32 %v1322_v31 }
 0x9b1   : > { %v4437_v32 = vpop.eup %4436 }
 0x9b2   : > { %v1324_v33 = vmul.f32 %v4437_v32, %v1322_v31  ;;  %vm1330_vm10 = vweird.f32 %v4437_v32 }
 0x9b3   : > { %vm1331_vm13 = vmor %vm1329_vm12, %vm1330_vm10 }
 0x9b4   : > { %v1325_v34 = vmul.f32 %v4437_v32, %v1324_v33 }
 0x9b6   : > { %v1326_v35 = vmul.f32 0.5, %v1325_v34 }
 0x9b8   : > { %v1327_v40 = vsub.f32 1.5, %v1326_v35 }
 0x9ba   : > { %v1328_v28 = vmul.f32 %v4437_v32, %v1327_v40 }
 0x9bc   : > { %v1332_v41 = vsel %vm1331_vm13, %v4437_v32, %v1328_v28 }
 0x9bd   : > { %v1333_v42 = vmul.f32 %v1332_v41, %v1316_v19 }
 0x9bf   : > { %v1335_v45 = vmul.f32 %v1334_v39, %v1333_v42 }
 0x9c1   : > { %v1337_v46 = vadd.f32 %v1336_v44, %v1335_v45 }
 0x9c3   : > { %v1338_v47 = vpack.c.bf16 %v1337_v46, %v1337_v46 }
 0x9c5   : > { %3863 = vmatmul.msk.bf16.vlgmr.msra.gmra.mxu3 %vm556_vm1, %v1338_v47  ;;  %3872 = vmatmul.msk.bf16.vlgmr.msra.gmra.mxu0 %vm556_vm1, %v1338_v47 }
 0x9c6   : > { %3881 = vmatmul.msk.bf16.vlgmr.msra.gmra.mxu1 %vm556_vm1, %v1338_v47 }
 0x9d5   : > { %3890 = vmatmul.msk.bf16.vlgmr.msrb.gmra.mxu3 %vm556_vm1, %v1338_v47 }
 0xa42   : > { %v1422_v43 = vpop.f32.mrf.mxu0 }
 0xa43   : > { %v1447_v49 = vpop.f32.mrf.mxu1  ;;  %v1423_v2 = vadd.f32 %v4393_v63, %v1422_v43 }
 0xa44   : > { %v1448_v51 = vadd.f32 %v4394_v48, %v1447_v49 }
 0xa45   : > { %v1485_v6 = vpack.c.bf16 %v1423_v2, %v1423_v2  ;;  %v1477_v25 = vmul.f32 0.35355338, %v1423_v2 }
 0xa46   : > { %v1486_v53 = vpack.c.bf16 %v1448_v51, %v1448_v51  ;;  %v1478_v15 = vmul.f32 0.35355338, %v1448_v51 }
 0xa47   : > { %v1513_v10 = vunpack.c.l.b16 %v1485_v6  ;;  %v1481_v26 = vpack.c.bf16 %v1477_v25, %v1477_v25 }
 0xa48   : > { %v1537_v54 = vunpack.c.l.b16 %v1486_v53  ;;  %v1397_v55 = vpop.f32.mrf.mxu3  ;;  %v1482_v16 = vpack.c.bf16 %v1478_v15, %v1478_v15 }
 0xa49   : > { %v1398_v56 = vadd.f32 %v4395_v52, %v1397_v55  ;;  %v5009_v11 = vpack.c.b16 %v1513_v10, %v1513_v10 }
 0xa4a   : > { %v1538_v57 = vpack.c.b16 %v1537_v54, %v1537_v54  ;;  %v1424_v58 = vpop.f32.mrf.mxu0 }
 0xa4b   : > { %v1484_v59 = vpack.c.bf16 %v1398_v56, %v1398_v56  ;;  %v1449_v37 = vpop.f32.mrf.mxu1  ;;  %v1476_v20 = vmul.f32 0.35355338, %v1398_v56 }
 0xa4c   : > { %1539 = vrot.lane.b32.xlu2 %v1538_v57, %s4577_s15 }
 0xa4d   : > { %v1489_v60 = vunpack.c.l.b16 %v1484_v59  ;;  %v1480_v21 = vpack.c.bf16 %v1476_v20, %v1476_v20 }
 0xa4f   : > { %v4995_v36 = vpack.c.b16 %v1489_v60, %v1489_v60 }
 0xa50   : > { %v1399_v61 = vpop.f32.mrf.mxu3 }
 0xa51   : > { %1491 = vrot.lane.b32.xlu1 %v4995_v36, %s4577_s15 }
 0xa58   : > { %v1472_v0 = vpop.f32.mrf.mxu3 }
 0xa59   : > { %v1473_v1 = vadd.f32 %v4396_v62, %v1472_v0 }
 0xa5b   : > { %v1487_v4 = vpack.c.bf16 %v1473_v1, %v1473_v1  ;;  %v1479_v22 = vmul.f32 0.35355338, %v1473_v1 }
 0xa5d   : > { %v1561_v5 = vunpack.c.l.b16 %v1487_v4  ;;  %v1483_v23 = vpack.c.bf16 %v1479_v22, %v1479_v22 }
 0xa5f   : > { %v5005_v7 = vpack.c.b16 %v1561_v5, %v1561_v5 }
 0xa60   : > { %v1474_v8 = vpop.f32.mrf.mxu3 }
 0xa61   : > { %1563 = vrot.lane.b32.xlu0 %v5005_v7, %s4577_s15 }
 0xa69   : > { %1515 = vrot.lane.b32.xlu0 %v5009_v11, %s4577_s15 }
 0xaa6   : > { %v1540_v12 = vpop.permute.xlu2 %1539 }
 0xaa7   : > { %v1545_v14 = vsel %vm774_vm9, %v1540_v12, 0 }
 0xaa8   : > { %1554 = vmatpush.bf16.xpose.msra.mxu2 %v1545_v14 }
 0xaaf   : > { %3893 = vmatmul.msk.bf16.vlgmr.msra.gmra.mxu2 %vm774_vm9, %v1482_v16 }
 0xac3   : > { %v1492_v17 = vpop.permute.xlu1 %1491 }
 0xac4   : > { %v1497_v19 = vsel %vm774_vm9, %v1492_v17, 0 }
 0xac5   : > { %1506 = vmatpush.bf16.xpose.msrb.mxu0 %v1497_v19 }
 0xacc   : > { %3891 = vmatmul.msk.bf16.vlgmr.msrb.gmra.mxu0 %vm774_vm9, %v1480_v21 }
 0xad3   : > { %v1564_v9 = vpop.permute.xlu0 %1563 }
 0xad4   : > { %v1569_v18 = vsel %vm774_vm9, %v1564_v9, 0 }
 0xad5   : > { %1578 = vmatpush.bf16.xpose.msra.mxu3 %v1569_v18 }
 0xadb   : > { %v1516_v24 = vpop.permute.xlu0 %1515 }
 0xadc   : > { %v1521_v50 = vsel %vm774_vm9, %v1516_v24, 0  ;;  %3894 = vmatmul.msk.bf16.vlgmr.msra.gmra.mxu3 %vm774_vm9, %v1483_v23 }
 0xadd   : > { %1530 = vmatpush.bf16.xpose.msrb.mxu1 %v1521_v50 }
 0xae4   : > { %3892 = vmatmul.msk.bf16.vlgmr.msrb.gmra.mxu1 %vm774_vm9, %v1481_v26 }
 0xb32   : > { %v1556_v27 = vpop.f32.mrf.mxu2 }
 0xb33   : > { %v1557_v29 = vadd.f32 %v1556_v27, %v4832_v3 }
 0xb35   : > { %v1590_v31 = vsel %vm774_vm9, %v1557_v29, -inf }
 0xb36   : > { %1591 = vmax.xlane.f32.xlu2 %v1590_v31 }
 0xb3a   : > { %v1558_v32 = vpop.f32.mrf.mxu2 }
 0xb49   : > { %v1508_v33 = vpop.f32.mrf.mxu0 }
 0xb4a   : > { %v1509_v34 = vadd.f32 %v1508_v33, %v4832_v3 }
 0xb4c   : > { %v1584_v35 = vsel %vm774_vm9, %v1509_v34, -inf }
 0xb4d   : > { %1585 = vmax.xlane.f32.xlu0 %v1584_v35 }
 0xb51   : > { %v1510_v40 = vpop.f32.mrf.mxu0 }
 0xb5f   : > { %v1580_v28 = vpop.f32.mrf.mxu3 }
 0xb60   : > { %v1581_v39 = vadd.f32 %v1580_v28, %v4832_v3 }
 0xb61   : > { %v1532_v41 = vpop.f32.mrf.mxu1  ;;  %1726 = vrot.lane.b32.xlu0 %v1538_v57, %s4579_s14 }
 0xb62   : > { %v1533_v42 = vadd.f32 %v1532_v41, %v4832_v3  ;;  %v1593_v44 = vsel %vm774_vm9, %v1581_v39, -inf }
 0xb63   : > { %1594 = vmax.xlane.f32.xlu1 %v1593_v44 }
 0xb64   : > { %v1587_v45 = vsel %vm774_vm9, %v1533_v42, -inf }
 0xb65   : > { %1588 = vmax.xlane.f32.xlu2 %v1587_v45 }
 0xb67   : > { %v1582_v46 = vpop.f32.mrf.mxu3 }
 0xb69   : > { %v1534_v47 = vpop.f32.mrf.mxu1 }
 0xba9   : > { %v1592_v53 = vpop.xlane.xlu2 %1591 }
 0xbaa   : > { %v1598_v60 = vsub.f32 %v1557_v29, %v1592_v53 }
 0xbac   : > { %v1604_v62 = vmul.f32 1.442695, %v1598_v60 }
 0xbc0   : > { %v1586_v48 = vpop.xlane.xlu0 %1585 }
 0xbc1   : > { %v1596_v43 = vsub.f32 %v1509_v34, %v1586_v48 }
 0xbc3   : > { %v1600_v49 = vmul.f32 1.442695, %v1596_v43 }
 0xbc5   : > { %4438 = vpow2.f32 %v1600_v49 }
 0xbcb   : > { %v5030_v51 = vpop.eup %4438 }
 0xbcc   : > { %v1608_v52 = vsel %vm774_vm9, %v5030_v51, 0.0 }
 0xbcd   : > { %1609 = vadd.xlane.f32.xlu2 %v1608_v52 }
 0xbd3   : > { %v1727_v54 = vpop.permute.xlu0 %1726 }
 0xbd4   : > { %v1732_v55 = vsel %vm971_vm11, %v1727_v54, 0 }
 0xbd5   : > { %1741 = vmatpush.bf16.msrb.mxu2 %v1732_v55 }
 0xbd6   : > { %v1595_v56 = vpop.xlane.xlu1 %1594 }
 0xbd7   : > { %v1599_v57 = vsub.f32 %v1581_v39, %v1595_v56 }
 0xbd8   : > { %v1589_v58 = vpop.xlane.xlu2 %1588 }
 0xbd9   : > { %v1606_v59 = vmul.f32 1.442695, %v1599_v57  ;;  %v1597_v37 = vsub.f32 %v1533_v42, %v1589_v58 }
 0xbdb   : > { %4440 = vpow2.f32 %v1606_v59  ;;  %v1602_v61 = vmul.f32 1.442695, %v1597_v37 }
 0xbdd   : > { %4442 = vpow2.f32 %v1602_v61 }
 0xbde   : > { %4444 = vpow2.f32 %v1604_v62 }
 0xbe1   : > { %v4441_v63 = vpop.eup %4440 }
 0xbe2   : > { %v1617_v0 = vsel %vm774_vm9, %v4441_v63, 0.0 }
 0xbe3   : > { %v4443_v1 = vpop.eup %4442  ;;  %1618 = vadd.xlane.f32.xlu0 %v1617_v0 }
 0xbe4   : > { %v1611_v2 = vsel %vm774_vm9, %v4443_v1, 0.0  ;;  %v5039_v4 = vpop.eup %4444 }
 0xbe5   : > { %1747 = vrot.lane.b32.xlu2 %v5005_v7, %s4579_s14  ;;  %1612 = vadd.xlane.f32.xlu1 %v1611_v2  ;;  %v1614_v5 = vsel %vm774_vm9, %v5039_v4, 0.0 }
 0xbed   : > { %1615 = vadd.xlane.f32.xlu1 %v1614_v5 }
 0xbf7   : > { %1705 = vrot.lane.b32.xlu0 %v5009_v11, %s4579_s14 }
 0xc06   : > { %1684 = vrot.lane.b32.xlu1 %v4995_v36, %s4579_s14 }
 0xc40   : > { %v5047_v6 = vpop.xlane.xlu2 %1609 }
 0xc41   : > { %v1631_v54 = vand.u32 2147483648, %v5047_v6  ;;  %vm1625_vm13 = vweird.f32 %v5047_v6  ;;  %v1629_v56 = vand.u32 2147483647, %v5047_v6 }
 0xc43   : > { %v1632_v60 = vor.u32 1.1754944e-38, %v1631_v54 }
 0xc48   : > { %v1748_v8 = vpop.permute.xlu2 %1747 }
 0xc49   : > { %v1753_v10 = vsel %vm971_vm11, %v1748_v8, 0  ;;  %v3902_v8 = vld [vmem:[%s5644_s6 + $0x1c] sm:$0xf] }
 0xc4a   : > { %1762 = vmatpush.bf16.msrb.mxu3 %v1753_v10  ;;  %v3901_v10 = vld [vmem:[%s5644_s6 + $0x18] sm:$0xf] }
 0xc56   : > { %v1619_v7 = vpop.xlane.xlu0 %1618 }
 0xc57   : > { %4446 = vrcp.f32 %v1619_v7  ;;  %v1676_v21 = vand.u32 2147483648, %v1619_v7  ;;  %v1674_v18 = vand.u32 2147483647, %v1619_v7  ;;  %vm1670_vm15 = vweird.f32 %v1619_v7 }
 0xc58   : > { %4448 = vrcp.f32 %v5047_v6  ;;  %v1613_v12 = vpop.xlane.xlu1 %1612 }
 0xc59   : > { %4450 = vrcp.f32 %v1613_v12  ;;  %v1646_v23 = vand.u32 2147483648, %v1613_v12  ;;  %v1644_v25 = vand.u32 2147483647, %v1613_v12  ;;  %v1677_v27 = vor.u32 1.1754944e-38, %v1676_v21 }
 0xc5a   : > { %vm1675_vm4 = vcmp.eq.f32.partialorder %v1674_v18, 8.507059e+37  ;;  %vm1640_vm5 = vweird.f32 %v1613_v12 }
 0xc5b   : > { %v1647_v34 = vor.u32 1.1754944e-38, %v1646_v23  ;;  %vm1645_vm7 = vcmp.eq.f32.partialorder %v1644_v25, 8.507059e+37 }
 0xc5d   : > { %v4447_v14 = vpop.eup %4446 }
 0xc5e   : > { %v5051_v15 = vpop.eup %4448  ;;  %v1666_v16 = vmul.f32 %v4447_v14, %v1619_v7  ;;  %vm1671_vm14 = vweird.f32 %v4447_v14  ;;  %v1819_v7 = vsel %vm971_vm11, %v3901_v10, 0  ;;  %v4298_v10 = vld [vmem:[%s5647_s9 + $0x60] sm:$0xff] }
 0xc5f   : > { %v4451_v11 = vpop.eup %4450  ;;  %v1621_v20 = vmul.f32 %v5051_v15, %v5047_v6  ;;  %vm1672_vm3 = vmor %vm1670_vm15, %vm1671_vm14  ;;  %vm1626_vm10 = vweird.f32 %v5051_v15  ;;  %v3900_v6 = vld [vmem:[%s5644_s6 + $0x14] sm:$0xf]  ;;  %1828 = vmatpush.bf16.msra.mxu2 %v1819_v7  ;;  %v4297_v7 = vld [vmem:[%s5647_s9 + $0x58] sm:$0xff] }
 0xc60   : > { %v1667_v17 = vsub.f32 1.0, %v1666_v16  ;;  %v1636_v19 = vmul.f32 %v4451_v11, %v1613_v12  ;;  %v1616_v36 = vpop.xlane.xlu1 %1615  ;;  %vm1641_vm2 = vweird.f32 %v4451_v11  ;;  %vm1627_vm15 = vmor %vm1625_vm13, %vm1626_vm10  ;;  %v3899_v12 = vld [vmem:[%s5644_s6 + $0x10] sm:$0xf] }
 0xc61   : > { %4452 = vrcp.f32 %v1616_v36  ;;  %v1622_v26 = vsub.f32 1.0, %v1621_v20  ;;  %vm1642_vm6 = vmor %vm1640_vm5, %vm1641_vm2  ;;  %v1661_v48 = vand.u32 2147483648, %v1616_v36  ;;  %v1659_v49 = vand.u32 2147483647, %v1616_v36 }
 0xc62   : > { %v1668_v9 = vmul.f32 %v4447_v14, %v1667_v17  ;;  %v1637_v22 = vsub.f32 1.0, %v1636_v19  ;;  %vm1655_vm12 = vweird.f32 %v1616_v36 }
 0xc63   : > { %v1623_v39 = vmul.f32 %v5051_v15, %v1622_v26  ;;  %v1662_v57 = vor.u32 1.1754944e-38, %v1661_v48  ;;  %vm1660_vm2 = vcmp.eq.f32.partialorder %v1659_v49, 8.507059e+37 }
 0xc64   : > { %v1669_v24 = vadd.f32 %v4447_v14, %v1668_v9  ;;  %v1638_v50 = vmul.f32 %v4451_v11, %v1637_v22 }
 0xc65   : > { %v1624_v53 = vadd.f32 %v5051_v15, %v1623_v39 }
 0xc66   : > { %v1673_v29 = vsel %vm1672_vm3, %v4447_v14, %v1669_v24  ;;  %v1639_v31 = vadd.f32 %v4451_v11, %v1638_v50  ;;  %vm1630_vm3 = vcmp.eq.f32.partialorder %v1629_v56, 8.507059e+37  ;;  %v1781_v14 = vsel %vm971_vm11, %v3899_v12, 0  ;;  %v4296_v12 = vld [vmem:[%s5647_s9 + $0x50] sm:$0xff] }
 0xc67   : > { %v4453_v32 = vpop.eup %4452  ;;  %v1678_v33 = vsel %vm1675_vm4, %v1677_v27, %v1673_v29  ;;  %v1628_v59 = vsel %vm1627_vm15, %v5051_v15, %v1624_v53  ;;  %v4292_v53 = vld [vmem:[%s5645_s7 + $0x10] sm:$0xff] }
 0xc68   : > { %v1679_v35 = vmul.f32 %v4441_v63, %v1678_v33  ;;  %v1643_v40 = vsel %vm1642_vm6, %v4451_v11, %v1639_v31  ;;  %v1651_v28 = vmul.f32 %v4453_v32, %v1616_v36  ;;  %vm1656_vm8 = vweird.f32 %v4453_v32 }
 0xc69   : > { %v1648_v41 = vsel %vm1645_vm7, %v1647_v34, %v1643_v40  ;;  %v1706_v42 = vpop.permute.xlu0 %1705  ;;  %vm1657_vm14 = vmor %vm1655_vm12, %vm1656_vm8  ;;  %v1633_v62 = vsel %vm1630_vm3, %v1632_v60, %v1628_v59 }
 0xc6a   : > { %v1649_v44 = vmul.f32 %v4443_v1, %v1648_v41  ;;  %v1652_v45 = vsub.f32 1.0, %v1651_v28  ;;  %v1711_v46 = vsel %vm971_vm11, %v1706_v42, 0  ;;  %v1683_v47 = vpack.c.bf16 %v1679_v35, %v1679_v35 }
 0xc6b   : > { %1720 = vmatpush.bf16.msra.mxu1 %v1711_v46  ;;  %v1634_v0 = vmul.f32 %v5030_v51, %v1633_v62  ;;  %v1838_v51 = vsel %vm971_vm11, %v3902_v8, 0  ;;  %v1861_v41 = vperm.slane %v4980_v38, 4  ;;  %v1885_v62 = vperm.slane %v4980_v38, 2  ;;  %v4300_v8 = vld [vmem:[%s5647_s9 + $0x70] sm:$0xff] }
 0xc6c   : > { %v1653_v43 = vmul.f32 %v4453_v32, %v1652_v45  ;;  %3898 = vmatmul.msk.bf16.vlgmr.msrb.gmra.mxu3 %vm774_vm9, %v1683_v47  ;;  %v1681_v52 = vpack.c.bf16 %v1649_v44, %v1649_v44 }
 0xc6d   : > { %v1680_v5 = vpack.c.bf16 %v1634_v0, %v1634_v0  ;;  %1847 = vmatpush.bf16.msra.mxu3 %v1838_v51  ;;  %v4299_v51 = vld [vmem:[%s5647_s9 + $0x68] sm:$0xff] }
 0xc6e   : > { %v1654_v55 = vadd.f32 %v4453_v32, %v1653_v43  ;;  %3896 = vmatmul.msk.bf16.vlgmr.msra.gmra.mxu1 %vm774_vm9, %v1681_v52 }
 0xc70   : > { %v1658_v58 = vsel %vm1657_vm14, %v4453_v32, %v1654_v55 }
 0xc71   : > { %v1663_v37 = vsel %vm1660_vm2, %v1662_v57, %v1658_v58 }
 0xc72   : > { %v1664_v61 = vmul.f32 %v5039_v4, %v1663_v37  ;;  %v1800_v4 = vsel %vm971_vm11, %v3900_v6, 0 }
 0xc73   : > { %1809 = vmatpush.bf16.msrb.mxu1 %v1800_v4  ;;  %v4301_v4 = vld [vmem:[%s5647_s9 + $0x78] sm:$0xff] }
 0xc74   : > { %v1682_v63 = vpack.c.bf16 %v1664_v61, %v1664_v61 }
 0xc76   : > { %3897 = vmatmul.msk.bf16.vlgmr.msrb.gmra.mxu2 %vm774_vm9, %v1682_v63 }
 0xc77   : > { %2015 = vmatpush.bf16.msra.mxu1 %v4301_v4 }
 0xc78   : > { %v1685_v1 = vpop.permute.xlu1 %1684 }
 0xc79   : > { %v1690_v2 = vsel %vm971_vm11, %v1685_v1, 0  ;;  %v1887_v1 = vperm.slane %v4980_v38, 3 }
 0xc7a   : > { %1699 = vmatpush.bf16.msra.mxu0 %v1690_v2 }
 0xc7b   : > { %2016 = vmatpush.bf16.msra.mxu1 %v4300_v8 }
 0xc7d   : > { %3895 = vmatmul.msk.bf16.vlgmr.msra.gmra.mxu0 %vm774_vm9, %v1680_v5 }
 0xc7e   : > { %1790 = vmatpush.bf16.msrb.mxu0 %v1781_v14  ;;  %v4397_v14 = vld [vmem:[%s5646_s8 + $0x1] ss:$0 sm:$0xff] }
 0xc7f   : > { %2017 = vmatpush.bf16.msra.mxu1 %v4299_v51 }
 0xc83   : > { %2018 = vmatpush.bf16.msra.mxu1 %v4298_v10  ;;  %v4399_v10 = vld [vmem:[%s5643_s5 + $0x8] ss:$0 sm:$0xff] }
 0xc87   : > { %2019 = vmatpush.bf16.msra.mxu1 %v4297_v7  ;;  %v4400_v7 = vld [vmem:[%s5643_s5 + $0x9] ss:$0 sm:$0xff] }
 0xc8b   : > { %2020 = vmatpush.bf16.msra.mxu1 %v4296_v12  ;;  %v4398_v12 = vld [vmem:[%s5643_s5 + $0xa] ss:$0 sm:$0xff] }
 0xceb   : > { %v1722_v15 = vpop.f32.mrf.mxu1 }
 0xcec   : > { %v1769_v16 = vpack.c.bf16 %v1722_v15, %v1722_v15  ;;  %v4295_v15 = vld [vmem:[%s5647_s9 + $0x48] sm:$0xff] }
 0xced   : > { %2021 = vmatpush.bf16.msra.mxu1 %v4295_v15 }
 0xcee   : > { %3904 = vmatmul.msk.bf16.vlgmr.msrb.gmra.mxu1 %vm774_vm9, %v1769_v16 }
 0xcef   : > { %v1764_v11 = vpop.f32.mrf.mxu3 }
 0xcf0   : > { %v1771_v17 = vpack.c.bf16 %v1764_v11, %v1764_v11 }
 0xcf2   : > { %3906 = vmatmul.msk.bf16.vlgmr.msra.gmra.mxu3 %vm774_vm9, %v1771_v17  ;;  %v4294_v17 = vld [vmem:[%s5647_s9 + $0x40] sm:$0xff] }
 0xcf3   : > { %v1724_v19 = vpop.f32.mrf.mxu1  ;;  %2022 = vmatpush.bf16.msra.mxu1 %v4294_v17 }
 0xcf7   : > { %v1766_v36 = vpop.f32.mrf.mxu3 }
 0xcf9   : > { %v1743_v20 = vpop.f32.mrf.mxu2 }
 0xcfa   : > { %v1770_v21 = vpack.c.bf16 %v1743_v20, %v1743_v20  ;;  %v1701_v9 = vpop.f32.mrf.mxu0 }
 0xcfb   : > { %v1768_v18 = vpack.c.bf16 %v1701_v9, %v1701_v9 }
 0xcfc   : > { %3905 = vmatmul.msk.bf16.vlgmr.msra.gmra.mxu2 %vm774_vm9, %v1770_v21 }
 0xcfd   : > { %3903 = vmatmul.msk.bf16.vlgmr.msrb.gmra.mxu0 %vm774_vm9, %v1768_v18 }
 0xd01   : > { %v1745_v22 = vpop.f32.mrf.mxu2 }
 0xd02   : > { %v1703_v23 = vpop.f32.mrf.mxu0 }
 0xd6b   : > { %v1811_v24 = vpop.f32.mrf.mxu1 }
 0xd6c   : > { %v1854_v31 = vsel %vm556_vm1, %v1811_v24, 0.0 }
 0xd73   : > { %v1813_v50 = vpop.f32.mrf.mxu1 }
 0xd75   : > { %v1849_v25 = vpop.f32.mrf.mxu3 }
 0xd76   : > { %v1858_v40 = vsel %vm556_vm1, %v1849_v25, 0.0 }
 0xd7a   : > { %v1792_v26 = vpop.f32.mrf.mxu0 }
 0xd7b   : > { %v1853_v27 = vsel %vm556_vm1, %v1792_v26, 0.0 }
 0xd7c   : > { %v1855_v32 = vadd.f32 %v1854_v31, %v1853_v27 }
 0xd7d   : > { %v1851_v29 = vpop.f32.mrf.mxu3 }
 0xd7f   : > { %v1830_v33 = vpop.f32.mrf.mxu2 }
 0xd80   : > { %v1856_v34 = vsel %vm556_vm1, %v1830_v33, 0.0 }
 0xd81   : > { %v1857_v35 = vadd.f32 %v1856_v34, %v1855_v32  ;;  %v2029_v34 = vperm.slane %v4980_v38, 5  ;;  %v4303_v38 = vld [vmem:[%s5642_s4 + $0x88] sm:$0xff] }
 0xd82   : > { %v1794_v28 = vpop.f32.mrf.mxu0  ;;  %2132 = vmatpush.bf16.msrb.mxu2 %v4303_v38 }
 0xd83   : > { %v1859_v39 = vadd.f32 %v1858_v40, %v1857_v35 }
 0xd85   : > { %v1860_v42 = vadd.f32 %v1859_v39, %v4945_v13  ;;  %v4293_v13 = vld [vmem:[%s5645_s7 + $0x18] sm:$0xff] }
 0xd86   : > { %1921 = vmatpush.bf16.msra.mxu0 %v4293_v13  ;;  %v4306_v13 = vld [vmem:[%s5642_s4 + $0xa0] sm:$0xff] }
 0xd87   : > { %v1832_v44 = vpop.f32.mrf.mxu2  ;;  %v5096_v45 = vadd.f32 %v1861_v41, %v1860_v42 }
 0xd89   : > { %v1863_v46 = vsel %vm556_vm1, %v5096_v45, 0.0 }
 0xd8a   : > { %1864 = vadd.xlane.f32.xlu2 %v1863_v46  ;;  %1922 = vmatpush.bf16.msra.mxu0 %v4292_v53 }
 0xdfd   : > { %v1865_v47 = vpop.xlane.xlu2 %1864 }
 0xdfe   : > { %v1866_v48 = vmul.f32 %v1865_v47, %v4745_v30 }
 0xe00   : > { %v1867_v43 = vsub.f32 %v5096_v45, %v1866_v48 }
 0xe02   : > { %v1868_v49 = vmul.f32 %v1867_v43, %v1867_v43 }
 0xe04   : > { %v1869_v52 = vsel %vm556_vm1, %v1868_v49, 0.0  ;;  %v4302_v49 = vld [vmem:[%s5642_s4 + $0x80] sm:$0xff] }
 0xe05   : > { %1870 = vadd.xlane.f32.xlu0 %v1869_v52  ;;  %v4304_v52 = vld [vmem:[%s5642_s4 + $0x90] sm:$0xff]  ;;  %2133 = vmatpush.bf16.msrb.mxu2 %v4302_v49 }
 0xe78   : > { %v1871_v54 = vpop.xlane.xlu0 %1870 }
 0xe79   : > { %v1872_v55 = vmul.f32 %v1871_v54, %v4745_v30  ;;  %v4309_v54 = vld [vmem:[%s5642_s4 + $0xb8] sm:$0xff] }
 0xe7a   : > { %2207 = vmatpush.bf16.msra.mxu2 %v4309_v54 }
 0xe7b   : > { %v1873_v56 = vadd.f32 1e-05, %v1872_v55 }
 0xe7d   : > { %4454 = vrsqrt.f32 %v1873_v56  ;;  %vm1880_vm5 = vweird.f32 %v1873_v56 }
 0xe83   : > { %v4455_v57 = vpop.eup %4454 }
 0xe84   : > { %v1875_v58 = vmul.f32 %v4455_v57, %v1873_v56  ;;  %vm1881_vm4 = vweird.f32 %v4455_v57  ;;  %v4308_v56 = vld [vmem:[%s5642_s4 + $0xb0] sm:$0xff] }
 0xe85   : > { %vm1882_vm6 = vmor %vm1880_vm5, %vm1881_vm4  ;;  %2208 = vmatpush.bf16.msra.mxu2 %v4308_v56 }
 0xe86   : > { %v1876_v59 = vmul.f32 %v4455_v57, %v1875_v58 }
 0xe88   : > { %v1877_v37 = vmul.f32 0.5, %v1876_v59 }
 0xe8a   : > { %v1878_v60 = vsub.f32 1.5, %v1877_v37 }
 0xe8c   : > { %v1879_v61 = vmul.f32 %v4455_v57, %v1878_v60 }
 0xe8e   : > { %v1883_v63 = vsel %vm1882_vm6, %v4455_v57, %v1879_v61  ;;  %v5177_v61 = vld [vmem:[%s5648_s10 + $0x10] sm:$0xff] }
 0xe8f   : > { %v1884_v0 = vmul.f32 %v1883_v63, %v1867_v43  ;;  %v4307_v43 = vld [vmem:[%s5642_s4 + $0xa8] sm:$0xff] }
 0xe90   : > { %2182 = vmatpush.bf16.msrb.mxu0 %v4307_v43 }
 0xe91   : > { %v1886_v2 = vmul.f32 %v1885_v62, %v1884_v0  ;;  %v2072_v0 = vperm.slane %v5177_v61, 0 }
 0xe93   : > { %v1888_v5 = vadd.f32 %v1887_v1, %v1886_v2 }
 0xe94   : > { %2183 = vmatpush.bf16.msrb.mxu0 %v4306_v13 }
 0xe95   : > { %v1889_v6 = vpack.c.bf16 %v1888_v5, %v1888_v5  ;;  %v2074_v5 = vperm.slane %v5177_v61, 1 }
 0xe97   : > { %3920 = vmatmul.msk.bf16.vlgmr.msra.gmra.mxu0 %vm556_vm1, %v1889_v6 }
 0xf14   : > { %v1924_v16 = vpop.f32.mrf.mxu0 }
 0xf15   : > { %v1925_v11 = vadd.f32 %v4397_v14, %v1924_v16 }
 0xf17   : > { %v3921_v19 = vmul.f32 -1.702, %v1925_v11 }
 0xf19   : > { %v1930_v36 = vmul.f32 1.442695, %v3921_v19 }
 0xf1b   : > { %4456 = vpow2.f32 %v1930_v36 }
 0xf1c   : > { %v1926_v20 = vpop.f32.mrf.mxu0 }
 0xf21   : > { %v4457_v21 = vpop.eup %4456 }
 0xf22   : > { %v1932_v9 = vadd.f32 1.0, %v4457_v21 }
 0xf24   : > { %4458 = vrcp.f32 %v1932_v9  ;;  %v1944_v24 = vand.u32 2147483648, %v1932_v9  ;;  %v1942_v25 = vand.u32 2147483647, %v1932_v9  ;;  %vm1938_vm8 = vweird.f32 %v1932_v9 }
 0xf26   : > { %v1945_v27 = vor.u32 1.1754944e-38, %v1944_v24  ;;  %vm1943_vm12 = vcmp.eq.f32.partialorder %v1942_v25, 8.507059e+37 }
 0xf2a   : > { %v4459_v18 = vpop.eup %4458 }
 0xf2b   : > { %v1934_v22 = vmul.f32 %v4459_v18, %v1932_v9  ;;  %vm1939_vm7 = vweird.f32 %v4459_v18 }
 0xf2c   : > { %vm1940_vm10 = vmor %vm1938_vm8, %vm1939_vm7 }
 0xf2d   : > { %v1935_v23 = vsub.f32 1.0, %v1934_v22 }
 0xf2f   : > { %v1936_v50 = vmul.f32 %v4459_v18, %v1935_v23 }
 0xf31   : > { %v1937_v26 = vadd.f32 %v4459_v18, %v1936_v50 }
 0xf33   : > { %v1941_v29 = vsel %vm1940_vm10, %v4459_v18, %v1937_v26  ;;  %v4401_v26 = vld [vmem:[%s5643_s5 + $0xb] ss:$0 sm:$0xff] }
 0xf34   : > { %v1946_v31 = vsel %vm1943_vm12, %v1945_v27, %v1941_v29 }
 0xf35   : > { %v1948_v32 = vmul.f32 %v1946_v31, %v1925_v11 }
 0xf37   : > { %v1949_v33 = vpack.c.bf16 %v1948_v32, %v1948_v32 }
 0xf39   : > { %2023 = vmatmul.bf16.vlgmr.msra.gmra.mxu1 %v1949_v33 }
 0xfb6   : > { %v2024_v35 = vpop.f32.mrf.mxu1 }
 0xfb7   : > { %v2028_v40 = vadd.f32 %v2024_v35, %v5096_v45  ;;  %v4305_v45 = vld [vmem:[%s5642_s4 + $0x98] sm:$0xff] }
 0xfb8   : > { %2157 = vmatpush.bf16.msrb.mxu3 %v4305_v45 }
 0xfb9   : > { %v5142_v28 = vadd.f32 %v2029_v34, %v2028_v40 }
 0xfbb   : > { %v2050_v39 = vsel %vm556_vm1, %v5142_v28, 0.0 }
 0xfbc   : > { %2051 = vadd.xlane.f32.xlu1 %v2050_v39  ;;  %2158 = vmatpush.bf16.msrb.mxu3 %v4304_v52 }
 0xfbe   : > { %v2026_v41 = vpop.f32.mrf.mxu1 }
0x102f   : > { %v2052_v42 = vpop.xlane.xlu1 %2051 }
0x1030   : > { %v2053_v44 = vmul.f32 %v2052_v42, %v4745_v30 }
0x1032   : > { %v2054_v46 = vsub.f32 %v5142_v28, %v2053_v44 }
0x1034   : > { %v2055_v47 = vmul.f32 %v2054_v46, %v2054_v46 }
0x1036   : > { %v2056_v48 = vsel %vm556_vm1, %v2055_v47, 0.0 }
0x1037   : > { %2057 = vadd.xlane.f32.xlu2 %v2056_v48 }
0x10aa   : > { %v2058_v53 = vpop.xlane.xlu2 %2057 }
0x10ab   : > { %v2059_v55 = vmul.f32 %v2058_v53, %v4745_v30 }
0x10ad   : > { %v2060_v57 = vadd.f32 1e-05, %v2059_v55 }
0x10af   : > { %4460 = vrsqrt.f32 %v2060_v57  ;;  %vm2067_vm14 = vweird.f32 %v2060_v57 }
0x10b5   : > { %v4461_v58 = vpop.eup %4460 }
0x10b6   : > { %v2062_v59 = vmul.f32 %v4461_v58, %v2060_v57  ;;  %vm2068_vm13 = vweird.f32 %v4461_v58 }
0x10b7   : > { %vm2069_vm15 = vmor %vm2067_vm14, %vm2068_vm13 }
0x10b8   : > { %v2063_v37 = vmul.f32 %v4461_v58, %v2062_v59 }
0x10ba   : > { %v2064_v60 = vmul.f32 0.5, %v2063_v37 }
0x10bc   : > { %v2065_v62 = vsub.f32 1.5, %v2064_v60 }
0x10be   : > { %v2066_v63 = vmul.f32 %v4461_v58, %v2065_v62 }
0x10c0   : > { %v2070_v1 = vsel %vm2069_vm15, %v4461_v58, %v2066_v63 }
0x10c1   : > { %v2071_v2 = vmul.f32 %v2070_v1, %v2054_v46 }
0x10c3   : > { %v2073_v6 = vmul.f32 %v2072_v0, %v2071_v2 }
0x10c5   : > { %v2075_v4 = vadd.f32 %v2074_v5, %v2073_v6 }
0x10c7   : > { %v2076_v8 = vpack.c.bf16 %v2075_v4, %v2075_v4 }
0x10c9   : > { %3999 = vmatmul.msk.bf16.vlgmr.msrb.gmra.mxu2 %vm556_vm1, %v2076_v8  ;;  %4008 = vmatmul.msk.bf16.vlgmr.msrb.gmra.mxu3 %vm556_vm1, %v2076_v8 }
0x10ca   : > { %4017 = vmatmul.msk.bf16.vlgmr.msrb.gmra.mxu0 %vm556_vm1, %v2076_v8 }
0x10d9   : > { %4026 = vmatmul.msk.bf16.vlgmr.msra.gmra.mxu2 %vm556_vm1, %v2076_v8 }
0x1147   : > { %v2185_v51 = vpop.f32.mrf.mxu0 }
0x1148   : > { %v2186_v17 = vadd.f32 %v4398_v12, %v2185_v51 }
0x114a   : > { %v2224_v18 = vpack.c.bf16 %v2186_v17, %v2186_v17  ;;  %v2216_v43 = vmul.f32 0.35355338, %v2186_v17 }
0x114c   : > { %v2135_v14 = vpop.f32.mrf.mxu2  ;;  %v2160_v15 = vpop.f32.mrf.mxu3  ;;  %v2275_v25 = vunpack.c.l.b16 %v2224_v18  ;;  %v2220_v49 = vpack.c.bf16 %v2216_v43, %v2216_v43 }
0x114d   : > { %v2136_v16 = vadd.f32 %v4399_v10, %v2135_v14  ;;  %v2161_v11 = vadd.f32 %v4400_v7, %v2160_v15 }
0x114e   : > { %v5202_v27 = vpack.c.b16 %v2275_v25, %v2275_v25 }
0x114f   : > { %v2222_v19 = vpack.c.bf16 %v2136_v16, %v2136_v16  ;;  %v2223_v36 = vpack.c.bf16 %v2161_v11, %v2161_v11  ;;  %v2187_v20 = vpop.f32.mrf.mxu0  ;;  %v2215_v41 = vmul.f32 0.35355338, %v2161_v11  ;;  %v2214_v47 = vmul.f32 0.35355338, %v2136_v16 }
0x1151   : > { %v2227_v21 = vunpack.c.l.b16 %v2222_v19  ;;  %v2251_v9 = vunpack.c.l.b16 %v2223_v36  ;;  %v2219_v42 = vpack.c.bf16 %v2215_v41, %v2215_v41  ;;  %v2218_v48 = vpack.c.bf16 %v2214_v47, %v2214_v47 }
0x1153   : > { %v2228_v22 = vpack.c.b16 %v2227_v21, %v2227_v21  ;;  %v5194_v23 = vpack.c.b16 %v2251_v9, %v2251_v9 }
0x1154   : > { %v2137_v24 = vpop.f32.mrf.mxu2  ;;  %v2162_v50 = vpop.f32.mrf.mxu3 }
0x1155   : > { %2229 = vrot.lane.b32.xlu0 %v2228_v22, %s4577_s15  ;;  %2253 = vrot.lane.b32.xlu2 %v5194_v23, %s4577_s15 }
0x115c   : > { %v2210_v29 = vpop.f32.mrf.mxu2 }
0x115d   : > { %v2211_v31 = vadd.f32 %v4401_v26, %v2210_v29  ;;  %2277 = vrot.lane.b32.xlu0 %v5202_v27, %s4577_s15 }
0x115f   : > { %v2225_v32 = vpack.c.bf16 %v2211_v31, %v2211_v31  ;;  %v2217_v53 = vmul.f32 0.35355338, %v2211_v31 }
0x1161   : > { %v2299_v33 = vunpack.c.l.b16 %v2225_v32  ;;  %v2221_v54 = vpack.c.bf16 %v2217_v53, %v2217_v53 }
0x1163   : > { %v2300_v34 = vpack.c.b16 %v2299_v33, %v2299_v33 }
0x1164   : > { %v2212_v35 = vpop.f32.mrf.mxu2 }
0x1165   : > { %2301 = vrot.lane.b32.xlu1 %v2300_v34, %s4577_s15 }
0x11af   : > { %v2254_v40 = vpop.permute.xlu2 %2253 }
0x11b0   : > { %v2259_v39 = vsel %vm774_vm9, %v2254_v40, 0 }
0x11b1   : > { %2268 = vmatpush.bf16.xpose.msra.mxu0 %v2259_v39 }
0x11b8   : > { %4028 = vmatmul.msk.bf16.vlgmr.msra.gmra.mxu0 %vm774_vm9, %v2219_v42 }
0x11c7   : > { %v2230_v44 = vpop.permute.xlu0 %2229 }
0x11c8   : > { %v2235_v46 = vsel %vm774_vm9, %v2230_v44, 0 }
0x11c9   : > { %2244 = vmatpush.bf16.xpose.msra.mxu3 %v2235_v46 }
0x11cf   : > { %v2278_v38 = vpop.permute.xlu0 %2277 }
0x11d0   : > { %v2283_v45 = vsel %vm774_vm9, %v2278_v38, 0  ;;  %4027 = vmatmul.msk.bf16.vlgmr.msra.gmra.mxu3 %vm774_vm9, %v2218_v48 }
0x11d1   : > { %2292 = vmatpush.bf16.xpose.msrb.mxu1 %v2283_v45 }
0x11d7   : > { %v2302_v52 = vpop.permute.xlu1 %2301 }
0x11d8   : > { %v2307_v13 = vsel %vm774_vm9, %v2302_v52, 0  ;;  %4029 = vmatmul.msk.bf16.vlgmr.msrb.gmra.mxu1 %vm774_vm9, %v2220_v49 }
0x11d9   : > { %2316 = vmatpush.bf16.xpose.msrb.mxu2 %v2307_v13 }
0x11e0   : > { %4030 = vmatmul.msk.bf16.vlgmr.msrb.gmra.mxu2 %vm774_vm9, %v2221_v54 }
0x1235   : > { %v2270_v55 = vpop.f32.mrf.mxu0 }
0x1236   : > { %v2271_v56 = vadd.f32 %v2270_v55, %v4832_v3 }
0x1238   : > { %v2325_v57 = vsel %vm774_vm9, %v2271_v56, -inf }
0x1239   : > { %2326 = vmax.xlane.f32.xlu1 %v2325_v57 }
0x123d   : > { %v2272_v58 = vpop.f32.mrf.mxu0 }
0x1252   : > { %2422 = vrot.lane.b32.xlu1 %v2228_v22, %s4579_s14 }
0x1253   : > { %v2246_v59 = vpop.f32.mrf.mxu3 }
0x1254   : > { %v2247_v37 = vadd.f32 %v2246_v59, %v4832_v3 }
0x1255   : > { %v2294_v60 = vpop.f32.mrf.mxu1 }
0x1256   : > { %v2322_v62 = vsel %vm774_vm9, %v2247_v37, -inf  ;;  %v2295_v6 = vadd.f32 %v2294_v60, %v4832_v3 }
0x1257   : > { %2323 = vmax.xlane.f32.xlu0 %v2322_v62 }
0x1258   : > { %v2328_v8 = vsel %vm774_vm9, %v2295_v6, -inf }
0x125b   : > { %v2248_v63 = vpop.f32.mrf.mxu3 }
0x125d   : > { %v2296_v0 = vpop.f32.mrf.mxu1 }
0x1263   : > { %v2318_v1 = vpop.f32.mrf.mxu2 }
0x1264   : > { %v2319_v2 = vadd.f32 %v2318_v1, %v4832_v3 }
0x1266   : > { %v2331_v5 = vsel %vm774_vm9, %v2319_v2, -inf }
0x1267   : > { %2332 = vmax.xlane.f32.xlu2 %v2331_v5 }
0x126b   : > { %v2320_v4 = vpop.f32.mrf.mxu2 }
0x126f   : > { %2329 = vmax.xlane.f32.xlu2 %v2328_v8 }
0x12ac   : > { %v2327_v51 = vpop.xlane.xlu1 %2326 }
0x12ad   : > { %v2335_v10 = vsub.f32 %v2271_v56, %v2327_v51 }
0x12af   : > { %v2340_v7 = vmul.f32 1.442695, %v2335_v10 }
0x12b1   : > { %4462 = vpow2.f32 %v2340_v7 }
0x12b7   : > { %v5224_v12 = vpop.eup %4462 }
0x12b8   : > { %v2349_v14 = vsel %vm774_vm9, %v5224_v12, 0.0 }
0x12b9   : > { %2350 = vadd.xlane.f32.xlu2 %v2349_v14 }
0x12c4   : > { %v2423_v15 = vpop.permute.xlu1 %2422 }
0x12c5   : > { %v2428_v16 = vsel %vm971_vm11, %v2423_v15, 0 }
0x12c6   : > { %2437 = vmatpush.bf16.msrb.mxu3 %v2428_v16 }
0x12ca   : > { %v2324_v36 = vpop.xlane.xlu0 %2323 }
0x12cb   : > { %v2334_v18 = vsub.f32 %v2247_v37, %v2324_v36 }
0x12cd   : > { %v2338_v50 = vmul.f32 1.442695, %v2334_v18 }
0x12d1   : > { %2485 = vrot.lane.b32.xlu2 %v2300_v34, %s4579_s14 }
0x12da   : > { %v2333_v11 = vpop.xlane.xlu2 %2332 }
0x12db   : > { %v2337_v17 = vsub.f32 %v2319_v2, %v2333_v11 }
0x12dd   : > { %v2344_v19 = vmul.f32 1.442695, %v2337_v17 }
0x12df   : > { %4464 = vpow2.f32 %v2344_v19 }
0x12e2   : > { %v2330_v20 = vpop.xlane.xlu2 %2329 }
0x12e3   : > { %v2336_v21 = vsub.f32 %v2295_v6, %v2330_v20 }
0x12e5   : > { %v4465_v9 = vpop.eup %4464  ;;  %v2342_v22 = vmul.f32 1.442695, %v2336_v21 }
0x12e6   : > { %v2355_v24 = vsel %vm774_vm9, %v4465_v9, 0.0 }
0x12e7   : > { %4466 = vpow2.f32 %v2342_v22  ;;  %2356 = vadd.xlane.f32.xlu1 %v2355_v24 }
0x12e8   : > { %4468 = vpow2.f32 %v2338_v50 }
0x12ed   : > { %v5231_v25 = vpop.eup %4466 }
0x12ee   : > { %v2352_v26 = vsel %vm774_vm9, %v5231_v25, 0.0  ;;  %v5235_v29 = vpop.eup %4468 }
0x12ef   : > { %2353 = vadd.xlane.f32.xlu0 %v2352_v26  ;;  %v2346_v31 = vsel %vm774_vm9, %v5235_v29, 0.0 }
0x12f7   : > { %2347 = vadd.xlane.f32.xlu0 %v2346_v31 }
0x1300   : > { %2464 = vrot.lane.b32.xlu1 %v5202_v27, %s4579_s14 }
0x130b   : > { %2443 = vrot.lane.b32.xlu0 %v5194_v23, %s4579_s14 }
0x132c   : > { %v5243_v32 = vpop.xlane.xlu2 %2350 }
0x132d   : > { %vm2378_vm13 = vweird.f32 %v5243_v32  ;;  %v2384_v6 = vand.u32 2147483648, %v5243_v32  ;;  %v2382_v10 = vand.u32 2147483647, %v5243_v32 }
0x132f   : > { %v2385_v36 = vor.u32 1.1754944e-38, %v2384_v6 }
0x1334   : > { %v2486_v33 = vpop.permute.xlu2 %2485 }
0x1335   : > { %v2491_v34 = vsel %vm971_vm11, %v2486_v33, 0  ;;  %v4038_v33 = vld [vmem:[%s5644_s6 + $0x2c] sm:$0xf] }
0x1336   : > { %2500 = vmatpush.bf16.msra.mxu2 %v2491_v34  ;;  %v2576_v34 = vsel %vm971_vm11, %v4038_v33, 0 }
0x133a   : > { %2585 = vmatpush.bf16.msrb.mxu2 %v2576_v34 }
0x135a   : > { %v2357_v35 = vpop.xlane.xlu1 %2356 }
0x135b   : > { %4470 = vrcp.f32 %v2357_v35  ;;  %v2414_v44 = vand.u32 2147483648, %v2357_v35  ;;  %v2412_v47 = vand.u32 2147483647, %v2357_v35  ;;  %vm2408_vm3 = vweird.f32 %v2357_v35 }
0x135c   : > { %4472 = vrcp.f32 %v5243_v32 }
0x135d   : > { %v2415_v43 = vor.u32 1.1754944e-38, %v2414_v44  ;;  %vm2413_vm5 = vcmp.eq.f32.partialorder %v2412_v47, 8.507059e+37 }
0x1361   : > { %v4471_v40 = vpop.eup %4470 }
0x1362   : > { %v5247_v39 = vpop.eup %4472  ;;  %v2404_v41 = vmul.f32 %v4471_v40, %v2357_v35  ;;  %v2354_v42 = vpop.xlane.xlu0 %2353  ;;  %vm2409_vm2 = vweird.f32 %v4471_v40  ;;  %v4036_v35 = vld [vmem:[%s5644_s6 + $0x24] sm:$0xf] }
0x1363   : > { %4474 = vrcp.f32 %v2354_v42  ;;  %v2374_v23 = vmul.f32 %v5247_v39, %v5243_v32  ;;  %vm2410_vm4 = vmor %vm2408_vm3, %vm2409_vm2  ;;  %v2399_v57 = vand.u32 2147483648, %v2354_v42  ;;  %v2397_v37 = vand.u32 2147483647, %v2354_v42 }
0x1364   : > { %v2405_v27 = vsub.f32 1.0, %v2404_v41  ;;  %vm2393_vm7 = vweird.f32 %v2354_v42  ;;  %vm2379_vm8 = vweird.f32 %v5247_v39  ;;  %vm2383_vm2 = vcmp.eq.f32.partialorder %v2382_v10, 8.507059e+37 }
0x1365   : > { %v2375_v45 = vsub.f32 1.0, %v2374_v23  ;;  %v2400_v0 = vor.u32 1.1754944e-38, %v2399_v57  ;;  %vm2398_vm12 = vcmp.eq.f32.partialorder %v2397_v37, 8.507059e+37  ;;  %vm5258_vm14 = vmor %vm2378_vm13, %vm2379_vm8 }
0x1366   : > { %v2406_v46 = vmul.f32 %v4471_v40, %v2405_v27 }
0x1367   : > { %v2376_v56 = vmul.f32 %v5247_v39, %v2375_v45 }
0x1368   : > { %v2407_v48 = vadd.f32 %v4471_v40, %v2406_v46 }
0x1369   : > { %v4475_v38 = vpop.eup %4474  ;;  %v2377_v63 = vadd.f32 %v5247_v39, %v2376_v56 }
0x136a   : > { %v2411_v49 = vsel %vm2410_vm4, %v4471_v40, %v2407_v48  ;;  %v2389_v52 = vmul.f32 %v4475_v38, %v2354_v42  ;;  %v2348_v13 = vpop.xlane.xlu0 %2347  ;;  %vm2394_vm6 = vweird.f32 %v4475_v38  ;;  %v2538_v40 = vsel %vm971_vm11, %v4036_v35, 0  ;;  %v4317_v35 = vld [vmem:[%s5647_s9 + $0xa8] sm:$0xff] }
0x136b   : > { %v2416_v53 = vsel %vm2413_vm5, %v2415_v43, %v2411_v49  ;;  %4476 = vrcp.f32 %v2348_v13  ;;  %vm2395_vm10 = vmor %vm2393_vm7, %vm2394_vm6  ;;  %v2381_v15 = vsel %vm5258_vm14, %v5247_v39, %v2377_v63  ;;  %v2369_v16 = vand.u32 2147483648, %v2348_v13  ;;  %v4035_v39 = vld [vmem:[%s5644_s6 + $0x20] sm:$0xf] }
0x136c   : > { %v2417_v54 = vmul.f32 %v4465_v9, %v2416_v53  ;;  %v2390_v55 = vsub.f32 1.0, %v2389_v52  ;;  %v2367_v19 = vand.u32 2147483647, %v2348_v13  ;;  %vm2363_vm3 = vweird.f32 %v2348_v13 }
0x136d   : > { %v2386_v21 = vsel %vm2383_vm2, %v2385_v36, %v2381_v15  ;;  %v2370_v9 = vor.u32 1.1754944e-38, %v2369_v16  ;;  %v2519_v41 = vsel %vm971_vm11, %v4035_v39, 0  ;;  %v4311_v16 = vld [vmem:[%s5645_s7 + $0x28] sm:$0xff]  ;;  %v4315_v39 = vld [vmem:[%s5647_s9 + $0x98] sm:$0xff] }
0x136e   : > { %v2421_v58 = vpack.c.bf16 %v2417_v54, %v2417_v54  ;;  %v2391_v59 = vmul.f32 %v4475_v38, %v2390_v55  ;;  %vm2368_vm5 = vcmp.eq.f32.partialorder %v2367_v19, 8.507059e+37  ;;  %v2387_v24 = vmul.f32 %v5224_v12, %v2386_v21  ;;  %v4037_v12 = vld [vmem:[%s5644_s6 + $0x28] sm:$0xf]  ;;  %2528 = vmatpush.bf16.msra.mxu3 %v2519_v41  ;;  %v4314_v41 = vld [vmem:[%s5647_s9 + $0x90] sm:$0xff] }
0x1370   : > { %v2392_v60 = vadd.f32 %v4475_v38, %v2391_v59  ;;  %4034 = vmatmul.msk.bf16.vlgmr.msra.gmra.mxu2 %vm774_vm9, %v2421_v58  ;;  %v2419_v32 = vpack.c.bf16 %v2387_v24, %v2387_v24 }
0x1371   : > { %v4477_v62 = vpop.eup %4476 }
0x1372   : > { %v2396_v1 = vsel %vm2395_vm10, %v4475_v38, %v2392_v60  ;;  %v2359_v2 = vmul.f32 %v4477_v62, %v2348_v13  ;;  %v2465_v5 = vpop.permute.xlu1 %2464  ;;  %vm2364_vm15 = vweird.f32 %v4477_v62 }
0x1373   : > { %v2401_v4 = vsel %vm2398_vm12, %v2400_v0, %v2396_v1  ;;  %v2470_v8 = vsel %vm971_vm11, %v2465_v5, 0  ;;  %vm2365_vm4 = vmor %vm2363_vm3, %vm2364_vm15 }
0x1374   : > { %v2402_v7 = vmul.f32 %v5231_v25, %v2401_v4  ;;  %v2360_v14 = vsub.f32 1.0, %v2359_v2  ;;  %2479 = vmatpush.bf16.msra.mxu1 %v2470_v8  ;;  %v2599_v2 = vperm.slane %v5177_v61, 4 }
0x1376   : > { %v2420_v11 = vpack.c.bf16 %v2402_v7, %v2402_v7  ;;  %v2361_v17 = vmul.f32 %v4477_v62, %v2360_v14 }
0x1378   : > { %v2362_v20 = vadd.f32 %v4477_v62, %v2361_v17  ;;  %4033 = vmatmul.msk.bf16.vlgmr.msra.gmra.mxu1 %vm774_vm9, %v2420_v11  ;;  %v4310_v11 = vld [vmem:[%s5645_s7 + $0x20] sm:$0xff] }
0x137a   : > { %v2366_v18 = vsel %vm2365_vm4, %v4477_v62, %v2362_v20 }
0x137b   : > { %v2371_v22 = vsel %vm2368_vm5, %v2370_v9, %v2366_v18 }
0x137c   : > { %v2372_v50 = vmul.f32 %v5235_v29, %v2371_v22  ;;  %v2557_v29 = vsel %vm971_vm11, %v4037_v12, 0  ;;  %v4319_v12 = vld [vmem:[%s5647_s9 + $0xb8] sm:$0xff] }
0x137d   : > { %v2444_v25 = vpop.permute.xlu0 %2443  ;;  %2566 = vmatpush.bf16.msrb.mxu1 %v2557_v29  ;;  %v4318_v29 = vld [vmem:[%s5647_s9 + $0xb0] sm:$0xff] }
0x137e   : > { %v2449_v26 = vsel %vm971_vm11, %v2444_v25, 0  ;;  %v2418_v31 = vpack.c.bf16 %v2372_v50, %v2372_v50  ;;  %v2623_v50 = vperm.slane %v5177_v61, 2 }
0x137f   : > { %2458 = vmatpush.bf16.msrb.mxu0 %v2449_v26  ;;  %v2625_v26 = vperm.slane %v5177_v61, 3 }
0x1380   : > { %4031 = vmatmul.msk.bf16.vlgmr.msrb.gmra.mxu3 %vm774_vm9, %v2418_v31 }
0x1381   : > { %2659 = vmatpush.bf16.msrb.mxu3 %v4311_v16  ;;  %v4322_v16 = vld [vmem:[%s5642_s4 + $0xd0] sm:$0xff] }
0x1382   : > { %4032 = vmatmul.msk.bf16.vlgmr.msrb.gmra.mxu0 %vm774_vm9, %v2419_v32 }
0x1383   : > { %2547 = vmatpush.bf16.msra.mxu0 %v2538_v40  ;;  %v4316_v40 = vld [vmem:[%s5647_s9 + $0xa0] sm:$0xff] }
0x1385   : > { %2660 = vmatpush.bf16.msrb.mxu3 %v4310_v11  ;;  %v4324_v11 = vld [vmem:[%s5642_s4 + $0xe0] sm:$0xff] }
0x1387   : > { %2753 = vmatpush.bf16.msrb.mxu0 %v4319_v12 }
0x138b   : > { %2754 = vmatpush.bf16.msrb.mxu0 %v4318_v29 }
0x138f   : > { %2755 = vmatpush.bf16.msrb.mxu0 %v4317_v35 }
0x1393   : > { %2756 = vmatpush.bf16.msrb.mxu0 %v4316_v40  ;;  %v4403_v40 = vld [vmem:[%s5643_s5 + $0xc] ss:$0 sm:$0xff] }
0x1397   : > { %2757 = vmatpush.bf16.msrb.mxu0 %v4315_v39 }
0x139b   : > { %2758 = vmatpush.bf16.msrb.mxu0 %v4314_v41 }
0x13f3   : > { %v2502_v42 = vpop.f32.mrf.mxu2 }
0x13f4   : > { %v2509_v27 = vpack.c.bf16 %v2502_v42, %v2502_v42  ;;  %v4402_v42 = vld [vmem:[%s5646_s8 + $0x2] ss:$0 sm:$0xff] }
0x13f5   : > { %v2481_v23 = vpop.f32.mrf.mxu1 }
0x13f6   : > { %v2508_v44 = vpack.c.bf16 %v2481_v23, %v2481_v23  ;;  %4042 = vmatmul.msk.bf16.vlgmr.msrb.gmra.mxu2 %vm774_vm9, %v2509_v27  ;;  %v4313_v27 = vld [vmem:[%s5647_s9 + $0x88] sm:$0xff] }
0x13f7   : > { %2759 = vmatpush.bf16.msrb.mxu0 %v4313_v27  ;;  %v4404_v27 = vld [vmem:[%s5643_s5 + $0xd] ss:$0 sm:$0xff] }
0x13f8   : > { %4041 = vmatmul.msk.bf16.vlgmr.msrb.gmra.mxu1 %vm774_vm9, %v2508_v44 }
0x13fb   : > { %v2504_v46 = vpop.f32.mrf.mxu2 }
0x13fc   : > { %v4312_v46 = vld [vmem:[%s5647_s9 + $0x80] sm:$0xff] }
0x13fd   : > { %v2483_v47 = vpop.f32.mrf.mxu1  ;;  %2760 = vmatpush.bf16.msrb.mxu0 %v4312_v46 }
0x13ff   : > { %v2460_v48 = vpop.f32.mrf.mxu0 }
0x1400   : > { %v2507_v38 = vpack.c.bf16 %v2460_v48, %v2460_v48 }
0x1402   : > { %4040 = vmatmul.msk.bf16.vlgmr.msra.gmra.mxu0 %vm774_vm9, %v2507_v38 }
0x1403   : > { %v2439_v45 = vpop.f32.mrf.mxu3 }
0x1404   : > { %v2506_v43 = vpack.c.bf16 %v2439_v45, %v2439_v45 }
0x1406   : > { %4039 = vmatmul.msk.bf16.vlgmr.msra.gmra.mxu3 %vm774_vm9, %v2506_v43 }
0x1407   : > { %v2462_v49 = vpop.f32.mrf.mxu0 }
0x140b   : > { %v2441_v52 = vpop.f32.mrf.mxu3 }
0x1475   : > { %v2568_v13 = vpop.f32.mrf.mxu1 }
0x1476   : > { %v2594_v62 = vsel %vm556_vm1, %v2568_v13, 0.0 }
0x1479   : > { %v2587_v53 = vpop.f32.mrf.mxu2 }
0x147a   : > { %v2596_v0 = vsel %vm556_vm1, %v2587_v53, 0.0 }
0x147d   : > { %v2570_v54 = vpop.f32.mrf.mxu1 }
0x147f   : > { %v2549_v55 = vpop.f32.mrf.mxu0 }
0x1480   : > { %v2592_v59 = vsel %vm556_vm1, %v2549_v55, 0.0 }
0x1481   : > { %v2589_v56 = vpop.f32.mrf.mxu2 }
0x1487   : > { %v2551_v57 = vpop.f32.mrf.mxu0 }
0x1489   : > { %v2530_v58 = vpop.f32.mrf.mxu3 }
0x148a   : > { %v2591_v37 = vsel %vm556_vm1, %v2530_v58, 0.0 }
0x148b   : > { %v2593_v60 = vadd.f32 %v2592_v59, %v2591_v37 }
0x148d   : > { %v2595_v63 = vadd.f32 %v2594_v62, %v2593_v60  ;;  %v2767_v62 = vperm.slane %v5177_v61, 5  ;;  %v4321_v61 = vld [vmem:[%s5642_s4 + $0xc8] sm:$0xff] }
0x148e   : > { %2853 = vmatpush.bf16.msra.mxu1 %v4321_v61 }
0x148f   : > { %v2597_v1 = vadd.f32 %v2596_v0, %v2595_v63 }
0x1491   : > { %v2532_v5 = vpop.f32.mrf.mxu3  ;;  %v2598_v6 = vadd.f32 %v2597_v1, %v5142_v28 }
0x1493   : > { %v5299_v4 = vadd.f32 %v2599_v2, %v2598_v6 }
0x1495   : > { %v2601_v8 = vsel %vm556_vm1, %v5299_v4, 0.0 }
0x1496   : > { %2602 = vadd.xlane.f32.xlu0 %v2601_v8 }
0x1509   : > { %v2603_v51 = vpop.xlane.xlu0 %2602 }
0x150a   : > { %v2604_v10 = vmul.f32 %v2603_v51, %v4745_v30 }
0x150c   : > { %v2605_v7 = vsub.f32 %v5299_v4, %v2604_v10 }
0x150e   : > { %v2606_v14 = vmul.f32 %v2605_v7, %v2605_v7 }
0x1510   : > { %v2607_v15 = vsel %vm556_vm1, %v2606_v14, 0.0  ;;  %v4325_v14 = vld [vmem:[%s5642_s4 + $0xe8] sm:$0xff] }
0x1511   : > { %2608 = vadd.xlane.f32.xlu2 %v2607_v15  ;;  %2903 = vmatpush.bf16.msra.mxu3 %v4325_v14  ;;  %v4320_v15 = vld [vmem:[%s5642_s4 + $0xc0] sm:$0xff] }
0x1512   : > { %2854 = vmatpush.bf16.msra.mxu1 %v4320_v15 }
0x1515   : > { %2904 = vmatpush.bf16.msra.mxu3 %v4324_v11 }
0x1584   : > { %v2609_v17 = vpop.xlane.xlu2 %2608 }
0x1585   : > { %v2610_v19 = vmul.f32 %v2609_v17, %v4745_v30 }
0x1587   : > { %v2611_v36 = vadd.f32 1e-05, %v2610_v19  ;;  %v4327_v19 = vld [vmem:[%s5642_s4 + $0xf8] sm:$0xff] }
0x1588   : > { %2928 = vmatpush.bf16.msrb.mxu1 %v4327_v19 }
0x1589   : > { %4478 = vrsqrt.f32 %v2611_v36  ;;  %vm2618_vm7 = vweird.f32 %v2611_v36 }
0x158f   : > { %v4479_v20 = vpop.eup %4478 }
0x1590   : > { %v2613_v21 = vmul.f32 %v4479_v20, %v2611_v36  ;;  %vm2619_vm6 = vweird.f32 %v4479_v20 }
0x1591   : > { %vm2620_vm8 = vmor %vm2618_vm7, %vm2619_vm6 }
0x1592   : > { %v2614_v9 = vmul.f32 %v4479_v20, %v2613_v21 }
0x1594   : > { %v2615_v18 = vmul.f32 0.5, %v2614_v9 }
0x1596   : > { %v2616_v22 = vsub.f32 1.5, %v2615_v18 }
0x1598   : > { %v2617_v24 = vmul.f32 %v4479_v20, %v2616_v22 }
0x159a   : > { %v2621_v25 = vsel %vm2620_vm8, %v4479_v20, %v2617_v24  ;;  %v4326_v20 = vld [vmem:[%s5642_s4 + $0xf0] sm:$0xff] }
0x159b   : > { %v2622_v31 = vmul.f32 %v2621_v25, %v2605_v7  ;;  %2929 = vmatpush.bf16.msrb.mxu1 %v4326_v20 }
0x159d   : > { %v2624_v32 = vmul.f32 %v2623_v50, %v2622_v31  ;;  %v5380_v50 = vld [vmem:[%s5648_s10 + $0x18] sm:$0xff] }
0x159e   : > { %v2793_v31 = vperm.slane %v5380_v50, 0 }
0x159f   : > { %v2626_v33 = vadd.f32 %v2625_v26, %v2624_v32 }
0x15a1   : > { %v2627_v34 = vpack.c.bf16 %v2626_v33, %v2626_v33  ;;  %v2795_v33 = vperm.slane %v5380_v50, 1 }
0x15a3   : > { %4056 = vmatmul.msk.bf16.vlgmr.msrb.gmra.mxu3 %vm556_vm1, %v2627_v34 }
0x1626   : > { %v2662_v23 = vpop.f32.mrf.mxu3 }
0x1627   : > { %v2663_v44 = vadd.f32 %v4402_v42, %v2662_v23  ;;  %v4405_v23 = vld [vmem:[%s5643_s5 + $0xe] ss:$0 sm:$0xff] }
0x1629   : > { %v4057_v47 = vmul.f32 -1.702, %v2663_v44 }
0x162b   : > { %v2668_v48 = vmul.f32 1.442695, %v4057_v47 }
0x162d   : > { %4480 = vpow2.f32 %v2668_v48 }
0x162e   : > { %v2664_v38 = vpop.f32.mrf.mxu3 }
0x1633   : > { %v4481_v45 = vpop.eup %4480 }
0x1634   : > { %v2670_v43 = vadd.f32 1.0, %v4481_v45 }
0x1636   : > { %4482 = vrcp.f32 %v2670_v43  ;;  %v2682_v53 = vand.u32 2147483648, %v2670_v43  ;;  %v2680_v55 = vand.u32 2147483647, %v2670_v43  ;;  %vm2676_vm12 = vweird.f32 %v2670_v43 }
0x1638   : > { %v2683_v57 = vor.u32 1.1754944e-38, %v2682_v53  ;;  %vm2681_vm14 = vcmp.eq.f32.partialorder %v2680_v55, 8.507059e+37  ;;  %v4406_v55 = vld [vmem:[%s5643_s5 + $0xf] ss:$0 sm:$0xff] }
0x163c   : > { %v4483_v49 = vpop.eup %4482 }
0x163d   : > { %v2672_v52 = vmul.f32 %v4483_v49, %v2670_v43  ;;  %vm2677_vm10 = vweird.f32 %v4483_v49 }
0x163e   : > { %vm2678_vm13 = vmor %vm2676_vm12, %vm2677_vm10 }
0x163f   : > { %v2673_v13 = vsub.f32 1.0, %v2672_v52 }
0x1641   : > { %v2674_v54 = vmul.f32 %v4483_v49, %v2673_v13 }
0x1643   : > { %v2675_v56 = vadd.f32 %v4483_v49, %v2674_v54 }
0x1645   : > { %v2679_v58 = vsel %vm2678_vm13, %v4483_v49, %v2675_v56 }
0x1646   : > { %v2684_v59 = vsel %vm2681_vm14, %v2683_v57, %v2679_v58 }
0x1647   : > { %v2686_v37 = vmul.f32 %v2684_v59, %v2663_v44 }
0x1649   : > { %v2687_v60 = vpack.c.bf16 %v2686_v37, %v2686_v37 }
0x164b   : > { %2761 = vmatmul.bf16.vlgmr.msrb.gmra.mxu0 %v2687_v60 }
0x16c8   : > { %v2762_v63 = vpop.f32.mrf.mxu0 }
0x16c9   : > { %v2766_v0 = vadd.f32 %v2762_v63, %v5299_v4  ;;  %v4323_v4 = vld [vmem:[%s5642_s4 + $0xd8] sm:$0xff] }
0x16ca   : > { %2878 = vmatpush.bf16.msra.mxu2 %v4323_v4 }
0x16cb   : > { %v5345_v1 = vadd.f32 %v2767_v62, %v2766_v0 }
0x16cd   : > { %v2771_v2 = vsel %vm556_vm1, %v5345_v1, 0.0 }
0x16ce   : > { %2772 = vadd.xlane.f32.xlu1 %v2771_v2  ;;  %2879 = vmatpush.bf16.msra.mxu2 %v4322_v16 }
0x16d0   : > { %v2764_v5 = vpop.f32.mrf.mxu0 }
0x1741   : > { %v2773_v6 = vpop.xlane.xlu1 %2772 }
0x1742   : > { %v2774_v8 = vmul.f32 %v2773_v6, %v4745_v30 }
0x1744   : > { %v2775_v51 = vsub.f32 %v5345_v1, %v2774_v8 }
0x1746   : > { %v2776_v10 = vmul.f32 %v2775_v51, %v2775_v51 }
0x1748   : > { %v2777_v7 = vsel %vm556_vm1, %v2776_v10, 0.0 }
0x1749   : > { %2778 = vadd.xlane.f32.xlu0 %v2777_v7 }
0x17bc   : > { %v2779_v17 = vpop.xlane.xlu0 %2778 }
0x17bd   : > { %v2780_v36 = vmul.f32 %v2779_v17, %v4745_v30 }
0x17bf   : > { %v2781_v21 = vadd.f32 1e-05, %v2780_v36 }
0x17c1   : > { %4484 = vrsqrt.f32 %v2781_v21  ;;  %vm2788_vm2 = vweird.f32 %v2781_v21 }
0x17c7   : > { %v4485_v9 = vpop.eup %4484 }
0x17c8   : > { %v2783_v18 = vmul.f32 %v4485_v9, %v2781_v21  ;;  %vm2789_vm15 = vweird.f32 %v4485_v9 }
0x17c9   : > { %vm2790_vm3 = vmor %vm2788_vm2, %vm2789_vm15 }
0x17ca   : > { %v2784_v22 = vmul.f32 %v4485_v9, %v2783_v18 }
0x17cc   : > { %v2785_v24 = vmul.f32 0.5, %v2784_v22 }
0x17ce   : > { %v2786_v25 = vsub.f32 1.5, %v2785_v24 }
0x17d0   : > { %v2787_v26 = vmul.f32 %v4485_v9, %v2786_v25 }
0x17d2   : > { %v2791_v32 = vsel %vm2790_vm3, %v4485_v9, %v2787_v26 }
0x17d3   : > { %v2792_v34 = vmul.f32 %v2791_v32, %v2775_v51 }
0x17d5   : > { %v2794_v12 = vmul.f32 %v2793_v31, %v2792_v34 }
0x17d7   : > { %v2796_v29 = vadd.f32 %v2795_v33, %v2794_v12 }
0x17d9   : > { %v2797_v35 = vpack.c.bf16 %v2796_v29, %v2796_v29 }
0x17db   : > { %4135 = vmatmul.msk.bf16.vlgmr.msra.gmra.mxu1 %vm556_vm1, %v2797_v35  ;;  %4144 = vmatmul.msk.bf16.vlgmr.msra.gmra.mxu2 %vm556_vm1, %v2797_v35 }
0x17dc   : > { %4153 = vmatmul.msk.bf16.vlgmr.msra.gmra.mxu3 %vm556_vm1, %v2797_v35 }
0x17eb   : > { %4162 = vmatmul.msk.bf16.vlgmr.msrb.gmra.mxu1 %vm556_vm1, %v2797_v35 }
0x1858   : > { %v2856_v39 = vpop.f32.mrf.mxu1 }
0x1859   : > { %v2857_v41 = vadd.f32 %v4403_v40, %v2856_v39 }
0x185b   : > { %v2943_v42 = vpack.c.bf16 %v2857_v41, %v2857_v41  ;;  %v2935_v6 = vmul.f32 0.35355338, %v2857_v41 }
0x185d   : > { %v2948_v44 = vunpack.c.l.b16 %v2943_v42  ;;  %v2939_v8 = vpack.c.bf16 %v2935_v6, %v2935_v6 }
0x185e   : > { %v2881_v46 = vpop.f32.mrf.mxu2 }
0x185f   : > { %v5397_v47 = vpack.c.b16 %v2948_v44, %v2948_v44  ;;  %v2882_v48 = vadd.f32 %v4404_v27, %v2881_v46  ;;  %v2906_v38 = vpop.f32.mrf.mxu3 }
0x1860   : > { %v2907_v45 = vadd.f32 %v4405_v23, %v2906_v38  ;;  %v2858_v43 = vpop.f32.mrf.mxu1 }
0x1861   : > { %v2944_v49 = vpack.c.bf16 %v2882_v48, %v2882_v48  ;;  %2950 = vrot.lane.b32.xlu2 %v5397_v47, %s4577_s15  ;;  %v2936_v11 = vmul.f32 0.35355338, %v2882_v48 }
0x1862   : > { %v2945_v52 = vpack.c.bf16 %v2907_v45, %v2907_v45  ;;  %v2937_v17 = vmul.f32 0.35355338, %v2907_v45 }
0x1863   : > { %v2972_v13 = vunpack.c.l.b16 %v2944_v49  ;;  %v2940_v19 = vpack.c.bf16 %v2936_v11, %v2936_v11 }
0x1864   : > { %v2996_v53 = vunpack.c.l.b16 %v2945_v52  ;;  %v2941_v36 = vpack.c.bf16 %v2937_v17, %v2937_v17 }
0x1865   : > { %v5401_v54 = vpack.c.b16 %v2972_v13, %v2972_v13 }
0x1866   : > { %v5406_v56 = vpack.c.b16 %v2996_v53, %v2996_v53  ;;  %v2883_v57 = vpop.f32.mrf.mxu2 }
0x1867   : > { %v2908_v58 = vpop.f32.mrf.mxu3  ;;  %2974 = vrot.lane.b32.xlu1 %v5401_v54, %s4577_s15 }
0x1868   : > { %2998 = vrot.lane.b32.xlu0 %v5406_v56, %s4577_s15  ;;  %v2931_v59 = vpop.f32.mrf.mxu1 }
0x1869   : > { %v2932_v37 = vadd.f32 %v4406_v55, %v2931_v59 }
0x186b   : > { %v2946_v60 = vpack.c.bf16 %v2932_v37, %v2932_v37  ;;  %v2938_v7 = vmul.f32 0.35355338, %v2932_v37 }
0x186d   : > { %v3020_v62 = vunpack.c.l.b16 %v2946_v60  ;;  %v2942_v61 = vpack.c.bf16 %v2938_v7, %v2938_v7 }
0x186f   : > { %v5412_v63 = vpack.c.b16 %v3020_v62, %v3020_v62 }
0x1870   : > { %v2933_v0 = vpop.f32.mrf.mxu1 }
0x1871   : > { %3022 = vrot.lane.b32.xlu2 %v5412_v63, %s4577_s15  ;;  %s412_s15 = scalar_lea.vmem [#allocation2], %s411_s28 }
0x18bb   : > { %v2951_v2 = vpop.permute.xlu2 %2950 }
0x18bc   : > { %v2956_v5 = vsel %vm774_vm9, %v2951_v2, 0 }
0x18bd   : > { %2965 = vmatpush.bf16.xpose.msrb.mxu2 %v2956_v5 }
0x18c4   : > { %4163 = vmatmul.msk.bf16.vlgmr.msrb.gmra.mxu2 %vm774_vm9, %v2939_v8 }
0x18cb   : > { %v3023_v51 = vpop.permute.xlu2 %3022 }
0x18cc   : > { %v3028_v10 = vsel %vm774_vm9, %v3023_v51, 0 }
0x18cd   : > { %3037 = vmatpush.bf16.xpose.msra.mxu1 %v3028_v10 }
0x18d4   : > { %4166 = vmatmul.msk.bf16.vlgmr.msra.gmra.mxu1 %vm774_vm9, %v2942_v61 }
0x18d9   : > { %v2975_v4 = vpop.permute.xlu1 %2974 }
0x18da   : > { %v2999_v14 = vpop.permute.xlu0 %2998  ;;  %v2980_v15 = vsel %vm774_vm9, %v2975_v4, 0 }
0x18db   : > { %v3004_v16 = vsel %vm774_vm9, %v2999_v14, 0  ;;  %2989 = vmatpush.bf16.xpose.msrb.mxu3 %v2980_v15 }
0x18dc   : > { %3013 = vmatpush.bf16.xpose.msra.mxu0 %v3004_v16 }
0x18e2   : > { %4164 = vmatmul.msk.bf16.vlgmr.msrb.gmra.mxu3 %vm774_vm9, %v2940_v19 }
0x18e3   : > { %4165 = vmatmul.msk.bf16.vlgmr.msra.gmra.mxu0 %vm774_vm9, %v2941_v36 }
0x1947   : > { %v2967_v20 = vpop.f32.mrf.mxu2 }
0x1948   : > { %v2968_v21 = vadd.f32 %v2967_v20, %v4832_v3 }
0x194a   : > { %v3043_v9 = vsel %vm774_vm9, %v2968_v21, -inf }
0x194b   : > { %3044 = vmax.xlane.f32.xlu0 %v3043_v9 }
0x194f   : > { %v2969_v18 = vpop.f32.mrf.mxu2 }
0x1951   : > { %v3039_v22 = vpop.f32.mrf.mxu1 }
0x1952   : > { %v3040_v24 = vadd.f32 %v3039_v22, %v4832_v3 }
0x1954   : > { %v3052_v25 = vsel %vm774_vm9, %v3040_v24, -inf }
0x1955   : > { %3053 = vmax.xlane.f32.xlu0 %v3052_v25 }
0x1959   : > { %v3041_v26 = vpop.f32.mrf.mxu1 }
0x1960   : > { %v3015_v31 = vpop.f32.mrf.mxu0 }
0x1961   : > { %v3016_v32 = vadd.f32 %v3015_v31, %v4832_v3 }
0x1963   : > { %v3049_v33 = vsel %vm774_vm9, %v3016_v32, -inf }
0x1964   : > { %3050 = vmax.xlane.f32.xlu2 %v3049_v33 }
0x1965   : > { %v2991_v34 = vpop.f32.mrf.mxu3 }
0x1966   : > { %v2992_v12 = vadd.f32 %v2991_v34, %v4832_v3 }
0x1968   : > { %v3017_v29 = vpop.f32.mrf.mxu0  ;;  %v3046_v35 = vsel %vm774_vm9, %v2992_v12, -inf }
0x1969   : > { %3047 = vmax.xlane.f32.xlu1 %v3046_v35 }
0x196d   : > { %v2993_v40 = vpop.f32.mrf.mxu3 }
0x19be   : > { %v3045_v39 = vpop.xlane.xlu0 %3044 }
0x19bf   : > { %v3055_v41 = vsub.f32 %v2968_v21, %v3045_v39 }
0x19c1   : > { %v3059_v42 = vmul.f32 1.442695, %v3055_v41 }
0x19c3   : > { %4486 = vpow2.f32 %v3059_v42 }
0x19c8   : > { %v3054_v27 = vpop.xlane.xlu0 %3053 }
0x19c9   : > { %v4487_v23 = vpop.eup %4486  ;;  %v3058_v44 = vsub.f32 %v3040_v24, %v3054_v27 }
0x19ca   : > { %v3067_v46 = vsel %vm774_vm9, %v4487_v23, 0.0 }
0x19cb   : > { %v3065_v48 = vmul.f32 1.442695, %v3058_v44  ;;  %3068 = vadd.xlane.f32.xlu1 %v3067_v46 }
0x19cd   : > { %4488 = vpow2.f32 %v3065_v48 }
0x19d3   : > { %v5433_v38 = vpop.eup %4488 }
0x19d4   : > { %v3076_v3 = vsel %vm774_vm9, %v5433_v38, 0.0 }
0x19d5   : > { %3077 = vadd.xlane.f32.xlu1 %v3076_v3 }
0x19d7   : > { %v3051_v45 = vpop.xlane.xlu2 %3050 }
0x19d8   : > { %v3057_v43 = vsub.f32 %v3016_v32, %v3051_v45 }
0x19da   : > { %v3063_v49 = vmul.f32 1.442695, %v3057_v43 }
0x19dc   : > { %4490 = vpow2.f32 %v3063_v49  ;;  %v3048_v52 = vpop.xlane.xlu1 %3047 }
0x19dd   : > { %v3056_v13 = vsub.f32 %v2992_v12, %v3048_v52 }
0x19df   : > { %v3061_v53 = vmul.f32 1.442695, %v3056_v13 }
0x19e1   : > { %4492 = vpow2.f32 %v3061_v53 }
0x19e2   : > { %v5437_v55 = vpop.eup %4490 }
0x19e3   : > { %v3073_v57 = vsel %vm774_vm9, %v5437_v55, 0.0 }
0x19e4   : > { %3074 = vadd.xlane.f32.xlu0 %v3073_v57 }
0x19e7   : > { %v5441_v58 = vpop.eup %4492 }
0x19e8   : > { %v3070_v59 = vsel %vm774_vm9, %v5441_v58, 0.0 }
0x19e9   : > { %3071 = vadd.xlane.f32.xlu2 %v3070_v59 }
0x19ee   : > { %3185 = vrot.lane.b32.xlu1 %v5406_v56, %s4579_s14 }
0x19f8   : > { %3164 = vrot.lane.b32.xlu0 %v5401_v54, %s4579_s14 }
0x1a00   : > { %3206 = vrot.lane.b32.xlu0 %v5412_v63, %s4579_s14 }
0x1a01   : > { %3143 = vrot.lane.b32.xlu2 %v5397_v47, %s4579_s14  ;;  %s3607_s14 = sshll.u32 %s412_s15, 4  ;;  %s3608_s14 = int_to_ptr.vmem [resolvable:$true] %s3607_s14 }
0x1a3e   : > { %v3069_v37 = vpop.xlane.xlu1 %3068 }
0x1a3f   : > { %4494 = vrcp.f32 %v3069_v37  ;;  %v3090_v63 = vand.u32 2147483648, %v3069_v37  ;;  %vm3084_vm5 = vweird.f32 %v3069_v37  ;;  %v3088_v8 = vand.u32 2147483647, %v3069_v37 }
0x1a41   : > { %v3091_v7 = vor.u32 1.1754944e-38, %v3090_v63  ;;  %vm3089_vm7 = vcmp.eq.f32.partialorder %v3088_v8, 8.507059e+37 }
0x1a45   : > { %v4495_v60 = vpop.eup %4494 }
0x1a46   : > { %v3080_v62 = vmul.f32 %v4495_v60, %v3069_v37  ;;  %vm3085_vm4 = vweird.f32 %v4495_v60 }
0x1a47   : > { %vm3086_vm6 = vmor %vm3084_vm5, %vm3085_vm4 }
0x1a48   : > { %v5453_v0 = vpop.xlane.xlu1 %3077  ;;  %v3081_v2 = vsub.f32 1.0, %v3080_v62 }
0x1a49   : > { %4496 = vrcp.f32 %v5453_v0  ;;  %v3135_v25 = vand.u32 2147483648, %v5453_v0  ;;  %vm3129_vm2 = vweird.f32 %v5453_v0  ;;  %v3133_v42 = vand.u32 2147483647, %v5453_v0 }
0x1a4a   : > { %v3082_v5 = vmul.f32 %v4495_v60, %v3081_v2 }
0x1a4b   : > { %v3136_v49 = vor.u32 1.1754944e-38, %v3135_v25 }
0x1a4c   : > { %v3083_v54 = vadd.f32 %v4495_v60, %v3082_v5  ;;  %v4172_v5 = vld [vmem:[%s5644_s6 + $0x34] sm:$0xf] }
0x1a4e   : > { %v3087_v51 = vsel %vm3086_vm6, %v4495_v60, %v3083_v54 }
0x1a4f   : > { %v5456_v6 = vpop.eup %4496  ;;  %v3092_v4 = vsel %vm3089_vm7, %v3091_v7, %v3087_v51  ;;  %vm3134_vm7 = vcmp.eq.f32.partialorder %v3133_v42, 8.507059e+37 }
0x1a50   : > { %v3125_v47 = vmul.f32 %v5456_v6, %v5453_v0  ;;  %v3093_v19 = vmul.f32 %v4487_v23, %v3092_v4  ;;  %vm3130_vm12 = vweird.f32 %v5456_v6  ;;  %v4173_v0 = vld [vmem:[%s5644_s6 + $0x38] sm:$0xf] }
0x1a51   : > { %vm5472_vm3 = vmor %vm3129_vm2, %vm3130_vm12  ;;  %v3278_v2 = vsel %vm971_vm11, %v4173_v0, 0 }
0x1a52   : > { %v3126_v14 = vsub.f32 1.0, %v3125_v47  ;;  %v3139_v32 = vpack.c.bf16 %v3093_v19, %v3093_v19 }
0x1a54   : > { %v3127_v21 = vmul.f32 %v5456_v6, %v3126_v14 }
0x1a56   : > { %v3128_v12 = vadd.f32 %v5456_v6, %v3127_v21 }
0x1a57   : > { %v3075_v56 = vpop.xlane.xlu0 %3074 }
0x1a58   : > { %4498 = vrcp.f32 %v3075_v56  ;;  %v3120_v36 = vand.u32 2147483648, %v3075_v56  ;;  %v3118_v18 = vand.u32 2147483647, %v3075_v56  ;;  %vm3114_vm10 = vweird.f32 %v3075_v56 }
0x1a59   : > { %v3132_v48 = vsel %vm5472_vm3, %v5456_v6, %v3128_v12  ;;  %v4174_v6 = vld [vmem:[%s5644_s6 + $0x3c] sm:$0xf] }
0x1a5a   : > { %v3121_v33 = vor.u32 1.1754944e-38, %v3120_v36  ;;  %vm3119_vm14 = vcmp.eq.f32.partialorder %v3118_v18, 8.507059e+37  ;;  %v3137_v53 = vsel %vm3134_vm7, %v3136_v49, %v3132_v48  ;;  %v3297_v54 = vsel %vm971_vm11, %v4174_v6, 0  ;;  %v4333_v6 = vld [vmem:[%s5647_s9 + $0xd8] sm:$0xff] }
0x1a5b   : > { %v3138_v59 = vmul.f32 %v5433_v38, %v3137_v53  ;;  %v4171_v38 = vld [vmem:[%s5644_s6 + $0x30] sm:$0xf] }
0x1a5c   : > { %v3072_v10 = vpop.xlane.xlu2 %3071 }
0x1a5d   : > { %4500 = vrcp.f32 %v3072_v10  ;;  %v3105_v35 = vand.u32 2147483648, %v3072_v10  ;;  %v3103_v41 = vand.u32 2147483647, %v3072_v10  ;;  %vm3099_vm4 = vweird.f32 %v3072_v10 }
0x1a5e   : > { %v4499_v61 = vpop.eup %4498  ;;  %v3142_v62 = vpack.c.bf16 %v3138_v59, %v3138_v59 }
0x1a5f   : > { %v3110_v15 = vmul.f32 %v4499_v61, %v3075_v56  ;;  %vm3115_vm8 = vweird.f32 %v4499_v61  ;;  %v3106_v45 = vor.u32 1.1754944e-38, %v3105_v35  ;;  %vm3104_vm6 = vcmp.eq.f32.partialorder %v3103_v41, 8.507059e+37 }
0x1a60   : > { %v3186_v16 = vpop.permute.xlu1 %3185  ;;  %vm3116_vm13 = vmor %vm3114_vm10, %vm3115_vm8  ;;  %v3259_v56 = vsel %vm971_vm11, %v4172_v5, 0  ;;  %v4335_v5 = vld [vmem:[%s5647_s9 + $0xe8] sm:$0xff] }
0x1a61   : > { %v3111_v11 = vsub.f32 1.0, %v3110_v15  ;;  %v3191_v17 = vsel %vm971_vm11, %v3186_v16, 0 }
0x1a62   : > { %3200 = vmatpush.bf16.msrb.mxu0 %v3191_v17 }
0x1a63   : > { %v4501_v20 = vpop.eup %4500  ;;  %v3112_v9 = vmul.f32 %v4499_v61, %v3111_v11 }
0x1a64   : > { %v3095_v22 = vmul.f32 %v4501_v20, %v3072_v10  ;;  %v3144_v24 = vpop.permute.xlu2 %3143  ;;  %vm3100_vm15 = vweird.f32 %v4501_v20 }
0x1a65   : > { %v3113_v26 = vadd.f32 %v4499_v61, %v3112_v9  ;;  %v3149_v31 = vsel %vm971_vm11, %v3144_v24, 0  ;;  %vm3101_vm5 = vmor %vm3099_vm4, %vm3100_vm15  ;;  %vm3514_vm15 = vcmask 253952  }
0x1a66   : > { %v3096_v34 = vsub.f32 1.0, %v3095_v22  ;;  %3158 = vmatpush.bf16.msra.mxu2 %v3149_v31  ;;  %3287 = vmatpush.bf16.msra.mxu0 %v3278_v2 }
0x1a67   : > { %v3117_v29 = vsel %vm3116_vm13, %v4499_v61, %v3113_v26 }
0x1a68   : > { %v3122_v40 = vsel %vm3119_vm14, %v3121_v33, %v3117_v29  ;;  %v3097_v39 = vmul.f32 %v4501_v20, %v3096_v34  ;;  %v3320_v34 = vperm.slane %v5380_v50, 4 }
0x1a69   : > { %v3123_v27 = vmul.f32 %v5437_v55, %v3122_v40  ;;  %4167 = vmatmul.msk.bf16.vlgmr.msra.gmra.mxu2 %vm774_vm9, %v3139_v32 }
0x1a6a   : > { %v3098_v44 = vadd.f32 %v4501_v20, %v3097_v39  ;;  %v3165_v46 = vpop.permute.xlu0 %3164 }
0x1a6b   : > { %v3141_v3 = vpack.c.bf16 %v3123_v27, %v3123_v27  ;;  %v3170_v43 = vsel %vm971_vm11, %v3165_v46, 0  ;;  %v4328_v46 = vld [vmem:[%s5645_s7 + $0x30] sm:$0xff] }
0x1a6c   : > { %v3102_v52 = vsel %vm3101_vm5, %v4501_v20, %v3098_v44  ;;  %3179 = vmatpush.bf16.msra.mxu3 %v3170_v43  ;;  %v2040_v44 = vrot.slane %v5142_v28, 3  ;;  %vm3573_vm5 = vcmask 122880  }
0x1a6d   : > { %v3107_v13 = vsel %vm3104_vm6, %v3106_v45, %v3102_v52  ;;  %4169 = vmatmul.msk.bf16.vlgmr.msrb.gmra.mxu0 %vm774_vm9, %v3141_v3  ;;  %vm2046_vm6 = vcmask 785408  }
0x1a6e   : > { %v3108_v55 = vmul.f32 %v5441_v58, %v3107_v13  ;;  %v3240_v58 = vsel %vm971_vm11, %v4171_v38, 0  ;;  %v4337_v38 = vld [vmem:[%s5647_s9 + $0xf8] sm:$0xff] }
0x1a6f   : > { %3249 = vmatpush.bf16.msrb.mxu2 %v3240_v58  ;;  %v4336_v58 = vld [vmem:[%s5647_s9 + $0xf0] sm:$0xff] }
0x1a70   : > { %v3140_v57 = vpack.c.bf16 %v3108_v55, %v3108_v55  ;;  %3268 = vmatpush.bf16.msrb.mxu3 %v3259_v56  ;;  %v4334_v56 = vld [vmem:[%s5647_s9 + $0xe0] sm:$0xff] }
0x1a72   : > { %v3207_v37 = vpop.permute.xlu0 %3206  ;;  %4168 = vmatmul.msk.bf16.vlgmr.msra.gmra.mxu3 %vm774_vm9, %v3140_v57  ;;  %v3344_v57 = vperm.slane %v5380_v50, 2 }
0x1a73   : > { %v3212_v60 = vsel %vm971_vm11, %v3207_v37, 0  ;;  %v3346_v37 = vperm.slane %v5380_v50, 3 }
0x1a74   : > { %3221 = vmatpush.bf16.msrb.mxu1 %v3212_v60  ;;  %3474 = vmatpush.bf16.msra.mxu3 %v4337_v38 }
0x1a77   : > { %4170 = vmatmul.msk.bf16.vlgmr.msrb.gmra.mxu1 %vm774_vm9, %v3142_v62 }
0x1a78   : > { %3306 = vmatpush.bf16.msra.mxu1 %v3297_v54  ;;  %3475 = vmatpush.bf16.msra.mxu3 %v4336_v58  ;;  %v4332_v54 = vld [vmem:[%s5647_s9 + $0xd0] sm:$0xff] }
0x1a7c   : > { %3476 = vmatpush.bf16.msra.mxu3 %v4335_v5 }
0x1a80   : > { %3477 = vmatpush.bf16.msra.mxu3 %v4334_v56 }
0x1a84   : > { %3478 = vmatpush.bf16.msra.mxu3 %v4333_v6 }
0x1a88   : > { %3479 = vmatpush.bf16.msra.mxu3 %v4332_v54 }
0x1aea   : > { %v3202_v63 = vpop.f32.mrf.mxu0 }
0x1aeb   : > { %v3229_v8 = vpack.c.bf16 %v3202_v63, %v3202_v63  ;;  %v4407_v63 = vld [vmem:[%s5646_s8 + $0x3] ss:$0 sm:$0xff] }
0x1aec   : > { %v3160_v47 = vpop.f32.mrf.mxu2 }
0x1aed   : > { %v3227_v51 = vpack.c.bf16 %v3160_v47, %v3160_v47  ;;  %4177 = vmatmul.msk.bf16.vlgmr.msra.gmra.mxu0 %vm774_vm9, %v3229_v8  ;;  %v4331_v8 = vld [vmem:[%s5647_s9 + $0xc8] sm:$0xff] }
0x1aee   : > { %3480 = vmatpush.bf16.msra.mxu3 %v4331_v8 }
0x1aef   : > { %4175 = vmatmul.msk.bf16.vlgmr.msrb.gmra.mxu2 %vm774_vm9, %v3227_v51 }
0x1af2   : > { %v3204_v10 = vpop.f32.mrf.mxu0 }
0x1af3   : > { %v4330_v10 = vld [vmem:[%s5647_s9 + $0xc0] sm:$0xff] }
0x1af4   : > { %v3223_v7 = vpop.f32.mrf.mxu1  ;;  %v3162_v61 = vpop.f32.mrf.mxu2  ;;  %3481 = vmatpush.bf16.msra.mxu3 %v4330_v10 }
0x1af5   : > { %v3230_v4 = vpack.c.bf16 %v3223_v7, %v3223_v7  ;;  %v3181_v14 = vpop.f32.mrf.mxu3 }
0x1af6   : > { %v3228_v15 = vpack.c.bf16 %v3181_v14, %v3181_v14 }
0x1af7   : > { %4178 = vmatmul.msk.bf16.vlgmr.msra.gmra.mxu1 %vm774_vm9, %v3230_v4 }
0x1af8   : > { %4176 = vmatmul.msk.bf16.vlgmr.msrb.gmra.mxu3 %vm774_vm9, %v3228_v15 }
0x1afc   : > { %v3225_v16 = vpop.f32.mrf.mxu1 }
0x1afd   : > { %v3183_v11 = vpop.f32.mrf.mxu3 }
0x1b6a   : > { %v3289_v17 = vpop.f32.mrf.mxu0 }
0x1b6b   : > { %v3315_v26 = vsel %vm556_vm1, %v3289_v17, 0.0 }
0x1b72   : > { %v3291_v19 = vpop.f32.mrf.mxu0  ;;  %v3251_v36 = vpop.f32.mrf.mxu2 }
0x1b73   : > { %v3312_v18 = vsel %vm556_vm1, %v3251_v36, 0.0 }
0x1b74   : > { %v3308_v20 = vpop.f32.mrf.mxu1 }
0x1b75   : > { %v3317_v32 = vsel %vm556_vm1, %v3308_v20, 0.0 }
0x1b7a   : > { %v3253_v21 = vpop.f32.mrf.mxu2 }
0x1b7b   : > { %v3270_v9 = vpop.f32.mrf.mxu3 }
0x1b7c   : > { %v3313_v22 = vsel %vm556_vm1, %v3270_v9, 0.0  ;;  %v3310_v24 = vpop.f32.mrf.mxu1 }
0x1b7d   : > { %v3314_v25 = vadd.f32 %v3313_v22, %v3312_v18 }
0x1b7f   : > { %v3316_v31 = vadd.f32 %v3315_v26, %v3314_v25  ;;  %v3488_v26 = vperm.slane %v5380_v50, 5 }
0x1b81   : > { %v3318_v33 = vadd.f32 %v3317_v32, %v3316_v31 }
0x1b83   : > { %v3272_v12 = vpop.f32.mrf.mxu3  ;;  %v3319_v29 = vadd.f32 %v3318_v33, %v5345_v1  ;;  %v4329_v1 = vld [vmem:[%s5645_s7 + $0x38] sm:$0xff] }
0x1b84   : > { %3380 = vmatpush.bf16.msra.mxu2 %v4329_v1  ;;  %v4338_v1 = vld [vmem:[%s5641_s3] sm:$0xff] }
0x1b85   : > { %v5512_v35 = vadd.f32 %v3320_v34, %v3319_v29  ;;  %v2032_v29 = vrot.slane %v5142_v28, 1 }
0x1b87   : > { %v3322_v40 = vsel %vm556_vm1, %v5512_v35, 0.0 }
0x1b88   : > { %3323 = vadd.xlane.f32.xlu2 %v3322_v40  ;;  %3381 = vmatpush.bf16.msra.mxu2 %v4328_v46 }
0x1bfb   : > { %v3324_v39 = vpop.xlane.xlu2 %3323 }
0x1bfc   : > { %v3325_v41 = vmul.f32 %v3324_v39, %v4745_v30 }
0x1bfe   : > { %v3326_v42 = vsub.f32 %v5512_v35, %v3325_v41 }
0x1c00   : > { %v3327_v27 = vmul.f32 %v3326_v42, %v3326_v42 }
0x1c02   : > { %v3328_v23 = vsel %vm556_vm1, %v3327_v27, 0.0  ;;  %v2036_v27 = vrot.slane %v5142_v28, 2 }
0x1c03   : > { %3329 = vadd.xlane.f32.xlu0 %v3328_v23 }
0x1c17   : > { %2041 = vrot.lane.b32.xlu0 %v2040_v44, %s4580_s23  ;;  %v4339_v44 = vld [vmem:[%s5641_s3 + $0x8] sm:$0xff] }
0x1c18   : > { %3565 = vmatpush.bf16.msrb.mxu0 %v4339_v44 }
0x1c1c   : > { %3566 = vmatpush.bf16.msrb.mxu0 %v4338_v1 }
0x1c76   : > { %v3330_v48 = vpop.xlane.xlu0 %3329 }
0x1c77   : > { %v3331_v3 = vmul.f32 %v3330_v48, %v4745_v30 }
0x1c79   : > { %v3332_v45 = vadd.f32 1e-05, %v3331_v3 }
0x1c7b   : > { %4502 = vrsqrt.f32 %v3332_v45  ;;  %vm3339_vm11 = vweird.f32 %v3332_v45 }
0x1c81   : > { %v4503_v43 = vpop.eup %4502 }
0x1c82   : > { %v3334_v49 = vmul.f32 %v4503_v43, %v3332_v45  ;;  %vm3340_vm9 = vweird.f32 %v4503_v43 }
0x1c83   : > { %vm3341_vm8 = vmor %vm3339_vm11, %vm3340_vm9 }
0x1c84   : > { %v3335_v52 = vmul.f32 %v4503_v43, %v3334_v49 }
0x1c86   : > { %v3336_v13 = vmul.f32 0.5, %v3335_v52 }
0x1c88   : > { %v3337_v53 = vsub.f32 1.5, %v3336_v13 }
0x1c89   : > { %v2042_v56 = vpop.permute.xlu0 %2041 }
0x1c8a   : > { %v3338_v55 = vmul.f32 %v4503_v43, %v3337_v53 }
0x1c8c   : > { %v3342_v59 = vsel %vm3341_vm8, %v4503_v43, %v3338_v55  ;;  %v3512_v55 = vld [vmem:[%s5640_s2 + $0xa] sm:$0x1]  ;;  %vm3509_vm8 = vcmask 1040384  }
0x1c8d   : > { %v3343_v60 = vmul.f32 %v3342_v59, %v3326_v42 }
0x1c8f   : > { %v3345_v62 = vmul.f32 %v3344_v57, %v3343_v60 }
0x1c91   : > { %v3347_v0 = vadd.f32 %v3346_v37, %v3345_v62 }
0x1c93   : > { %v3348_v2 = vpack.c.bf16 %v3347_v0, %v3347_v0 }
0x1c95   : > { %4192 = vmatmul.msk.bf16.vlgmr.msra.gmra.mxu2 %vm556_vm1, %v3348_v2 }
0x1d18   : > { %v3383_v47 = vpop.f32.mrf.mxu2 }
0x1d19   : > { %v3384_v51 = vadd.f32 %v4407_v63, %v3383_v47 }
0x1d1b   : > { %v4193_v7 = vmul.f32 -1.702, %v3384_v51 }
0x1d1d   : > { %v3389_v61 = vmul.f32 1.442695, %v4193_v7 }
0x1d1f   : > { %4504 = vpow2.f32 %v3389_v61 }
0x1d20   : > { %v3385_v4 = vpop.f32.mrf.mxu2 }
0x1d25   : > { %v4505_v14 = vpop.eup %4504 }
0x1d26   : > { %v3391_v15 = vadd.f32 1.0, %v4505_v14 }
0x1d28   : > { %4506 = vrcp.f32 %v3391_v15  ;;  %v3403_v19 = vand.u32 2147483648, %v3391_v15  ;;  %v3401_v20 = vand.u32 2147483647, %v3391_v15  ;;  %vm3397_vm12 = vweird.f32 %v3391_v15 }
0x1d2a   : > { %v3404_v9 = vor.u32 1.1754944e-38, %v3403_v19  ;;  %vm3402_vm14 = vcmp.eq.f32.partialorder %v3401_v20, 8.507059e+37 }
0x1d2e   : > { %v4507_v16 = vpop.eup %4506 }
0x1d2f   : > { %v3393_v11 = vmul.f32 %v4507_v16, %v3391_v15  ;;  %vm3398_vm10 = vweird.f32 %v4507_v16 }
0x1d30   : > { %vm3399_vm13 = vmor %vm3397_vm12, %vm3398_vm10 }
0x1d31   : > { %v3394_v17 = vsub.f32 1.0, %v3393_v11 }
0x1d33   : > { %v3395_v36 = vmul.f32 %v4507_v16, %v3394_v17 }
0x1d35   : > { %v3396_v21 = vadd.f32 %v4507_v16, %v3395_v36 }
0x1d37   : > { %v3400_v18 = vsel %vm3399_vm13, %v4507_v16, %v3396_v21 }
0x1d38   : > { %v3405_v22 = vsel %vm3402_vm14, %v3404_v9, %v3400_v18 }
0x1d39   : > { %v3407_v24 = vmul.f32 %v3405_v22, %v3384_v51 }
0x1d3b   : > { %v3408_v25 = vpack.c.bf16 %v3407_v24, %v3407_v24 }
0x1d3d   : > { %3482 = vmatmul.bf16.vlgmr.msra.gmra.mxu3 %v3408_v25 }
0x1dc0   : > { %v3483_v31 = vpop.f32.mrf.mxu3 }
0x1dc1   : > { %v3487_v32 = vadd.f32 %v3483_v31, %v5512_v35 }
0x1dc3   : > { %v5560_v33 = vadd.f32 %v3488_v26, %v3487_v32 }
0x1dc5   : > { %v3515_v34 = vsel %vm3514_vm15, %v5560_v33, 0.0  ;;  %v3495_v40 = vrot.slane %v5560_v33, 2  ;;  %v3491_v23 = vrot.slane %v5560_v33, 1  ;;  %v3499_v5 = vrot.slane %v5560_v33, 3 }
0x1dc6   : > { %3516 = vadd.xlane.f32.xlu1 %v3515_v34 }
0x1dc8   : > { %v3485_v12 = vpop.f32.mrf.mxu3 }
0x1ddf   : > { %2033 = vrot.lane.b32.xlu1 %v2032_v29, %s4581_s29 }
0x1de7   : > { %3496 = vrot.lane.b32.xlu1 %v3495_v40, %s4582_s30 }
0x1e39   : > { %v3517_v39 = vpop.xlane.xlu1 %3516 }
0x1e3a   : > { %v3518_v50 = vmul.f32 %v3517_v39, %v4745_v30 }
0x1e3c   : > { %v3519_v35 = vsub.f32 %v5560_v33, %v3518_v50 }
0x1e3e   : > { %v3520_v41 = vmul.f32 %v3519_v35, %v3519_v35 }
0x1e40   : > { %v3521_v42 = vsel %vm3514_vm15, %v3520_v41, 0.0 }
0x1e41   : > { %3522 = vadd.xlane.f32.xlu2 %v3521_v42 }
0x1e51   : > { %v2034_v8 = vpop.permute.xlu1 %2033 }
0x1e52   : > { %v2044_v10 = vsel %vm556_vm1, %v5142_v28, %v2034_v8 }
0x1e59   : > { %2037 = vrot.lane.b32.xlu2 %v2036_v27, %s4582_s30  ;;  %s3605_s30 = scalar_lea.hbm %s5650_s12, %s4669_s25  ;;  %v3497_v28 = vpop.permute.xlu1 %3496 }
0x1e5a   : > { %s5600_s17 = sshll.u32 %s3605_s30, 4  ;;  %s4532_s30 = scalar_lea.hbm %s5650_s12, 2  ;;  %s3610_s17 = int_to_ptr.hbm [resolvable:$true] %s5600_s17 }
0x1e5b   : > { %s4526_s19 = sshra.s32 %s3610_s17, 4  ;;  %s4527_s19 = int_to_ptr.hbm [resolvable:$true] %s4526_s19 }
0x1e5c   : > { %s4528_s20 = scalar_lea.hbm %s4527_s19, 1  ;;  %p4533_p0 = scmp.lt.s32.totalorder %s4527_s19, %s5650_s12 }
0x1e5d   : > { %p4529_p11 = scmp.ne.s32.totalorder %s4527_s19, %s4528_s20  ;;  %p4534_p1 = scmp.lt.s32.totalorder %s4532_s30, %s4528_s20 }
0x1e5f   : > { %p4530_p12 = pnand %p4529_p11, %p4686_p5  ;;  %p4535_p2 = por %p4534_p1, %p4533_p0 }
0x1e61   : > { %3492 = vrot.lane.b32.xlu2 %v3491_v23, %s4581_s29  ;;  %p4531_p13 = pneg %p4530_p12 }
0x1e63   : > { %p4536_p3 = pnand %p4535_p2, %p4531_p13 }
0x1eb4   : > { %v3523_v46 = vpop.xlane.xlu2 %3522 }
0x1eb5   : > { %v3524_v48 = vmul.f32 %v3523_v46, %v4745_v30  ;;  %v3513_v30 = vld [vmem:[%s5640_s2 + $0xb] sm:$0x1] }
0x1eb7   : > { %v3525_v3 = vadd.f32 1e-05, %v3524_v48 }
0x1eb9   : > { %4508 = vrsqrt.f32 %v3525_v3  ;;  %vm3532_vm3 = vweird.f32 %v3525_v3 }
0x1ebc   : > { %v2038_v54 = vpop.permute.xlu2 %2037 }
0x1ebd   : > { %v2045_v61 = vsel %vm524_vm0, %v2044_v10, %v2038_v54 }
0x1ebe   : > { %v2047_v15 = vsel %vm2046_vm6, %v2045_v61, %v2042_v56 }
0x1ebf   : > { %v4509_v45 = vpop.eup %4508  ;;  %v3507_v19 = vrot.slane %v2047_v15, 1 }
0x1ec0   : > { %v3527_v43 = vmul.f32 %v4509_v45, %v3525_v3  ;;  %vm3533_vm2 = vweird.f32 %v4509_v45 }
0x1ec1   : > { %vm3534_vm4 = vmor %vm3532_vm3, %vm3533_vm2 }
0x1ec2   : > { %v3528_v49 = vmul.f32 %v4509_v45, %v3527_v43 }
0x1ec4   : > { %v3529_v52 = vmul.f32 0.5, %v3528_v49  ;;  %v3493_v4 = vpop.permute.xlu2 %3492 }
0x1ec5   : > { %v3503_v16 = vsel %vm556_vm1, %v5560_v33, %v3493_v4 }
0x1ec6   : > { %v3530_v13 = vsub.f32 1.5, %v3529_v52  ;;  %v3504_v20 = vsel %vm524_vm0, %v3503_v16, %v3497_v28 }
0x1ec8   : > { %v3531_v53 = vmul.f32 %v4509_v45, %v3530_v13 }
0x1eca   : > { %v3535_v57 = vsel %vm3534_vm4, %v4509_v45, %v3531_v53 }
0x1ecb   : > { %v3536_v59 = vmul.f32 %v3535_v57, %v3519_v35 }
0x1ecd   : > { %v3537_v37 = vmul.f32 %v3536_v59, %v3512_v55 }
0x1ecf   : > { %v3538_v60 = vadd.f32 %v3537_v37, %v3513_v30 }
0x1ed1   : > { %v3539_v62 = vpack.c.bf16 %v3538_v60, %v3538_v60 }
0x1ed3   : > { %4250 = vmatmul.msk.bf16.vlgmr.msrb.gmra.mxu0 %vm556_vm1, %v3539_v62 }
0x1f50   : > { %v3568_v0 = vpop.f32.mrf.mxu0 }
0x1f51   : > { %v3572_v2 = vmul.f32 %v3568_v0, %v3568_v0 }
0x1f53   : > { %v3574_v38 = vsel %vm3573_vm5, %v3572_v2, 0.0 }
0x1f54   : > { %3575 = vadd.xlane.f32.xlu0 %v3574_v38 }
0x1f58   : > { %v3570_v58 = vpop.f32.mrf.mxu0 }
0x1f68   : > { %3500 = vrot.lane.b32.xlu0 %v3499_v5, %s4580_s23 }
0x1fc7   : > { %v3576_v6 = vpop.xlane.xlu0 %3575 }
0x1fc8   : > { %4510 = vrsqrt.f32 %v3576_v6  ;;  %vm3583_vm9 = vweird.f32 %v3576_v6 }
0x1fce   : > { %v4511_v63 = vpop.eup %4510 }
0x1fcf   : > { %v3578_v47 = vmul.f32 %v4511_v63, %v3576_v6  ;;  %vm3584_vm7 = vweird.f32 %v4511_v63 }
0x1fd0   : > { %vm3585_vm11 = vmor %vm3583_vm9, %vm3584_vm7 }
0x1fd1   : > { %v3579_v51 = vmul.f32 %v4511_v63, %v3578_v47 }
0x1fd3   : > { %v3580_v7 = vmul.f32 0.5, %v3579_v51 }
0x1fd5   : > { %v3581_v14 = vsub.f32 1.5, %v3580_v7 }
0x1fd7   : > { %v3582_v11 = vmul.f32 %v4511_v63, %v3581_v14 }
0x1fd9   : > { %v3586_v17 = vsel %vm3585_vm11, %v4511_v63, %v3582_v11 }
0x1fda   : > { %v3587_v36 = vmul.f32 %v3586_v17, %v3568_v0  ;;  %v3501_v21 = vpop.permute.xlu0 %3500 }
0x1fdb   : > { %v3505_v9 = vsel %vm2046_vm6, %v3504_v20, %v3501_v21 }
0x1fdc   : > { %v3510_v18 = vsel %vm3509_vm8, %v3507_v19, %v3505_v9  ;;  %3588 = vst.msk [vmem:[%s412_s15] sm:$0x1] %vm3573_vm5, %v3587_v36 }
0x1fdd   : > { %3511 = vst [vmem:[%s421_s26] sm:$0x3] %v3510_v18 }
0x1fde   : > { %4539 = shalt.err (!%p4536_p3)
}
0x1fdf   : > { %4340 = dma.vmem_to_hbm [thread:$0]  (%p4686_p5), %s3608_s14, 16, %s3610_s17, %s3594_s18  }
0x1fe0 PF: > { %p4346_p4 = scmp.ge.s32.totalorder %s4574_s24, 2  ;;  %s3628_s15 = sand.u32 1, %s4562_s21  }
0x1fe1   : > { %s3629_s27 = scalar_lea.sflag [#allocation3], %s3628_s15 }
0x1fe2   : > { %p4343_p7 = pnand %p4346_p4, %p4690_p6 }
0x1fe4   : > { %p4344_p8 = pneg %p4343_p7 }
0x1fe6   : > { %4557 = dma.done.wait (%p4344_p8), %s3629_s27, 16  }
0x1fe7   : > { %4559 = vsyncadd (%p4344_p8), %s3629_s27, 4294967280  ;;  %s5666_s24 = sld [smem:[#allocation6_spill]]  ;;  %s5669_s21 = smov %s4566_s22 }
0x1fe8   : > { %s5667_s26 = sld [smem:[#allocation5_spill]] }
0x1fe9   : > { %s5668_s23 = sld [smem:[#allocation7_spill]] }
0x1fed   : > { %p23_p9 = scmp.ge.s32.totalorder %s5666_s24, 4  }
0x1fee   : > { %s5670_s22 = smov %s5667_s26 }
0x1fef   :  { %25 = sbr.rel (!%p23_p9) target bundleno = 3 (0x3), region = 132 }
0x1ff4   :  { %3634 = vsyncpa [#allocation3], 1 }
0x1ff5   :  { %3636 = vsyncpa [#allocation3 + $0x1], 1 }

</bundles_post_ra>
